<compile_context>
chip_gen: v7x
topology: tpu7x:2x2x1
jax: 0.10.0
libtpu: 0.0.40
codegen_flags: <defaults>
</compile_context>

<pallas_src>
import jax
import jax.numpy as jnp
from jax.experimental import pallas as pl
from jax.experimental.pallas import tpu as pltpu

H = 768          # BERT hidden size (fixed by nn.Linear(768, ...))
NC = 3           # number of classes
NC_PAD = 128     # pad class dim to one full lane register for lane-dense stores
NEG_INF = -1e30  # padded-class bias so padded lanes vanish in softmax


def classifier_kernel(x_ref, w1_ref, b1_ref, w2_ref, b2_ref, w3_ref, b3_ref,
                      w4_ref, b4_ref, logits_ref, probs_ref):
    # x_ref: (tm, 768) f32 tile of flattened hidden states; the bf16 operand
    # cast happens here (hidden under the MXU).  Weights are bf16, biases f32.
    # All matmuls accumulate in f32 on the MXU; bias add, ReLU and softmax run
    # in f32 on the VPU/EUP.
    x = x_ref[...].astype(jnp.bfloat16)
    h = jnp.dot(x, w1_ref[...],
                preferred_element_type=jnp.float32) + b1_ref[...]
    h = jnp.maximum(h, 0.0)
    h = jnp.dot(h.astype(jnp.bfloat16), w2_ref[...],
                preferred_element_type=jnp.float32) + b2_ref[...]
    h = jnp.maximum(h, 0.0)
    h = jnp.dot(h.astype(jnp.bfloat16), w3_ref[...],
                preferred_element_type=jnp.float32) + b3_ref[...]
    h = jnp.maximum(h, 0.0)
    # final projection: real classes live in lanes [0, 3); lanes [3, 128) get
    # bias = -1e30 so exp() underflows to exactly 0 in the softmax below.
    logits = jnp.dot(h.astype(jnp.bfloat16), w4_ref[...],
                     preferred_element_type=jnp.float32) + b4_ref[...]
    logits_ref[...] = logits
    m = jnp.max(logits, axis=-1, keepdims=True)
    e = jnp.exp(logits - m)
    denom = jnp.sum(e, axis=-1, keepdims=True)
    # Exact divide: keeps each probability row an exact simplex (the approx
    # EUP reciprocal broke the sum-to-1 guarantee); off the MXU critical path.
    probs_ref[...] = e / denom


def _round_up(x, m):
    return ((x + m - 1) // m) * m


def prepare_params(params):
    """One-time conversion to the kernel's canonical layout (do NOT call per
    forward): bf16 [in,out] weights, f32 row biases, last layer padded to 128
    output lanes with -1e30 bias on the padding."""
    w1, b1, w2, b2, w3, b3, w4, b4 = params
    bf16 = jnp.bfloat16
    w4p = jnp.zeros((H, NC_PAD), jnp.float32).at[:, :NC].set(w4).astype(bf16)
    b4p = jnp.full((1, NC_PAD), NEG_INF, jnp.float32).at[0, :NC].set(b4)
    return (w1.astype(bf16), b1.reshape(1, H).astype(jnp.float32),
            w2.astype(bf16), b2.reshape(1, H).astype(jnp.float32),
            w3.astype(bf16), b3.reshape(1, H).astype(jnp.float32),
            w4p, b4p)


def classifier_head(x, prepared, *, tm=512, vmem_limit_bytes=None):
    """x: [B, S, 768] f32 hidden states, prepared = prepare_params(params).
    Returns (logits [B,S,3], probs [B,S,3])."""
    B, S, Hd = x.shape
    assert Hd == H
    M = B * S

    # Row tile selection:
    #  * clamp to M rounded up to 16 (bf16 sublane pack; never an 8-row block)
    #  * when there's enough work for two >=256-row tiles, cap at ~M/2 so the
    #    single "parallel" grid axis has >=2 steps (keeps v7x's 2nd TC busy).
    M16 = _round_up(M, 16)
    tm_eff = min(tm, M16)
    half = _round_up(pl.cdiv(M16, 2), 16)
    if M16 >= 512 and tm_eff > half:
        tm_eff = max(256, half)
    M_pad = _round_up(M, tm_eff)

    xf = x.reshape(M, H)                              # stays f32; cast in-kernel
    if M_pad != M:
        xf = jnp.pad(xf, ((0, M_pad - M), (0, 0)))    # padded rows sliced off below

    w1b, b1r, w2b, b2r, w3b, b3r, w4p, b4p = prepared

    full = lambda i: (0, 0)
    resident = pl.Buffered(1)   # constant index_map -> no double buffering

    grid = (M_pad // tm_eff,)
    flops = 2 * M_pad * H * (3 * H + NC_PAD)
    bytes_accessed = (M_pad * H * 4                       # x (f32)
                      + (3 * H * H + H * NC_PAD) * 2      # weights (bf16)
                      + (3 * H + NC_PAD) * 4              # biases (f32)
                      + 2 * M_pad * NC_PAD * 4)           # logits + probs (f32)
    cost = pl.CostEstimate(flops=flops, transcendentals=M_pad * NC_PAD,
                           bytes_accessed=bytes_accessed)

    logits_p, probs_p = pl.pallas_call(
        classifier_kernel,
        out_shape=(jax.ShapeDtypeStruct((M_pad, NC_PAD), jnp.float32),
                   jax.ShapeDtypeStruct((M_pad, NC_PAD), jnp.float32)),
        grid_spec=pltpu.PrefetchScalarGridSpec(
            num_scalar_prefetch=0,
            grid=grid,
            in_specs=[
                pl.BlockSpec((tm_eff, H), lambda i: (i, 0)),              # x rows
                pl.BlockSpec((H, H), full, pipeline_mode=resident),       # W1
                pl.BlockSpec((1, H), full, pipeline_mode=resident),       # b1
                pl.BlockSpec((H, H), full, pipeline_mode=resident),       # W2
                pl.BlockSpec((1, H), full, pipeline_mode=resident),       # b2
                pl.BlockSpec((H, H), full, pipeline_mode=resident),       # W3
                pl.BlockSpec((1, H), full, pipeline_mode=resident),       # b3
                pl.BlockSpec((H, NC_PAD), full, pipeline_mode=resident),  # W4 (padded)
                pl.BlockSpec((1, NC_PAD), full, pipeline_mode=resident),  # b4 (padded)
            ],
            out_specs=[pl.BlockSpec((tm_eff, NC_PAD), lambda i: (i, 0)),
                       pl.BlockSpec((tm_eff, NC_PAD), lambda i: (i, 0))],
        ),
        compiler_params=pltpu.CompilerParams(
            dimension_semantics=("parallel",),
            vmem_limit_bytes=vmem_limit_bytes),
        cost_estimate=cost,
    )(xf, w1b, b1r, w2b, b2r, w3b, b3r, w4p, b4p)

    logits = logits_p[:M, :NC].reshape(B, S, NC)
    probs = probs_p[:M, :NC].reshape(B, S, NC)
    return logits, probs


def init_params(key):
    """Deterministic init of the classifier: 3x Linear(768,768)+ReLU, Linear(768,3).
    Weights stored as [in, out] (kernel computes x @ W + b)."""
    ks = jax.random.split(key, 8)
    def lin(kw, kb, fan_in, fan_out):
        bound = 1.0 / jnp.sqrt(fan_in)
        w = jax.random.uniform(kw, (fan_in, fan_out), jnp.float32, -bound, bound)
        b = jax.random.uniform(kb, (fan_out,), jnp.float32, -bound, bound)
        return w, b
    w1, b1 = lin(ks[0], ks[1], H, H)
    w2, b2 = lin(ks[2], ks[3], H, H)
    w3, b3 = lin(ks[4], ks[5], H, H)
    w4, b4 = lin(ks[6], ks[7], H, NC)
    return (w1, b1, w2, b2, w3, b3, w4, b4)


def synthetic_bert_encoder(key, sentences, masks, vocab=128):
    """Deterministic stand-in for BertModel(...)[0]: embedding lookup * mask.
    Returns [B, S, 768] f32.  (Glue, not the hot path.)"""
    emb = jax.random.normal(key, (vocab, H), jnp.float32) * 0.02
    hidden = emb[sentences]                       # [B, S, 768]
    hidden = hidden * masks[..., None].astype(jnp.float32)
    return hidden


def simple_ae_forward(sentences, masks, prepared_params, enc_key):
    x = synthetic_bert_encoder(enc_key, sentences, masks)   # [B, S, 768]
    logits, output = classifier_head(x, prepared_params)    # Pallas hot path
    return logits, output


def _ref_forward(x, params, use_bf16_operands):
    """Pure-JAX reference.  With use_bf16_operands=True it mirrors the kernel's
    bf16-operand / f32-accumulate matmuls exactly."""
    w1, b1, w2, b2, w3, b3, w4, b4 = params
    B, S, _ = x.shape
    h = x.reshape(-1, H)

    def layer(h, w, b, relu):
        if use_bf16_operands:
            y = jnp.dot(h.astype(jnp.bfloat16), w.astype(jnp.bfloat16),
                        preferred_element_type=jnp.float32) + b
        else:
            y = h @ w + b
        return jnp.maximum(y, 0.0) if relu else y

    h = layer(h, w1, b1, True)
    h = layer(h, w2, b2, True)
    h = layer(h, w3, b3, True)
    logits = layer(h, w4, b4, False)
    probs = jax.nn.softmax(logits, axis=-1)
    return logits.reshape(B, S, NC), probs.reshape(B, S, NC)


if __name__ == "__main__":
    key = jax.random.PRNGKey(0)
    k_enc, k_par, k_tok = jax.random.split(key, 3)

    B, S = 2, 8   # small shapes: batch=2, seq=8, hidden=768 (fixed by module)
    sentences = jax.random.randint(k_tok, (B, S), 0, 128, dtype=jnp.int32)
    masks = jnp.ones((B, S), dtype=jnp.int32)

    params = init_params(k_par)
    prepared = prepare_params(params)   # one-time bf16 cast + class-lane pad

    logits, output = simple_ae_forward(sentences, masks, prepared, k_enc)
    logits = jax.block_until_ready(logits)
    output = jax.block_until_ready(output)

    # sanity checks against pure-JAX references
    x = synthetic_bert_encoder(k_enc, sentences, masks)
    # (a) exact-arithmetic reference (bf16 operands, f32 accumulate) — tight tol
    ref_logits_bf, ref_probs_bf = _ref_forward(x, params, use_bf16_operands=True)
    # (b) full-f32 reference (original module semantics) — loose tol, documents
    #     that the bf16 operand cast is a faithful approximation
    ref_logits_32, ref_probs_32 = _ref_forward(x, params, use_bf16_operands=False)

    assert logits.shape == (B, S, NC) and output.shape == (B, S, NC)
    assert jnp.allclose(logits, ref_logits_bf, atol=5e-4, rtol=5e-3)
    assert jnp.allclose(output, ref_probs_bf, atol=2e-3, rtol=1e-2)
    assert jnp.allclose(logits, ref_logits_32, atol=2e-3, rtol=5e-2)
    assert jnp.allclose(output, ref_probs_32, atol=2e-3, rtol=1e-2)
    assert jnp.allclose(jnp.sum(output, axis=-1), 1.0, atol=1e-3)

    print("KERNEL_OK")
</pallas_src>

<mosaic_0001>
module attributes {stable_mosaic.version = 11 : i64} {
  func.func @classifier_kernel(%arg0: i32, %arg1: memref<16x768xf32, #tpu.memory_space<vmem>>, %arg2: memref<768x768xbf16, #tpu.memory_space<vmem>>, %arg3: memref<1x768xf32, #tpu.memory_space<vmem>>, %arg4: memref<768x768xbf16, #tpu.memory_space<vmem>>, %arg5: memref<1x768xf32, #tpu.memory_space<vmem>>, %arg6: memref<768x768xbf16, #tpu.memory_space<vmem>>, %arg7: memref<1x768xf32, #tpu.memory_space<vmem>>, %arg8: memref<768x128xbf16, #tpu.memory_space<vmem>>, %arg9: memref<1x128xf32, #tpu.memory_space<vmem>>, %arg10: memref<16x128xf32, #tpu.memory_space<vmem>>, %arg11: memref<16x128xf32, #tpu.memory_space<vmem>>) attributes {dimension_semantics = [#tpu.dimension_semantics<parallel>], iteration_bounds = array<i64: 1>, scalar_prefetch = 0 : i64, scratch_operands = 0 : i64, tpu.core_type = #tpu.core_type<tc>, window_params = [{transform_indices = @transform_0, window_bounds = array<i64: 16, 768>}, {pipeline_mode = #tpu.pipeline_mode<synchronous>, transform_indices = @transform_1, window_bounds = array<i64: 768, 768>}, {pipeline_mode = #tpu.pipeline_mode<synchronous>, transform_indices = @transform_2, window_bounds = array<i64: 1, 768>}, {pipeline_mode = #tpu.pipeline_mode<synchronous>, transform_indices = @transform_3, window_bounds = array<i64: 768, 768>}, {pipeline_mode = #tpu.pipeline_mode<synchronous>, transform_indices = @transform_4, window_bounds = array<i64: 1, 768>}, {pipeline_mode = #tpu.pipeline_mode<synchronous>, transform_indices = @transform_5, window_bounds = array<i64: 768, 768>}, {pipeline_mode = #tpu.pipeline_mode<synchronous>, transform_indices = @transform_6, window_bounds = array<i64: 1, 768>}, {pipeline_mode = #tpu.pipeline_mode<synchronous>, transform_indices = @transform_7, window_bounds = array<i64: 768, 128>}, {pipeline_mode = #tpu.pipeline_mode<synchronous>, transform_indices = @transform_8, window_bounds = array<i64: 1, 128>}, {transform_indices = @transform_9, window_bounds = array<i64: 16, 128>}, {transform_indices = @transform_10, window_bounds = array<i64: 16, 128>}]} {
    %c0 = arith.constant 0 : index
    %c0_0 = arith.constant 0 : index
    %0 = vector.load %arg1[%c0, %c0_0] : memref<16x768xf32, #tpu.memory_space<vmem>>, vector<16x768xf32>
    %1 = arith.truncf %0 : vector<16x768xf32> to vector<16x768xbf16>
    %c0_1 = arith.constant 0 : index
    %c0_2 = arith.constant 0 : index
    %2 = vector.load %arg2[%c0_1, %c0_2] : memref<768x768xbf16, #tpu.memory_space<vmem>>, vector<768x768xbf16>
    %cst = arith.constant dense<0.000000e+00> : vector<16x768xf32>
    %3 = tpu.matmul %1, %2, %cst {dimension_numbers = #tpu.dot_dimension_numbers<[1], [0], [0], [1], [0, 0, 1, 1], [], []>} : vector<16x768xbf16>, vector<768x768xbf16>, vector<16x768xf32> -> vector<16x768xf32>
    %c0_3 = arith.constant 0 : index
    %c0_4 = arith.constant 0 : index
    %4 = vector.load %arg3[%c0_3, %c0_4] : memref<1x768xf32, #tpu.memory_space<vmem>>, vector<1x768xf32>
    %5 = vector.broadcast %4 : vector<1x768xf32> to vector<16x768xf32>
    %6 = arith.addf %3, %5 : vector<16x768xf32>
    %cst_5 = arith.constant 0.000000e+00 : f32
    %7 = vector.broadcast %cst_5 : f32 to vector<16x768xf32>
    %8 = arith.maximumf %6, %7 : vector<16x768xf32>
    %9 = arith.truncf %8 : vector<16x768xf32> to vector<16x768xbf16>
    %c0_6 = arith.constant 0 : index
    %c0_7 = arith.constant 0 : index
    %10 = vector.load %arg4[%c0_6, %c0_7] : memref<768x768xbf16, #tpu.memory_space<vmem>>, vector<768x768xbf16>
    %cst_8 = arith.constant dense<0.000000e+00> : vector<16x768xf32>
    %11 = tpu.matmul %9, %10, %cst_8 {dimension_numbers = #tpu.dot_dimension_numbers<[1], [0], [0], [1], [0, 0, 1, 1], [], []>} : vector<16x768xbf16>, vector<768x768xbf16>, vector<16x768xf32> -> vector<16x768xf32>
    %c0_9 = arith.constant 0 : index
    %c0_10 = arith.constant 0 : index
    %12 = vector.load %arg5[%c0_9, %c0_10] : memref<1x768xf32, #tpu.memory_space<vmem>>, vector<1x768xf32>
    %13 = vector.broadcast %12 : vector<1x768xf32> to vector<16x768xf32>
    %14 = arith.addf %11, %13 : vector<16x768xf32>
    %cst_11 = arith.constant 0.000000e+00 : f32
    %15 = vector.broadcast %cst_11 : f32 to vector<16x768xf32>
    %16 = arith.maximumf %14, %15 : vector<16x768xf32>
    %17 = arith.truncf %16 : vector<16x768xf32> to vector<16x768xbf16>
    %c0_12 = arith.constant 0 : index
    %c0_13 = arith.constant 0 : index
    %18 = vector.load %arg6[%c0_12, %c0_13] : memref<768x768xbf16, #tpu.memory_space<vmem>>, vector<768x768xbf16>
    %cst_14 = arith.constant dense<0.000000e+00> : vector<16x768xf32>
    %19 = tpu.matmul %17, %18, %cst_14 {dimension_numbers = #tpu.dot_dimension_numbers<[1], [0], [0], [1], [0, 0, 1, 1], [], []>} : vector<16x768xbf16>, vector<768x768xbf16>, vector<16x768xf32> -> vector<16x768xf32>
    %c0_15 = arith.constant 0 : index
    %c0_16 = arith.constant 0 : index
    %20 = vector.load %arg7[%c0_15, %c0_16] : memref<1x768xf32, #tpu.memory_space<vmem>>, vector<1x768xf32>
    %21 = vector.broadcast %20 : vector<1x768xf32> to vector<16x768xf32>
    %22 = arith.addf %19, %21 : vector<16x768xf32>
    %cst_17 = arith.constant 0.000000e+00 : f32
    %23 = vector.broadcast %cst_17 : f32 to vector<16x768xf32>
    %24 = arith.maximumf %22, %23 : vector<16x768xf32>
    %25 = arith.truncf %24 : vector<16x768xf32> to vector<16x768xbf16>
    %c0_18 = arith.constant 0 : index
    %c0_19 = arith.constant 0 : index
    %26 = vector.load %arg8[%c0_18, %c0_19] : memref<768x128xbf16, #tpu.memory_space<vmem>>, vector<768x128xbf16>
    %cst_20 = arith.constant dense<0.000000e+00> : vector<16x128xf32>
    %27 = tpu.matmul %25, %26, %cst_20 {dimension_numbers = #tpu.dot_dimension_numbers<[1], [0], [0], [1], [0, 0, 1, 1], [], []>} : vector<16x768xbf16>, vector<768x128xbf16>, vector<16x128xf32> -> vector<16x128xf32>
    %c0_21 = arith.constant 0 : index
    %c0_22 = arith.constant 0 : index
    %28 = vector.load %arg9[%c0_21, %c0_22] : memref<1x128xf32, #tpu.memory_space<vmem>>, vector<1x128xf32>
    %29 = vector.broadcast %28 : vector<1x128xf32> to vector<16x128xf32>
    %30 = arith.addf %27, %29 : vector<16x128xf32>
    %c0_23 = arith.constant 0 : index
    %c0_24 = arith.constant 0 : index
    %31 = vector.load %arg10[%c0_23, %c0_24] : memref<16x128xf32, #tpu.memory_space<vmem>>, vector<16x128xf32>
    tpu.vector_store %arg10[%c0_23, %c0_24], %30 {strides = array<i32>} : memref<16x128xf32, #tpu.memory_space<vmem>>, vector<16x128xf32>,
    %cst_25 = arith.constant dense<0xFF800000> : vector<16xf32>
    %32 = vector.multi_reduction <maximumf>, %30, %cst_25 [1] : vector<16x128xf32> to vector<16xf32>
    %33 = vector.shape_cast %32 : vector<16xf32> to vector<16x1xf32>
    %34 = vector.broadcast %33 : vector<16x1xf32> to vector<16x128xf32>
    %35 = arith.subf %30, %34 : vector<16x128xf32>
    %36 = math.exp %35 : vector<16x128xf32>
    %cst_26 = arith.constant dense<0.000000e+00> : vector<16xf32>
    %37 = vector.multi_reduction <add>, %36, %cst_26 [1] : vector<16x128xf32> to vector<16xf32>
    %38 = vector.shape_cast %37 : vector<16xf32> to vector<16x1xf32>
    %39 = vector.broadcast %38 : vector<16x1xf32> to vector<16x128xf32>
    %40 = arith.divf %36, %39 : vector<16x128xf32>
    %c0_27 = arith.constant 0 : index
    %c0_28 = arith.constant 0 : index
    %41 = vector.load %arg11[%c0_27, %c0_28] : memref<16x128xf32, #tpu.memory_space<vmem>>, vector<16x128xf32>
    tpu.vector_store %arg11[%c0_27, %c0_28], %40 {strides = array<i32>} : memref<16x128xf32, #tpu.memory_space<vmem>>, vector<16x128xf32>,
    return
  }
  func.func @transform_0(%arg0: i32) -> (i32, i32) {
    %c0_i32 = arith.constant 0 : i32
    %c0_i32_0 = arith.constant 0 : i32
    return %arg0, %c0_i32 : i32, i32
  }
  func.func @transform_1(%arg0: i32) -> (i32, i32) {
    %c0_i32 = arith.constant 0 : i32
    %c0_i32_0 = arith.constant 0 : i32
    %c0_i32_1 = arith.constant 0 : i32
    return %c0_i32, %c0_i32_0 : i32, i32
  }
  func.func @transform_2(%arg0: i32) -> (i32, i32) {
    %c0_i32 = arith.constant 0 : i32
    %c0_i32_0 = arith.constant 0 : i32
    %c0_i32_1 = arith.constant 0 : i32
    return %c0_i32, %c0_i32_0 : i32, i32
  }
  func.func @transform_3(%arg0: i32) -> (i32, i32) {
    %c0_i32 = arith.constant 0 : i32
    %c0_i32_0 = arith.constant 0 : i32
    %c0_i32_1 = arith.constant 0 : i32
    return %c0_i32, %c0_i32_0 : i32, i32
  }
  func.func @transform_4(%arg0: i32) -> (i32, i32) {
    %c0_i32 = arith.constant 0 : i32
    %c0_i32_0 = arith.constant 0 : i32
    %c0_i32_1 = arith.constant 0 : i32
    return %c0_i32, %c0_i32_0 : i32, i32
  }
  func.func @transform_5(%arg0: i32) -> (i32, i32) {
    %c0_i32 = arith.constant 0 : i32
    %c0_i32_0 = arith.constant 0 : i32
    %c0_i32_1 = arith.constant 0 : i32
    return %c0_i32, %c0_i32_0 : i32, i32
  }
  func.func @transform_6(%arg0: i32) -> (i32, i32) {
    %c0_i32 = arith.constant 0 : i32
    %c0_i32_0 = arith.constant 0 : i32
    %c0_i32_1 = arith.constant 0 : i32
    return %c0_i32, %c0_i32_0 : i32, i32
  }
  func.func @transform_7(%arg0: i32) -> (i32, i32) {
    %c0_i32 = arith.constant 0 : i32
    %c0_i32_0 = arith.constant 0 : i32
    %c0_i32_1 = arith.constant 0 : i32
    return %c0_i32, %c0_i32_0 : i32, i32
  }
  func.func @transform_8(%arg0: i32) -> (i32, i32) {
    %c0_i32 = arith.constant 0 : i32
    %c0_i32_0 = arith.constant 0 : i32
    %c0_i32_1 = arith.constant 0 : i32
    return %c0_i32, %c0_i32_0 : i32, i32
  }
  func.func @transform_9(%arg0: i32) -> (i32, i32) {
    %c0_i32 = arith.constant 0 : i32
    %c0_i32_0 = arith.constant 0 : i32
    return %arg0, %c0_i32 : i32, i32
  }
  func.func @transform_10(%arg0: i32) -> (i32, i32) {
    %c0_i32 = arith.constant 0 : i32
    %c0_i32_0 = arith.constant 0 : i32
    return %arg0, %c0_i32 : i32, i32
  }
}

</mosaic_0001>

<bundles_post_ra>
// kernel: tpu_custom_call.1
= control target key start
LH: loop header
LB: loop body
LE: loop exit
PB: predicated region body
PF: predicated region fallthrough
CT: control target
= control target key end

     0   :  { %16 = vsyncpa [#allocation3], 0  ;;  %s10335_s0 = inlined_call_operand.hbm [shape: f32[16,768], index: 0, kind: input, shape index: {}]   ;;  %s10336_s1 = inlined_call_operand.hbm [shape: bf16[768,768], index: 1, kind: input, shape index: {}]   ;;  %s10337_s2 = inlined_call_operand.hbm [shape: f32[1,768], index: 2, kind: input, shape index: {}]   ;;  %s10338_s3 = inlined_call_operand.hbm [shape: bf16[768,768], index: 3, kind: input, shape index: {}]   ;;  %s10339_s4 = inlined_call_operand.hbm [shape: f32[1,768], index: 4, kind: input, shape index: {}]   ;;  %s10340_s5 = inlined_call_operand.hbm [shape: bf16[768,768], index: 5, kind: input, shape index: {}]   ;;  %s10341_s6 = inlined_call_operand.hbm [shape: f32[1,768], index: 6, kind: input, shape index: {}]   ;;  %s10342_s7 = inlined_call_operand.hbm [shape: bf16[768,128], index: 7, kind: input, shape index: {}]   ;;  %s10343_s8 = inlined_call_operand.hbm [shape: f32[1,128], index: 8, kind: input, shape index: {}]   ;;  %s10344_s9 = inlined_call_operand.hbm [shape: f32[16,128], index: 9, kind: output, shape index: {0}]   ;;  %s10345_s10 = inlined_call_operand.hbm [shape: f32[16,128], index: 10, kind: output, shape index: {1}]  }
   0x1   :  { %17 = vsyncpa [#allocation6], 0 }
   0x2   :  { %18 = vsyncpa [#allocation9], 0 }
   0x3   :  { %19 = vsyncpa [#allocation12], 0 }
   0x4   :  { %20 = vsyncpa [#allocation15], 0 }
   0x5   :  { %21 = vsyncpa [#allocation4], 0 }
   0x6   :  { %22 = vsyncpa [#allocation19], 0  ;;  %s9952_s13 = smov [#allocation5]   ;;  %s9696_s17 = scalar_lea.hbm %s10336_s1, 36864 }
   0x7   :  { %s40_s14 = sshll.u32 %s9952_s13, 4  ;;  %p9697_p0 = scmp.ne.s32.totalorder %s10336_s1, %s9696_s17  ;;  %s41_s14 = int_to_ptr.vmem [resolvable:$true] %s40_s14 }
   0x8   :  { %p9700_p1 = scmp.lt.u32.totalorder %s9696_s17, %s10336_s1 }
   0xa   :  { %p9702_p2 = pnand %p9700_p1, %p9697_p0 }
   0xc   :  { %9705 = shalt.err (!%p9702_p2)
}
   0xd   :  { %s9706_s22 = scalar_lea.vmem %s41_s14, 36864  ;;  %p9711_p4 = scmp.lt.s32.totalorder %s41_s14, %s41_s14 }
   0xe   :  { %p9707_p3 = scmp.ne.s32.totalorder %s41_s14, %s9706_s22  ;;  %p9712_p5 = scmp.lt.s32.totalorder %s9706_s22, %s9706_s22 }
  0x10   :  { %p9713_p6 = por %p9712_p5, %p9711_p4 }
  0x12   :  { %p9714_p7 = pnand %p9713_p6, %p9707_p3 }
  0x14   :  { %9717 = shalt.err (!%p9714_p7)
}
  0x15   :  { %s9953_s23 = smov 384   ;;  %s9954_s24 = smov 24  }
  0x16   :  { %46 = dma.hbm_to_vmem [thread:$0]  %s10336_s1, 36864, %s41_s14, [#allocation6], %s9953_s23, %s9953_s23, %s9954_s24  }
  0x17   :  { %s9955_s27 = smov [#allocation8]   ;;  %s9956_s29 = smov [#allocation11]  }
  0x18   :  { %s62_s28 = sshll.u32 %s9955_s27, 4  ;;  %s84_s30 = sshll.u32 %s9956_s29, 4  ;;  %s63_s28 = int_to_ptr.vmem [resolvable:$true] %s62_s28  ;;  %s85_s30 = int_to_ptr.vmem [resolvable:$true] %s84_s30 }
  0x19   :  { %s9718_s13 = scalar_lea.hbm %s10338_s3, 36864 }
  0x1a   :  { %p9719_p8 = scmp.ne.s32.totalorder %s10338_s3, %s9718_s13  ;;  %p9722_p9 = scmp.lt.u32.totalorder %s9718_s13, %s10338_s3 }
  0x1c   :  { %p9724_p10 = pnand %p9722_p9, %p9719_p8 }
  0x1e   :  { %9727 = shalt.err (!%p9724_p10)
}
  0x1f   :  { %s9728_s1 = scalar_lea.vmem %s63_s28, 36864  ;;  %p9733_p12 = scmp.lt.s32.totalorder %s63_s28, %s63_s28 }
  0x20   :  { %p9729_p11 = scmp.ne.s32.totalorder %s63_s28, %s9728_s1  ;;  %p9734_p13 = scmp.lt.s32.totalorder %s9728_s1, %s9728_s1 }
  0x22   :  { %p9735_p0 = por %p9734_p13, %p9733_p12 }
  0x24   :  { %p9736_p1 = pnand %p9735_p0, %p9729_p11 }
  0x26   :  { %9739 = shalt.err (!%p9736_p1)
}
  0x27   :  { %68 = dma.hbm_to_vmem [thread:$0]  %s10338_s3, 36864, %s63_s28, [#allocation9], %s9953_s23, %s9953_s23, %s9954_s24  }
  0x28   :  { %s9740_s22 = scalar_lea.hbm %s10340_s5, 36864 }
  0x29   :  { %p9741_p2 = scmp.ne.s32.totalorder %s10340_s5, %s9740_s22  ;;  %p9744_p3 = scmp.lt.u32.totalorder %s9740_s22, %s10340_s5 }
  0x2b   :  { %p9746_p4 = pnand %p9744_p3, %p9741_p2 }
  0x2d   :  { %9749 = shalt.err (!%p9746_p4)
}
  0x2e   :  { %s9750_s11 = scalar_lea.vmem %s85_s30, 36864  ;;  %p9755_p6 = scmp.lt.s32.totalorder %s85_s30, %s85_s30 }
  0x2f   :  { %p9751_p5 = scmp.ne.s32.totalorder %s85_s30, %s9750_s11  ;;  %p9756_p7 = scmp.lt.s32.totalorder %s9750_s11, %s9750_s11 }
  0x31   :  { %p9757_p8 = por %p9756_p7, %p9755_p6 }
  0x33   :  { %p9758_p9 = pnand %p9757_p8, %p9751_p5 }
  0x35   :  { %9761 = shalt.err (!%p9758_p9)
}
  0x36   :  { %90 = dma.hbm_to_vmem [thread:$0]  %s10340_s5, 36864, %s85_s30, [#allocation12], %s9953_s23, %s9953_s23, %s9954_s24  }
  0x37   :  { %s9957_s12 = smov [#allocation14]   ;;  %s9762_s17 = scalar_lea.hbm %s10342_s7, 6144 }
  0x38   :  { %s106_s13 = sshll.u32 %s9957_s12, 4  ;;  %p9763_p10 = scmp.ne.s32.totalorder %s10342_s7, %s9762_s17  ;;  %s107_s13 = int_to_ptr.vmem [resolvable:$true] %s106_s13 }
  0x39   :  { %p9766_p11 = scmp.lt.u32.totalorder %s9762_s17, %s10342_s7 }
  0x3b   :  { %p9768_p12 = pnand %p9766_p11, %p9763_p10 }
  0x3d   :  { %9771 = shalt.err (!%p9768_p12)
}
  0x3e   :  { %s9772_s20 = scalar_lea.vmem %s107_s13, 6144  ;;  %p9777_p0 = scmp.lt.s32.totalorder %s107_s13, %s107_s13 }
  0x3f   :  { %p9773_p13 = scmp.ne.s32.totalorder %s107_s13, %s9772_s20  ;;  %p9778_p1 = scmp.lt.s32.totalorder %s9772_s20, %s9772_s20 }
  0x41   :  { %p9779_p2 = por %p9778_p1, %p9777_p0 }
  0x43   :  { %p9780_p3 = pnand %p9779_p2, %p9773_p13 }
  0x45   :  { %9783 = shalt.err (!%p9780_p3)
}
  0x46   :  { %s9958_s5 = smov 64   ;;  %s9959_s23 = smov 4  }
  0x47   :  { %112 = dma.hbm_to_vmem [thread:$0]  %s10342_s7, 6144, %s107_s13, [#allocation15], %s9958_s5, %s9958_s5, %s9959_s23  }
  0x48   :  { %s9960_s21 = smov [#allocation2]   ;;  %s9784_s27 = scalar_lea.hbm %s10335_s0, 1536 }
  0x49   :  { %s28_s22 = sshll.u32 %s9960_s21, 4  ;;  %p9785_p4 = scmp.ne.s32.totalorder %s10335_s0, %s9784_s27  ;;  %s29_s22 = int_to_ptr.vmem [resolvable:$true] %s28_s22 }
  0x4a   :  { %p9788_p5 = scmp.lt.u32.totalorder %s9784_s27, %s10335_s0 }
  0x4c   :  { %p9790_p6 = pnand %p9788_p5, %p9785_p4 }
  0x4e   :  { %9793 = shalt.err (!%p9790_p6)
}
  0x4f   :  { %s9794_s12 = scalar_lea.vmem %s29_s22, 1536  ;;  %p9799_p8 = scmp.lt.s32.totalorder %s29_s22, %s29_s22 }
  0x50   :  { %p9795_p7 = scmp.ne.s32.totalorder %s29_s22, %s9794_s12  ;;  %p9800_p9 = scmp.lt.s32.totalorder %s9794_s12, %s9794_s12 }
  0x52   :  { %p9801_p10 = por %p9800_p9, %p9799_p8 }
  0x54   :  { %p9802_p11 = pnand %p9801_p10, %p9795_p7 }
  0x56   :  { %9805 = shalt.err (!%p9802_p11)
}
  0x57   :  { %s9961_s7 = smov 768   ;;  %s9962_s13 = smov 48  }
  0x58   :  { %34 = dma.hbm_to_vmem [thread:$0]  %s10335_s0, 1536, %s29_s22, [#allocation3], %s9961_s7, %s9961_s7, %s9962_s13  }
  0x59   :  { %s9963_s17 = smov [#allocation7]   ;;  %s9964_s1 = smov [#allocation10]  }
  0x5a   :  { %s53_s18 = sshll.u32 %s9963_s17, 4  ;;  %s75_s14 = sshll.u32 %s9964_s1, 4  ;;  %s54_s18 = int_to_ptr.vmem [resolvable:$true] %s53_s18  ;;  %s76_s14 = int_to_ptr.vmem [resolvable:$true] %s75_s14 }
  0x5b   :  { %s9806_s5 = scalar_lea.hbm %s10337_s2, 96 }
  0x5c   :  { %p9807_p12 = scmp.ne.s32.totalorder %s10337_s2, %s9806_s5  ;;  %p9810_p13 = scmp.lt.u32.totalorder %s9806_s5, %s10337_s2 }
  0x5e   :  { %p9812_p0 = pnand %p9810_p13, %p9807_p12 }
  0x60   :  { %9815 = shalt.err (!%p9812_p0)
}
  0x61   :  { %s9816_s0 = scalar_lea.vmem %s54_s18, 96  ;;  %p9821_p2 = scmp.lt.s32.totalorder %s54_s18, %s54_s18 }
  0x62   :  { %p9817_p1 = scmp.ne.s32.totalorder %s54_s18, %s9816_s0  ;;  %p9822_p3 = scmp.lt.s32.totalorder %s9816_s0, %s9816_s0 }
  0x64   :  { %p9823_p4 = por %p9822_p3, %p9821_p2 }
  0x66   :  { %p9824_p5 = pnand %p9823_p4, %p9817_p1 }
  0x68   :  { %9827 = shalt.err (!%p9824_p5)
}
  0x69   :  { %56 = dma.hbm_to_vmem [thread:$0]  %s10337_s2, 96, %s54_s18, [#allocation6]  }
  0x6a   :  { %s9828_s29 = scalar_lea.hbm %s10339_s4, 96 }
  0x6b   :  { %p9829_p6 = scmp.ne.s32.totalorder %s10339_s4, %s9828_s29  ;;  %p9832_p7 = scmp.lt.u32.totalorder %s9828_s29, %s10339_s4 }
  0x6d   :  { %p9834_p8 = pnand %p9832_p7, %p9829_p6 }
  0x6f   :  { %9837 = shalt.err (!%p9834_p8)
}
  0x70   :  { %s9838_s7 = scalar_lea.vmem %s76_s14, 96  ;;  %p9843_p10 = scmp.lt.s32.totalorder %s76_s14, %s76_s14 }
  0x71   :  { %p9839_p9 = scmp.ne.s32.totalorder %s76_s14, %s9838_s7  ;;  %p9844_p11 = scmp.lt.s32.totalorder %s9838_s7, %s9838_s7 }
  0x73   :  { %p9845_p12 = por %p9844_p11, %p9843_p10 }
  0x75   :  { %p9846_p13 = pnand %p9845_p12, %p9839_p9 }
  0x77   :  { %9849 = shalt.err (!%p9846_p13)
}
  0x78   :  { %78 = dma.hbm_to_vmem [thread:$0]  %s10339_s4, 96, %s76_s14, [#allocation9]  }
  0x79   :  { %s9965_s15 = smov [#allocation13]   ;;  %s9966_s17 = smov [#allocation16]  }
  0x7a   :  { %s97_s16 = sshll.u32 %s9965_s15, 4  ;;  %s119_s18 = sshll.u32 %s9966_s17, 4  ;;  %s98_s16 = int_to_ptr.vmem [resolvable:$true] %s97_s16  ;;  %s120_s18 = int_to_ptr.vmem [resolvable:$true] %s119_s18 }
  0x7b   :  { %s9850_s20 = scalar_lea.hbm %s10341_s6, 96 }
  0x7c   :  { %p9851_p0 = scmp.ne.s32.totalorder %s10341_s6, %s9850_s20  ;;  %p9854_p1 = scmp.lt.u32.totalorder %s9850_s20, %s10341_s6 }
  0x7e   :  { %p9856_p2 = pnand %p9854_p1, %p9851_p0 }
  0x80   :  { %9859 = shalt.err (!%p9856_p2)
}
  0x81   :  { %s9860_s4 = scalar_lea.vmem %s98_s16, 96  ;;  %p9865_p4 = scmp.lt.s32.totalorder %s98_s16, %s98_s16 }
  0x82   :  { %p9861_p3 = scmp.ne.s32.totalorder %s98_s16, %s9860_s4  ;;  %p9866_p5 = scmp.lt.s32.totalorder %s9860_s4, %s9860_s4 }
  0x84   :  { %p9867_p6 = por %p9866_p5, %p9865_p4 }
  0x86   :  { %p9868_p7 = pnand %p9867_p6, %p9861_p3 }
  0x88   :  { %9871 = shalt.err (!%p9868_p7)
}
  0x89   :  { %100 = dma.hbm_to_vmem [thread:$0]  %s10341_s6, 96, %s98_s16, [#allocation12]  }
  0x8a   :  { %s9872_s25 = scalar_lea.hbm %s10343_s8, 16 }
  0x8b   :  { %p9873_p8 = scmp.ne.s32.totalorder %s10343_s8, %s9872_s25  ;;  %p9876_p9 = scmp.lt.u32.totalorder %s9872_s25, %s10343_s8 }
  0x8d   :  { %p9878_p10 = pnand %p9876_p9, %p9873_p8 }
  0x8f   :  { %9881 = shalt.err (!%p9878_p10)
}
  0x90   :  { %s9882_s3 = scalar_lea.vmem %s120_s18, 16  ;;  %s9886_s28 = scalar_lea.vmem %s120_s18, 32 }
  0x91   :  { %p9883_p11 = scmp.ne.s32.totalorder %s120_s18, %s9882_s3  ;;  %p9887_p12 = scmp.lt.s32.totalorder %s120_s18, %s120_s18 }
  0x92   :  { %p9888_p13 = scmp.lt.s32.totalorder %s9886_s28, %s9882_s3 }
  0x94   :  { %p9889_p0 = por %p9888_p13, %p9887_p12 }
  0x96   :  { %p9890_p1 = pnand %p9889_p0, %p9883_p11 }
  0x98   :  { %9893 = shalt.err (!%p9890_p1)
}
  0x99   :  { %122 = dma.hbm_to_vmem [thread:$0]  %s10343_s8, 16, %s120_s18, [#allocation15]  }
  0x9a   :  { %9938 = dma.done.wait [#allocation3], 1536  }
  0x9b   :  { %9939 = vsyncadd [#allocation3], 4294965760 }
  0x9c   :  { %9940 = dma.done.wait [#allocation6], 36960  }
  0x9d   :  { %9941 = vsyncadd [#allocation6], 4294930336 }
  0x9e   :  { %9942 = dma.done.wait [#allocation9], 36960  }
  0x9f   :  { %9943 = vsyncadd [#allocation9], 4294930336 }
  0xa0   :  { %9944 = dma.done.wait [#allocation12], 36960  }
  0xa1   :  { %9945 = vsyncadd [#allocation12], 4294930336 }
  0xa2   :  { %9946 = dma.done.wait [#allocation15], 6160  }
  0xa3   :  { %9947 = vsyncadd [#allocation15], 4294961136  ;;  %v8343_v0 = vld [vmem:[#allocation5 + $0x4] ss:$24 sps:$4 sm:$0xff]   ;;  %v8347_v2 = vld [vmem:[#allocation5] ss:$24 sps:$4 sm:$0xff]  }
  0xa4   :  { %v8345_v1 = vld [vmem:[#allocation5 + $0x304] ss:$24 sps:$4 sm:$0xff]   ;;  %1929 = vmatprep.subr.bf16.mxu1 %v8343_v0  ;;  %v8348_v3 = vld [vmem:[#allocation5 + $0x300] ss:$24 sps:$4 sm:$0xff]   ;;  %v8349_v4 = vld [vmem:[#allocation5 + $0x34] ss:$24 sps:$4 sm:$0xff]  }
  0xa5   :  { %1972 = vmatprep.subr.bf16.mxu0 %v8345_v1  ;;  %1930 = vmatpush1.bf16.msra.mxu1 %v8347_v2  ;;  %v8351_v5 = vld [vmem:[#allocation5 + $0x334] ss:$24 sps:$4 sm:$0xff]   ;;  %v8353_v6 = vld [vmem:[#allocation5 + $0x30] ss:$24 sps:$4 sm:$0xff]   ;;  %v8355_v8 = vld [vmem:[#allocation5 + $0x64] ss:$24 sps:$4 sm:$0xff]  }
  0xa6   :  { %1973 = vmatpush1.bf16.msra.mxu0 %v8348_v3  ;;  %1931 = vmatprep.subr.bf16.mxu1 %v8349_v4  ;;  %v8354_v7 = vld [vmem:[#allocation5 + $0x330] ss:$24 sps:$4 sm:$0xff]   ;;  %v8357_v9 = vld [vmem:[#allocation5 + $0x364] ss:$24 sps:$4 sm:$0xff]   ;;  %v8359_v10 = vld [vmem:[#allocation5 + $0x60] ss:$24 sps:$4 sm:$0xff]  }
  0xa7   :  { %1974 = vmatprep.subr.bf16.mxu0 %v8351_v5  ;;  %v8360_v11 = vld [vmem:[#allocation5 + $0x360] ss:$24 sps:$4 sm:$0xff]   ;;  %v8361_v12 = vld [vmem:[#allocation5 + $0x94] ss:$24 sps:$4 sm:$0xff]   ;;  %v8365_v14 = vld [vmem:[#allocation5 + $0x90] ss:$24 sps:$4 sm:$0xff]  }
  0xa8   :  { %v8363_v13 = vld [vmem:[#allocation5 + $0x394] ss:$24 sps:$4 sm:$0xff]   ;;  %v8366_v15 = vld [vmem:[#allocation5 + $0x390] ss:$24 sps:$4 sm:$0xff]   ;;  %v8367_v16 = vld [vmem:[#allocation5 + $0xc4] ss:$24 sps:$4 sm:$0xff]  }
  0xa9   :  { %1932 = vmatpush1.bf16.msra.mxu1 %v8353_v6  ;;  %v8369_v17 = vld [vmem:[#allocation5 + $0x3c4] ss:$24 sps:$4 sm:$0xff]   ;;  %v8371_v18 = vld [vmem:[#allocation5 + $0xc0] ss:$24 sps:$4 sm:$0xff]   ;;  %v8373_v20 = vld [vmem:[#allocation5 + $0xf4] ss:$24 sps:$4 sm:$0xff]  }
  0xaa   :  { %1975 = vmatpush1.bf16.msra.mxu0 %v8354_v7  ;;  %1933 = vmatprep.subr.bf16.mxu1 %v8355_v8  ;;  %v8372_v19 = vld [vmem:[#allocation5 + $0x3c0] ss:$24 sps:$4 sm:$0xff]   ;;  %v8375_v21 = vld [vmem:[#allocation5 + $0x3f4] ss:$24 sps:$4 sm:$0xff]   ;;  %v8377_v22 = vld [vmem:[#allocation5 + $0xf0] ss:$24 sps:$4 sm:$0xff]  }
  0xab   :  { %1976 = vmatprep.subr.bf16.mxu0 %v8357_v9  ;;  %v8378_v23 = vld [vmem:[#allocation5 + $0x3f0] ss:$24 sps:$4 sm:$0xff]   ;;  %v8379_v24 = vld [vmem:[#allocation5 + $0x124] ss:$24 sps:$4 sm:$0xff]   ;;  %v8383_v26 = vld [vmem:[#allocation5 + $0x120] ss:$24 sps:$4 sm:$0xff]  }
  0xac   :  { %v8381_v25 = vld [vmem:[#allocation5 + $0x424] ss:$24 sps:$4 sm:$0xff]   ;;  %v8384_v27 = vld [vmem:[#allocation5 + $0x420] ss:$24 sps:$4 sm:$0xff]   ;;  %v8385_v28 = vld [vmem:[#allocation5 + $0x154] ss:$24 sps:$4 sm:$0xff]  }
  0xad   :  { %1934 = vmatpush1.bf16.msra.mxu1 %v8359_v10  ;;  %v8387_v29 = vld [vmem:[#allocation5 + $0x454] ss:$24 sps:$4 sm:$0xff]   ;;  %v8389_v30 = vld [vmem:[#allocation5 + $0x150] ss:$24 sps:$4 sm:$0xff]   ;;  %v8391_v32 = vld [vmem:[#allocation5 + $0x184] ss:$24 sps:$4 sm:$0xff]  }
  0xae   :  { %1977 = vmatpush1.bf16.msra.mxu0 %v8360_v11  ;;  %1935 = vmatprep.subr.bf16.mxu1 %v8361_v12  ;;  %v8390_v31 = vld [vmem:[#allocation5 + $0x450] ss:$24 sps:$4 sm:$0xff]   ;;  %v8393_v33 = vld [vmem:[#allocation5 + $0x484] ss:$24 sps:$4 sm:$0xff]   ;;  %v8395_v34 = vld [vmem:[#allocation5 + $0x180] ss:$24 sps:$4 sm:$0xff]  }
  0xaf   :  { %1978 = vmatprep.subr.bf16.mxu0 %v8363_v13  ;;  %v8396_v35 = vld [vmem:[#allocation5 + $0x480] ss:$24 sps:$4 sm:$0xff]   ;;  %v8397_v36 = vld [vmem:[#allocation5 + $0x1b4] ss:$24 sps:$4 sm:$0xff]   ;;  %v8401_v38 = vld [vmem:[#allocation5 + $0x1b0] ss:$24 sps:$4 sm:$0xff]  }
  0xb0   :  { %v8399_v37 = vld [vmem:[#allocation5 + $0x4b4] ss:$24 sps:$4 sm:$0xff]   ;;  %v8402_v39 = vld [vmem:[#allocation5 + $0x4b0] ss:$24 sps:$4 sm:$0xff]   ;;  %v8403_v40 = vld [vmem:[#allocation5 + $0x1e4] ss:$24 sps:$4 sm:$0xff]  }
  0xb1   :  { %1936 = vmatpush1.bf16.msra.mxu1 %v8365_v14  ;;  %v8405_v41 = vld [vmem:[#allocation5 + $0x4e4] ss:$24 sps:$4 sm:$0xff]   ;;  %v8407_v42 = vld [vmem:[#allocation5 + $0x1e0] ss:$24 sps:$4 sm:$0xff]   ;;  %v8409_v44 = vld [vmem:[#allocation5 + $0x214] ss:$24 sps:$4 sm:$0xff]  }
  0xb2   :  { %1979 = vmatpush1.bf16.msra.mxu0 %v8366_v15  ;;  %1937 = vmatprep.subr.bf16.mxu1 %v8367_v16  ;;  %v8408_v43 = vld [vmem:[#allocation5 + $0x4e0] ss:$24 sps:$4 sm:$0xff]   ;;  %v8411_v45 = vld [vmem:[#allocation5 + $0x514] ss:$24 sps:$4 sm:$0xff]   ;;  %v8413_v47 = vld [vmem:[#allocation5 + $0x210] ss:$24 sps:$4 sm:$0xff]  }
  0xb3   :  { %1980 = vmatprep.subr.bf16.mxu0 %v8369_v17  ;;  %v152_v46 = vld [vmem:[#allocation2 + $0x8] sm:$0xff]  ;;  %v158_v49 = vld [vmem:[#allocation2 + $0x38] sm:$0xff]  ;;  %v151_v6 = vld [vmem:[#allocation2] sm:$0xff]  ;;  %s9967_s8 = smov [#allocation17]  }
  0xb4   :  { %v8414_v48 = vld [vmem:[#allocation5 + $0x510] ss:$24 sps:$4 sm:$0xff]   ;;  %v10143_v50 = vpack.c.bf16 %v158_v49, %v152_v46  ;;  %v154_v51 = vld [vmem:[#allocation2 + $0x18] sm:$0xff]  ;;  %v8421_v58 = vld [vmem:[#allocation5 + $0x274] ss:$24 sps:$4 sm:$0xff]   ;;  %s7205_s7 = sshll.u32 %s9967_s8, 4  ;;  %s7206_s7 = int_to_ptr.vmem [resolvable:$true] %s7205_s7 }
  0xb5   :  { %1938 = vmatpush1.bf16.msra.mxu1 %v8371_v18  ;;  %v160_v52 = vld [vmem:[#allocation2 + $0x48] sm:$0xff]  ;;  %v8415_v53 = vld [vmem:[#allocation5 + $0x244] ss:$24 sps:$4 sm:$0xff]   ;;  %v8419_v56 = vld [vmem:[#allocation5 + $0x240] ss:$24 sps:$4 sm:$0xff]   ;;  %s9894_s2 = scalar_lea.vmem %s7206_s7, 256  ;;  %p9899_p3 = scmp.lt.s32.totalorder %s7206_s7, %s7206_s7 }
  0xb6   :  { %1981 = vmatpush1.bf16.msra.mxu0 %v8372_v19  ;;  %1939 = vmatprep.subr.bf16.mxu1 %v8373_v20  ;;  %v8417_v54 = vld [vmem:[#allocation5 + $0x544] ss:$24 sps:$4 sm:$0xff]   ;;  %v10145_v55 = vpack.c.bf16 %v160_v52, %v154_v51  ;;  %v8420_v57 = vld [vmem:[#allocation5 + $0x540] ss:$24 sps:$4 sm:$0xff]   ;;  %v8423_v59 = vld [vmem:[#allocation5 + $0x574] ss:$24 sps:$4 sm:$0xff]   ;;  %p9895_p2 = scmp.ne.s32.totalorder %s7206_s7, %s9894_s2  ;;  %p9900_p4 = scmp.lt.s32.totalorder %s9894_s2, %s9894_s2 }
  0xb7   :  { %1982 = vmatprep.subr.bf16.mxu0 %v8375_v21  ;;  %1961 = vmatprep.mubr.bf16.mxu1 %v10143_v50  ;;  %v8425_v60 = vld [vmem:[#allocation5 + $0x270] ss:$24 sps:$4 sm:$0xff]   ;;  %v8427_v62 = vld [vmem:[#allocation5 + $0x2a4] ss:$24 sps:$4 sm:$0xff]   ;;  %v8431_v0 = vld [vmem:[#allocation5 + $0x2a0] ss:$24 sps:$4 sm:$0xff]  }
  0xb8   :  { %2004 = vmatprep.mubr.bf16.mxu0 %v10145_v55  ;;  %v8426_v61 = vld [vmem:[#allocation5 + $0x570] ss:$24 sps:$4 sm:$0xff]   ;;  %v8429_v63 = vld [vmem:[#allocation5 + $0x5a4] ss:$24 sps:$4 sm:$0xff]   ;;  %v8432_v1 = vld [vmem:[#allocation5 + $0x5a0] ss:$24 sps:$4 sm:$0xff]   ;;  %p9901_p5 = por %p9900_p4, %p9899_p3 }
  0xb9   :  { %1940 = vmatpush1.bf16.msra.mxu1 %v8377_v22  ;;  %v8433_v2 = vld [vmem:[#allocation5 + $0x2d4] ss:$24 sps:$4 sm:$0xff]   ;;  %v8437_v4 = vld [vmem:[#allocation5 + $0x2d0] ss:$24 sps:$4 sm:$0xff]   ;;  %v8441_v8 = vld [vmem:[#allocation5 + $0x604] ss:$24 sps:$4 sm:$0xff]  }
  0xba   :  { %1983 = vmatpush1.bf16.msra.mxu0 %v8378_v23  ;;  %1941 = vmatprep.subr.bf16.mxu1 %v8379_v24  ;;  %v8435_v3 = vld [vmem:[#allocation5 + $0x5d4] ss:$24 sps:$4 sm:$0xff]   ;;  %v8438_v5 = vld [vmem:[#allocation5 + $0x5d0] ss:$24 sps:$4 sm:$0xff]   ;;  %v159_v10 = vld [vmem:[#allocation2 + $0x40] sm:$0xff]  ;;  %p9902_p6 = pnand %p9901_p5, %p9895_p2 }
  0xbb   :  { %1984 = vmatprep.subr.bf16.mxu0 %v8381_v25  ;;  %v157_v7 = vld [vmem:[#allocation2 + $0x30] sm:$0xff]  ;;  %v8444_v11 = vld [vmem:[#allocation5 + $0xc] ss:$24 sps:$4 sm:$0xff]   ;;  %v8439_v13 = vld [vmem:[#allocation5 + $0x600] ss:$24 sps:$4 sm:$0xff]  }
  0xbc   :  { %v153_v9 = vld [vmem:[#allocation2 + $0x10] sm:$0xff]  ;;  %v10149_v12 = vpack.c.bf16 %v157_v7, %v151_v6  ;;  %v8442_v14 = vld [vmem:[#allocation5 + $0x8] ss:$24 sps:$4 sm:$0xff]   ;;  %v8453_v20 = vld [vmem:[#allocation5 + $0x664] ss:$24 sps:$4 sm:$0xff]  }
  0xbd   :  { %1942 = vmatpush1.bf16.msra.mxu1 %v8383_v26  ;;  %v10151_v15 = vpack.c.bf16 %v159_v10, %v153_v9  ;;  %v8447_v16 = vld [vmem:[#allocation5 + $0x634] ss:$24 sps:$4 sm:$0xff]   ;;  %v8445_v18 = vld [vmem:[#allocation5 + $0x630] ss:$24 sps:$4 sm:$0xff]   ;;  %v8451_v22 = vld [vmem:[#allocation5 + $0x660] ss:$24 sps:$4 sm:$0xff]  }
  0xbe   :  { %1985 = vmatpush1.bf16.msra.mxu0 %v8384_v27  ;;  %1943 = vmatprep.subr.bf16.mxu1 %v8385_v28  ;;  %v8450_v17 = vld [vmem:[#allocation5 + $0x3c] ss:$24 sps:$4 sm:$0xff]   ;;  %v8448_v19 = vld [vmem:[#allocation5 + $0x38] ss:$24 sps:$4 sm:$0xff]   ;;  %v8456_v21 = vld [vmem:[#allocation5 + $0x6c] ss:$24 sps:$4 sm:$0xff]  }
  0xbf   :  { %1986 = vmatprep.subr.bf16.mxu0 %v8387_v29  ;;  %v8454_v23 = vld [vmem:[#allocation5 + $0x68] ss:$24 sps:$4 sm:$0xff]   ;;  %v8459_v24 = vld [vmem:[#allocation5 + $0x694] ss:$24 sps:$4 sm:$0xff]   ;;  %v8460_v27 = vld [vmem:[#allocation5 + $0x98] ss:$24 sps:$4 sm:$0xff]  }
  0xc0   :  { %v8462_v25 = vld [vmem:[#allocation5 + $0x9c] ss:$24 sps:$4 sm:$0xff]   ;;  %v8457_v26 = vld [vmem:[#allocation5 + $0x690] ss:$24 sps:$4 sm:$0xff]   ;;  %v8468_v29 = vld [vmem:[#allocation5 + $0xcc] ss:$24 sps:$4 sm:$0xff]  }
  0xc1   :  { %1944 = vmatpush1.bf16.msra.mxu1 %v8389_v30  ;;  %v8465_v28 = vld [vmem:[#allocation5 + $0x6c4] ss:$24 sps:$4 sm:$0xff]   ;;  %v8463_v30 = vld [vmem:[#allocation5 + $0x6c0] ss:$24 sps:$4 sm:$0xff]   ;;  %v8495_v52 = vld [vmem:[#allocation5 + $0x7b4] ss:$24 sps:$4 sm:$0xff]  }
  0xc2   :  { %1987 = vmatpush1.bf16.msra.mxu0 %v8390_v31  ;;  %1945 = vmatprep.subr.bf16.mxu1 %v8391_v32  ;;  %v8466_v31 = vld [vmem:[#allocation5 + $0xc8] ss:$24 sps:$4 sm:$0xff]   ;;  %v8471_v32 = vld [vmem:[#allocation5 + $0x6f4] ss:$24 sps:$4 sm:$0xff]   ;;  %v8484_v46 = vld [vmem:[#allocation5 + $0x158] ss:$24 sps:$4 sm:$0xff]  }
  0xc3   :  { %1988 = vmatprep.subr.bf16.mxu0 %v8393_v33  ;;  %v8474_v33 = vld [vmem:[#allocation5 + $0xfc] ss:$24 sps:$4 sm:$0xff]   ;;  %v8487_v49 = vld [vmem:[#allocation5 + $0x780] ss:$24 sps:$4 sm:$0xff]   ;;  %v8517_v7 = vld [vmem:[#allocation5 + $0x870] ss:$24 sps:$4 sm:$0xff]  }
  0xc4   :  { %v8490_v51 = vld [vmem:[#allocation5 + $0x188] ss:$24 sps:$4 sm:$0xff]   ;;  %v8522_v6 = vld [vmem:[#allocation5 + $0x27c] ss:$24 sps:$4 sm:$0xff]   ;;  %v8528_v10 = vld [vmem:[#allocation5 + $0x2ac] ss:$24 sps:$4 sm:$0xff]  }
  0xc5   :  { %1946 = vmatpush1.bf16.msra.mxu1 %v8395_v34  ;;  %v8469_v34 = vld [vmem:[#allocation5 + $0x6f0] ss:$24 sps:$4 sm:$0xff]   ;;  %v8525_v9 = vld [vmem:[#allocation5 + $0x8a4] ss:$24 sps:$4 sm:$0xff]  }
  0xc6   :  { %1989 = vmatpush1.bf16.msra.mxu0 %v8396_v35  ;;  %1947 = vmatprep.subr.bf16.mxu1 %v8397_v36  ;;  %v8472_v35 = vld [vmem:[#allocation5 + $0xf8] ss:$24 sps:$4 sm:$0xff]   ;;  %v8477_v36 = vld [vmem:[#allocation5 + $0x724] ss:$24 sps:$4 sm:$0xff]  }
  0xc7   :  { %1990 = vmatprep.subr.bf16.mxu0 %v8399_v37  ;;  %v8480_v37 = vld [vmem:[#allocation5 + $0x12c] ss:$24 sps:$4 sm:$0xff]  }
  0xc9   :  { %1948 = vmatpush1.bf16.msra.mxu1 %v8401_v38  ;;  %v8475_v38 = vld [vmem:[#allocation5 + $0x720] ss:$24 sps:$4 sm:$0xff]  }
  0xca   :  { %1991 = vmatpush1.bf16.msra.mxu0 %v8402_v39  ;;  %1949 = vmatprep.subr.bf16.mxu1 %v8403_v40  ;;  %v8478_v39 = vld [vmem:[#allocation5 + $0x128] ss:$24 sps:$4 sm:$0xff]   ;;  %v8483_v40 = vld [vmem:[#allocation5 + $0x754] ss:$24 sps:$4 sm:$0xff]  }
  0xcb   :  { %1992 = vmatprep.subr.bf16.mxu0 %v8405_v41  ;;  %v156_v41 = vld [vmem:[#allocation2 + $0x28] sm:$0xff] }
  0xcd   :  { %1950 = vmatpush1.bf16.msra.mxu1 %v8407_v42  ;;  %v162_v42 = vld [vmem:[#allocation2 + $0x58] sm:$0xff] }
  0xce   :  { %1993 = vmatpush1.bf16.msra.mxu0 %v8408_v43  ;;  %1951 = vmatprep.subr.bf16.mxu1 %v8409_v44  ;;  %v8486_v43 = vld [vmem:[#allocation5 + $0x15c] ss:$24 sps:$4 sm:$0xff]   ;;  %v10156_v44 = vpack.c.bf16 %v162_v42, %v156_v41  ;;  %v8562_v41 = vld [vmem:[#allocation5 + $0xd0] ss:$24 sps:$4 sm:$0xff]  }
  0xcf   :  { %1994 = vmatprep.subr.bf16.mxu0 %v8411_v45  ;;  %v8481_v45 = vld [vmem:[#allocation5 + $0x750] ss:$24 sps:$4 sm:$0xff]   ;;  %v8570_v42 = vld [vmem:[#allocation5 + $0x104] ss:$24 sps:$4 sm:$0xff]  }
  0xd1   :  { %1952 = vmatpush1.bf16.msra.mxu1 %v8413_v47  ;;  %v8489_v47 = vld [vmem:[#allocation5 + $0x784] ss:$24 sps:$4 sm:$0xff]  }
  0xd2   :  { %1995 = vmatpush1.bf16.msra.mxu0 %v8414_v48  ;;  %1953 = vmatprep.subr.bf16.mxu1 %v8415_v53  ;;  %v8492_v48 = vld [vmem:[#allocation5 + $0x18c] ss:$24 sps:$4 sm:$0xff]   ;;  %v8498_v53 = vld [vmem:[#allocation5 + $0x1bc] ss:$24 sps:$4 sm:$0xff]  }
  0xd3   :  { %1996 = vmatprep.subr.bf16.mxu0 %v8417_v54  ;;  %v8493_v54 = vld [vmem:[#allocation5 + $0x7b0] ss:$24 sps:$4 sm:$0xff]  }
  0xd5   :  { %1954 = vmatpush1.bf16.msra.mxu1 %v8419_v56  ;;  %v8496_v56 = vld [vmem:[#allocation5 + $0x1b8] ss:$24 sps:$4 sm:$0xff]  }
  0xd6   :  { %1997 = vmatpush1.bf16.msra.mxu0 %v8420_v57  ;;  %1955 = vmatprep.subr.bf16.mxu1 %v8421_v58  ;;  %v8501_v57 = vld [vmem:[#allocation5 + $0x7e4] ss:$24 sps:$4 sm:$0xff]  }
  0xd7   :  { %1998 = vmatprep.subr.bf16.mxu0 %v8423_v59  ;;  %v8504_v58 = vld [vmem:[#allocation5 + $0x1ec] ss:$24 sps:$4 sm:$0xff]   ;;  %v8499_v59 = vld [vmem:[#allocation5 + $0x7e0] ss:$24 sps:$4 sm:$0xff]  }
  0xd9   :  { %1956 = vmatpush1.bf16.msra.mxu1 %v8425_v60  ;;  %v8502_v60 = vld [vmem:[#allocation5 + $0x1e8] ss:$24 sps:$4 sm:$0xff]  }
  0xda   :  { %1999 = vmatpush1.bf16.msra.mxu0 %v8426_v61  ;;  %1957 = vmatprep.subr.bf16.mxu1 %v8427_v62  ;;  %v8507_v61 = vld [vmem:[#allocation5 + $0x814] ss:$24 sps:$4 sm:$0xff]  }
  0xdb   :  { %2000 = vmatprep.subr.bf16.mxu0 %v8429_v63  ;;  %v8510_v62 = vld [vmem:[#allocation5 + $0x21c] ss:$24 sps:$4 sm:$0xff]   ;;  %v8505_v63 = vld [vmem:[#allocation5 + $0x810] ss:$24 sps:$4 sm:$0xff]  }
  0xdd   :  { %1958 = vmatpush1.bf16.msra.mxu1 %v8431_v0  ;;  %v8508_v0 = vld [vmem:[#allocation5 + $0x218] ss:$24 sps:$4 sm:$0xff]  }
  0xde   :  { %2001 = vmatpush1.bf16.msra.mxu0 %v8432_v1  ;;  %1959 = vmatprep.subr.bf16.mxu1 %v8433_v2  ;;  %v8513_v1 = vld [vmem:[#allocation5 + $0x844] ss:$24 sps:$4 sm:$0xff]  }
  0xdf   :  { %2002 = vmatprep.subr.bf16.mxu0 %v8435_v3  ;;  %v8516_v2 = vld [vmem:[#allocation5 + $0x24c] ss:$24 sps:$4 sm:$0xff]   ;;  %v8511_v3 = vld [vmem:[#allocation5 + $0x840] ss:$24 sps:$4 sm:$0xff]  }
  0xe1   :  { %1960 = vmatpush1.bf16.msra.mxu1 %v8437_v4  ;;  %v8514_v4 = vld [vmem:[#allocation5 + $0x248] ss:$24 sps:$4 sm:$0xff]  }
  0xe2   :  { %2003 = vmatpush1.bf16.msra.mxu0 %v8438_v5  ;;  %2058 = vmatprep.subr.bf16.mxu1 %v8444_v11  ;;  %v8519_v5 = vld [vmem:[#allocation5 + $0x874] ss:$24 sps:$4 sm:$0xff]   ;;  %v8523_v11 = vld [vmem:[#allocation5 + $0x8a0] ss:$24 sps:$4 sm:$0xff]  }
  0xe3   :  { %2015 = vmatprep.subr.bf16.mxu0 %v8441_v8  ;;  %v8520_v8 = vld [vmem:[#allocation5 + $0x278] ss:$24 sps:$4 sm:$0xff]  }
  0xe4   :  { %1962 = vmatmul.mubr.bf16.vlgmr.msra.gmra.mrb[0].mxu1 %v10149_v12 }
  0xe5   :  { %2005 = vmatmul.mubr.bf16.vlgmr.msra.gmra.mrb[0].mxu0 %v10151_v15  ;;  %2059 = vmatpush1.bf16.msra.mxu1 %v8442_v14  ;;  %v8531_v14 = vld [vmem:[#allocation5 + $0x8d4] ss:$24 sps:$4 sm:$0xff]  }
  0xe6   :  { %2016 = vmatpush1.bf16.msra.mxu0 %v8439_v13  ;;  %2060 = vmatprep.subr.bf16.mxu1 %v8450_v17  ;;  %v8526_v13 = vld [vmem:[#allocation5 + $0x2a8] ss:$24 sps:$4 sm:$0xff]  }
  0xe7   :  { %2017 = vmatprep.subr.bf16.mxu0 %v8447_v16  ;;  %2090 = vmatprep.mubr.bf16.mxu1 %v10143_v50  ;;  %v8534_v16 = vld [vmem:[#allocation5 + $0x2dc] ss:$24 sps:$4 sm:$0xff]   ;;  %v8529_v17 = vld [vmem:[#allocation5 + $0x8d0] ss:$24 sps:$4 sm:$0xff]  }
  0xe8   :  { %2047 = vmatprep.mubr.bf16.mxu0 %v10156_v44 }
  0xe9   :  { %2061 = vmatpush1.bf16.msra.mxu1 %v8448_v19  ;;  %v155_v19 = vld [vmem:[#allocation2 + $0x20] sm:$0xff] }
  0xea   :  { %2018 = vmatpush1.bf16.msra.mxu0 %v8445_v18  ;;  %2062 = vmatprep.subr.bf16.mxu1 %v8456_v21  ;;  %v8532_v18 = vld [vmem:[#allocation5 + $0x2d8] ss:$24 sps:$4 sm:$0xff]   ;;  %v8537_v21 = vld [vmem:[#allocation5 + $0x30c] ss:$24 sps:$4 sm:$0xff]  }
  0xeb   :  { %2019 = vmatprep.subr.bf16.mxu0 %v8453_v20  ;;  %v161_v20 = vld [vmem:[#allocation2 + $0x50] sm:$0xff] }
  0xed   :  { %2063 = vmatpush1.bf16.msra.mxu1 %v8454_v23  ;;  %v10159_v23 = vpack.c.bf16 %v161_v20, %v155_v19  ;;  %v8624_v19 = vld [vmem:[#allocation5 + $0x2b4] ss:$24 sps:$4 sm:$0xff]   ;;  %v8619_v20 = vld [vmem:[#allocation5 + $0x5a8] ss:$24 sps:$4 sm:$0xff]  }
  0xee   :  { %2020 = vmatpush1.bf16.msra.mxu0 %v8451_v22  ;;  %2064 = vmatprep.subr.bf16.mxu1 %v8462_v25  ;;  %v8540_v22 = vld [vmem:[#allocation5 + $0x14] ss:$24 sps:$4 sm:$0xff]   ;;  %v8538_v25 = vld [vmem:[#allocation5 + $0x10] ss:$24 sps:$4 sm:$0xff]  }
  0xef   :  { %2021 = vmatprep.subr.bf16.mxu0 %v8459_v24  ;;  %v8535_v24 = vld [vmem:[#allocation5 + $0x308] ss:$24 sps:$4 sm:$0xff]  }
  0xf1   :  { %2065 = vmatpush1.bf16.msra.mxu1 %v8460_v27  ;;  %v8546_v27 = vld [vmem:[#allocation5 + $0x44] ss:$24 sps:$4 sm:$0xff]  }
  0xf2   :  { %2022 = vmatpush1.bf16.msra.mxu0 %v8457_v26  ;;  %2066 = vmatprep.subr.bf16.mxu1 %v8468_v29  ;;  %v8543_v26 = vld [vmem:[#allocation5 + $0x33c] ss:$24 sps:$4 sm:$0xff]   ;;  %v8544_v29 = vld [vmem:[#allocation5 + $0x40] ss:$24 sps:$4 sm:$0xff]  }
  0xf3   :  { %2023 = vmatprep.subr.bf16.mxu0 %v8465_v28  ;;  %v8541_v28 = vld [vmem:[#allocation5 + $0x338] ss:$24 sps:$4 sm:$0xff]  }
  0xf5   :  { %2067 = vmatpush1.bf16.msra.mxu1 %v8466_v31  ;;  %v8552_v31 = vld [vmem:[#allocation5 + $0x74] ss:$24 sps:$4 sm:$0xff]  }
  0xf6   :  { %2024 = vmatpush1.bf16.msra.mxu0 %v8463_v30  ;;  %2068 = vmatprep.subr.bf16.mxu1 %v8474_v33  ;;  %v8549_v30 = vld [vmem:[#allocation5 + $0x36c] ss:$24 sps:$4 sm:$0xff]   ;;  %v8550_v33 = vld [vmem:[#allocation5 + $0x70] ss:$24 sps:$4 sm:$0xff]  }
  0xf7   :  { %2025 = vmatprep.subr.bf16.mxu0 %v8471_v32  ;;  %v8547_v32 = vld [vmem:[#allocation5 + $0x368] ss:$24 sps:$4 sm:$0xff]  }
  0xf9   :  { %2069 = vmatpush1.bf16.msra.mxu1 %v8472_v35  ;;  %v8558_v35 = vld [vmem:[#allocation5 + $0xa4] ss:$24 sps:$4 sm:$0xff]  }
  0xfa   :  { %2026 = vmatpush1.bf16.msra.mxu0 %v8469_v34  ;;  %2070 = vmatprep.subr.bf16.mxu1 %v8480_v37  ;;  %v8555_v34 = vld [vmem:[#allocation5 + $0x39c] ss:$24 sps:$4 sm:$0xff]   ;;  %v8556_v37 = vld [vmem:[#allocation5 + $0xa0] ss:$24 sps:$4 sm:$0xff]  }
  0xfb   :  { %2027 = vmatprep.subr.bf16.mxu0 %v8477_v36  ;;  %v8553_v36 = vld [vmem:[#allocation5 + $0x398] ss:$24 sps:$4 sm:$0xff]  }
  0xfd   :  { %2071 = vmatpush1.bf16.msra.mxu1 %v8478_v39  ;;  %v8564_v39 = vld [vmem:[#allocation5 + $0xd4] ss:$24 sps:$4 sm:$0xff]  }
  0xfe   :  { %2028 = vmatpush1.bf16.msra.mxu0 %v8475_v38  ;;  %2072 = vmatprep.subr.bf16.mxu1 %v8486_v43  ;;  %v8561_v38 = vld [vmem:[#allocation5 + $0x3cc] ss:$24 sps:$4 sm:$0xff]   ;;  %v8565_v43 = vld [vmem:[#allocation5 + $0x3f8] ss:$24 sps:$4 sm:$0xff]  }
  0xff   :  { %2029 = vmatprep.subr.bf16.mxu0 %v8483_v40  ;;  %v8559_v40 = vld [vmem:[#allocation5 + $0x3c8] ss:$24 sps:$4 sm:$0xff]  }
 0x101   :  { %2073 = vmatpush1.bf16.msra.mxu1 %v8484_v46  ;;  %v8573_v46 = vld [vmem:[#allocation5 + $0x42c] ss:$24 sps:$4 sm:$0xff]  }
 0x102   :  { %2030 = vmatpush1.bf16.msra.mxu0 %v8481_v45  ;;  %2074 = vmatprep.subr.bf16.mxu1 %v8492_v48  ;;  %v8568_v45 = vld [vmem:[#allocation5 + $0x100] ss:$24 sps:$4 sm:$0xff]  }
 0x103   :  { %2031 = vmatprep.subr.bf16.mxu0 %v8489_v47  ;;  %v8576_v47 = vld [vmem:[#allocation5 + $0x134] ss:$24 sps:$4 sm:$0xff]   ;;  %v8571_v48 = vld [vmem:[#allocation5 + $0x428] ss:$24 sps:$4 sm:$0xff]  }
 0x105   :  { %2075 = vmatpush1.bf16.msra.mxu1 %v8490_v51  ;;  %v8579_v51 = vld [vmem:[#allocation5 + $0x45c] ss:$24 sps:$4 sm:$0xff]  }
 0x106   :  { %2032 = vmatpush1.bf16.msra.mxu0 %v8487_v49  ;;  %2076 = vmatprep.subr.bf16.mxu1 %v8498_v53  ;;  %v8574_v49 = vld [vmem:[#allocation5 + $0x130] ss:$24 sps:$4 sm:$0xff]  }
 0x107   :  { %2033 = vmatprep.subr.bf16.mxu0 %v8495_v52  ;;  %v8582_v52 = vld [vmem:[#allocation5 + $0x164] ss:$24 sps:$4 sm:$0xff]   ;;  %v8577_v53 = vld [vmem:[#allocation5 + $0x458] ss:$24 sps:$4 sm:$0xff]  }
 0x109   :  { %2077 = vmatpush1.bf16.msra.mxu1 %v8496_v56  ;;  %v8585_v56 = vld [vmem:[#allocation5 + $0x48c] ss:$24 sps:$4 sm:$0xff]  }
 0x10a   :  { %2034 = vmatpush1.bf16.msra.mxu0 %v8493_v54  ;;  %2078 = vmatprep.subr.bf16.mxu1 %v8504_v58  ;;  %v8580_v54 = vld [vmem:[#allocation5 + $0x160] ss:$24 sps:$4 sm:$0xff]  }
 0x10b   :  { %2035 = vmatprep.subr.bf16.mxu0 %v8501_v57  ;;  %v8588_v57 = vld [vmem:[#allocation5 + $0x194] ss:$24 sps:$4 sm:$0xff]   ;;  %v8583_v58 = vld [vmem:[#allocation5 + $0x488] ss:$24 sps:$4 sm:$0xff]  }
 0x10d   :  { %2079 = vmatpush1.bf16.msra.mxu1 %v8502_v60  ;;  %v8591_v60 = vld [vmem:[#allocation5 + $0x4bc] ss:$24 sps:$4 sm:$0xff]  }
 0x10e   :  { %2036 = vmatpush1.bf16.msra.mxu0 %v8499_v59  ;;  %2080 = vmatprep.subr.bf16.mxu1 %v8510_v62  ;;  %v8586_v59 = vld [vmem:[#allocation5 + $0x190] ss:$24 sps:$4 sm:$0xff]  }
 0x10f   :  { %2037 = vmatprep.subr.bf16.mxu0 %v8507_v61  ;;  %v8594_v61 = vld [vmem:[#allocation5 + $0x1c4] ss:$24 sps:$4 sm:$0xff]   ;;  %v8589_v62 = vld [vmem:[#allocation5 + $0x4b8] ss:$24 sps:$4 sm:$0xff]  }
 0x111   :  { %2081 = vmatpush1.bf16.msra.mxu1 %v8508_v0  ;;  %v8597_v0 = vld [vmem:[#allocation5 + $0x4ec] ss:$24 sps:$4 sm:$0xff]  }
 0x112   :  { %2038 = vmatpush1.bf16.msra.mxu0 %v8505_v63  ;;  %2082 = vmatprep.subr.bf16.mxu1 %v8516_v2  ;;  %v8592_v63 = vld [vmem:[#allocation5 + $0x1c0] ss:$24 sps:$4 sm:$0xff]  }
 0x113   :  { %2039 = vmatprep.subr.bf16.mxu0 %v8513_v1  ;;  %v8600_v1 = vld [vmem:[#allocation5 + $0x1f4] ss:$24 sps:$4 sm:$0xff]   ;;  %v8595_v2 = vld [vmem:[#allocation5 + $0x4e8] ss:$24 sps:$4 sm:$0xff]  }
 0x115   :  { %2083 = vmatpush1.bf16.msra.mxu1 %v8514_v4  ;;  %v8603_v4 = vld [vmem:[#allocation5 + $0x51c] ss:$24 sps:$4 sm:$0xff]  }
 0x116   :  { %2040 = vmatpush1.bf16.msra.mxu0 %v8511_v3  ;;  %2084 = vmatprep.subr.bf16.mxu1 %v8522_v6  ;;  %v8598_v3 = vld [vmem:[#allocation5 + $0x1f0] ss:$24 sps:$4 sm:$0xff]  }
 0x117   :  { %2041 = vmatprep.subr.bf16.mxu0 %v8519_v5  ;;  %v8606_v5 = vld [vmem:[#allocation5 + $0x224] ss:$24 sps:$4 sm:$0xff]   ;;  %v8601_v6 = vld [vmem:[#allocation5 + $0x518] ss:$24 sps:$4 sm:$0xff]  }
 0x119   :  { %2085 = vmatpush1.bf16.msra.mxu1 %v8520_v8  ;;  %v8609_v8 = vld [vmem:[#allocation5 + $0x54c] ss:$24 sps:$4 sm:$0xff]  }
 0x11a   :  { %2042 = vmatpush1.bf16.msra.mxu0 %v8517_v7  ;;  %2086 = vmatprep.subr.bf16.mxu1 %v8528_v10  ;;  %v8604_v7 = vld [vmem:[#allocation5 + $0x220] ss:$24 sps:$4 sm:$0xff]  }
 0x11b   :  { %2043 = vmatprep.subr.bf16.mxu0 %v8525_v9  ;;  %v8612_v9 = vld [vmem:[#allocation5 + $0x254] ss:$24 sps:$4 sm:$0xff]   ;;  %v8607_v10 = vld [vmem:[#allocation5 + $0x548] ss:$24 sps:$4 sm:$0xff]  }
 0x11d   :  { %2087 = vmatpush1.bf16.msra.mxu1 %v8526_v13  ;;  %v8615_v13 = vld [vmem:[#allocation5 + $0x57c] ss:$24 sps:$4 sm:$0xff]  }
 0x11e   :  { %2044 = vmatpush1.bf16.msra.mxu0 %v8523_v11  ;;  %2088 = vmatprep.subr.bf16.mxu1 %v8534_v16  ;;  %v8610_v11 = vld [vmem:[#allocation5 + $0x250] ss:$24 sps:$4 sm:$0xff]  }
 0x11f   :  { %2045 = vmatprep.subr.bf16.mxu0 %v8531_v14  ;;  %v8618_v14 = vld [vmem:[#allocation5 + $0x284] ss:$24 sps:$4 sm:$0xff]   ;;  %v8613_v16 = vld [vmem:[#allocation5 + $0x578] ss:$24 sps:$4 sm:$0xff]  }
 0x121   :  { %2089 = vmatpush1.bf16.msra.mxu1 %v8532_v18  ;;  %v8621_v18 = vld [vmem:[#allocation5 + $0x5ac] ss:$24 sps:$4 sm:$0xff]  }
 0x122   :  { %2046 = vmatpush1.bf16.msra.mxu0 %v8529_v17  ;;  %2101 = vmatprep.subr.bf16.mxu1 %v8537_v21  ;;  %v8616_v17 = vld [vmem:[#allocation5 + $0x280] ss:$24 sps:$4 sm:$0xff]   ;;  %v8622_v21 = vld [vmem:[#allocation5 + $0x2b0] ss:$24 sps:$4 sm:$0xff]  }
 0x123   :  { %2187 = vmatprep.subr.bf16.mxu0 %v8540_v22  ;;  %v8627_v22 = vld [vmem:[#allocation5 + $0x5dc] ss:$24 sps:$4 sm:$0xff]  }
 0x124   :  { %2091 = vmatmul.mubr.bf16.vlgmr.msra.gmra.mrb[4].mxu1 %v10149_v12 }
 0x125   :  { %2048 = vmatmul.mubr.bf16.vlgmr.msra.gmra.mrb[0].mxu0 %v10159_v23  ;;  %2102 = vmatpush1.bf16.msra.mxu1 %v8535_v24  ;;  %v8630_v24 = vld [vmem:[#allocation5 + $0x2e4] ss:$24 sps:$4 sm:$0xff]  }
 0x126   :  { %2188 = vmatpush1.bf16.msra.mxu0 %v8538_v25  ;;  %2103 = vmatprep.subr.bf16.mxu1 %v8543_v26  ;;  %v8625_v25 = vld [vmem:[#allocation5 + $0x5d8] ss:$24 sps:$4 sm:$0xff]  }
 0x127   :  { %2189 = vmatprep.subr.bf16.mxu0 %v8546_v27  ;;  %2133 = vmatprep.mubr.bf16.mxu1 %v10145_v55  ;;  %v8628_v26 = vld [vmem:[#allocation5 + $0x2e0] ss:$24 sps:$4 sm:$0xff]   ;;  %v8633_v27 = vld [vmem:[#allocation5 + $0x60c] ss:$24 sps:$4 sm:$0xff]  }
 0x128   :  { %2219 = vmatprep.mubr.bf16.mxu0 %v10143_v50  ;;  %v8567_v50 = vld [vmem:[#allocation5 + $0x3fc] ss:$24 sps:$4 sm:$0xff]  }
 0x129   :  { %2104 = vmatpush1.bf16.msra.mxu1 %v8541_v28  ;;  %v8636_v28 = vld [vmem:[#allocation5 + $0x314] ss:$24 sps:$4 sm:$0xff]  }
 0x12a   :  { %2190 = vmatpush1.bf16.msra.mxu0 %v8544_v29  ;;  %2105 = vmatprep.subr.bf16.mxu1 %v8549_v30  ;;  %v8631_v29 = vld [vmem:[#allocation5 + $0x608] ss:$24 sps:$4 sm:$0xff]  }
 0x12b   :  { %2191 = vmatprep.subr.bf16.mxu0 %v8552_v31  ;;  %v8634_v30 = vld [vmem:[#allocation5 + $0x310] ss:$24 sps:$4 sm:$0xff]   ;;  %v8639_v31 = vld [vmem:[#allocation5 + $0x63c] ss:$24 sps:$4 sm:$0xff]  }
 0x12d   :  { %2106 = vmatpush1.bf16.msra.mxu1 %v8547_v32  ;;  %v8642_v32 = vld [vmem:[#allocation5 + $0x344] ss:$24 sps:$4 sm:$0xff]  }
 0x12e   :  { %2192 = vmatpush1.bf16.msra.mxu0 %v8550_v33  ;;  %2107 = vmatprep.subr.bf16.mxu1 %v8555_v34  ;;  %v8637_v33 = vld [vmem:[#allocation5 + $0x638] ss:$24 sps:$4 sm:$0xff]  }
 0x12f   :  { %2193 = vmatprep.subr.bf16.mxu0 %v8558_v35  ;;  %v8640_v34 = vld [vmem:[#allocation5 + $0x340] ss:$24 sps:$4 sm:$0xff]   ;;  %v8645_v35 = vld [vmem:[#allocation5 + $0x66c] ss:$24 sps:$4 sm:$0xff]  }
 0x131   :  { %2108 = vmatpush1.bf16.msra.mxu1 %v8553_v36  ;;  %v8648_v36 = vld [vmem:[#allocation5 + $0x374] ss:$24 sps:$4 sm:$0xff]  }
 0x132   :  { %2194 = vmatpush1.bf16.msra.mxu0 %v8556_v37  ;;  %2109 = vmatprep.subr.bf16.mxu1 %v8561_v38  ;;  %v8643_v37 = vld [vmem:[#allocation5 + $0x668] ss:$24 sps:$4 sm:$0xff]  }
 0x133   :  { %2195 = vmatprep.subr.bf16.mxu0 %v8564_v39  ;;  %v8646_v38 = vld [vmem:[#allocation5 + $0x370] ss:$24 sps:$4 sm:$0xff]   ;;  %v8651_v39 = vld [vmem:[#allocation5 + $0x69c] ss:$24 sps:$4 sm:$0xff]  }
 0x135   :  { %2110 = vmatpush1.bf16.msra.mxu1 %v8559_v40  ;;  %v8649_v40 = vld [vmem:[#allocation5 + $0x698] ss:$24 sps:$4 sm:$0xff]  }
 0x136   :  { %2196 = vmatpush1.bf16.msra.mxu0 %v8562_v41  ;;  %2111 = vmatprep.subr.bf16.mxu1 %v8567_v50  ;;  %v8652_v41 = vld [vmem:[#allocation5 + $0x3a0] ss:$24 sps:$4 sm:$0xff]   ;;  %v8657_v50 = vld [vmem:[#allocation5 + $0x6cc] ss:$24 sps:$4 sm:$0xff]  }
 0x137   :  { %2197 = vmatprep.subr.bf16.mxu0 %v8570_v42  ;;  %v8660_v42 = vld [vmem:[#allocation5 + $0x3d4] ss:$24 sps:$4 sm:$0xff]  }
 0x139   :  { %2112 = vmatpush1.bf16.msra.mxu1 %v8565_v43  ;;  %v8655_v43 = vld [vmem:[#allocation5 + $0x6c8] ss:$24 sps:$4 sm:$0xff]  }
 0x13a   :  { %2198 = vmatpush1.bf16.msra.mxu0 %v8568_v45  ;;  %2113 = vmatprep.subr.bf16.mxu1 %v8573_v46  ;;  %v8663_v45 = vld [vmem:[#allocation5 + $0x6fc] ss:$24 sps:$4 sm:$0xff]  }
 0x13b   :  { %2199 = vmatprep.subr.bf16.mxu0 %v8576_v47  ;;  %v8666_v46 = vld [vmem:[#allocation5 + $0x404] ss:$24 sps:$4 sm:$0xff]   ;;  %v8661_v47 = vld [vmem:[#allocation5 + $0x6f8] ss:$24 sps:$4 sm:$0xff]  }
 0x13d   :  { %2114 = vmatpush1.bf16.msra.mxu1 %v8571_v48  ;;  %v8664_v48 = vld [vmem:[#allocation5 + $0x400] ss:$24 sps:$4 sm:$0xff]  }
 0x13e   :  { %2200 = vmatpush1.bf16.msra.mxu0 %v8574_v49  ;;  %2115 = vmatprep.subr.bf16.mxu1 %v8579_v51  ;;  %v8669_v49 = vld [vmem:[#allocation5 + $0x72c] ss:$24 sps:$4 sm:$0xff]  }
 0x13f   :  { %2201 = vmatprep.subr.bf16.mxu0 %v8582_v52  ;;  %v8672_v51 = vld [vmem:[#allocation5 + $0x434] ss:$24 sps:$4 sm:$0xff]   ;;  %v8667_v52 = vld [vmem:[#allocation5 + $0x728] ss:$24 sps:$4 sm:$0xff]  }
 0x141   :  { %2116 = vmatpush1.bf16.msra.mxu1 %v8577_v53  ;;  %v8670_v53 = vld [vmem:[#allocation5 + $0x430] ss:$24 sps:$4 sm:$0xff]  }
 0x142   :  { %2202 = vmatpush1.bf16.msra.mxu0 %v8580_v54  ;;  %2117 = vmatprep.subr.bf16.mxu1 %v8585_v56  ;;  %v8675_v54 = vld [vmem:[#allocation5 + $0x75c] ss:$24 sps:$4 sm:$0xff]  }
 0x143   :  { %2203 = vmatprep.subr.bf16.mxu0 %v8588_v57  ;;  %v8678_v56 = vld [vmem:[#allocation5 + $0x464] ss:$24 sps:$4 sm:$0xff]   ;;  %v8673_v57 = vld [vmem:[#allocation5 + $0x758] ss:$24 sps:$4 sm:$0xff]  }
 0x145   :  { %2118 = vmatpush1.bf16.msra.mxu1 %v8583_v58  ;;  %v8676_v58 = vld [vmem:[#allocation5 + $0x460] ss:$24 sps:$4 sm:$0xff]  }
 0x146   :  { %2204 = vmatpush1.bf16.msra.mxu0 %v8586_v59  ;;  %2119 = vmatprep.subr.bf16.mxu1 %v8591_v60  ;;  %v8681_v59 = vld [vmem:[#allocation5 + $0x78c] ss:$24 sps:$4 sm:$0xff]  }
 0x147   :  { %2205 = vmatprep.subr.bf16.mxu0 %v8594_v61  ;;  %v8684_v60 = vld [vmem:[#allocation5 + $0x494] ss:$24 sps:$4 sm:$0xff]   ;;  %v8679_v61 = vld [vmem:[#allocation5 + $0x788] ss:$24 sps:$4 sm:$0xff]  }
 0x149   :  { %2120 = vmatpush1.bf16.msra.mxu1 %v8589_v62  ;;  %v8682_v62 = vld [vmem:[#allocation5 + $0x490] ss:$24 sps:$4 sm:$0xff]  }
 0x14a   :  { %2206 = vmatpush1.bf16.msra.mxu0 %v8592_v63  ;;  %2121 = vmatprep.subr.bf16.mxu1 %v8597_v0  ;;  %v8687_v63 = vld [vmem:[#allocation5 + $0x7bc] ss:$24 sps:$4 sm:$0xff]  }
 0x14b   :  { %2207 = vmatprep.subr.bf16.mxu0 %v8600_v1  ;;  %v8690_v0 = vld [vmem:[#allocation5 + $0x4c4] ss:$24 sps:$4 sm:$0xff]   ;;  %v8685_v1 = vld [vmem:[#allocation5 + $0x7b8] ss:$24 sps:$4 sm:$0xff]  }
 0x14d   :  { %2122 = vmatpush1.bf16.msra.mxu1 %v8595_v2  ;;  %v8688_v2 = vld [vmem:[#allocation5 + $0x4c0] ss:$24 sps:$4 sm:$0xff]  }
 0x14e   :  { %2208 = vmatpush1.bf16.msra.mxu0 %v8598_v3  ;;  %2123 = vmatprep.subr.bf16.mxu1 %v8603_v4  ;;  %v8693_v3 = vld [vmem:[#allocation5 + $0x7ec] ss:$24 sps:$4 sm:$0xff]  }
 0x14f   :  { %2209 = vmatprep.subr.bf16.mxu0 %v8606_v5  ;;  %v8696_v4 = vld [vmem:[#allocation5 + $0x4f4] ss:$24 sps:$4 sm:$0xff]   ;;  %v8691_v5 = vld [vmem:[#allocation5 + $0x7e8] ss:$24 sps:$4 sm:$0xff]  }
 0x151   :  { %2124 = vmatpush1.bf16.msra.mxu1 %v8601_v6  ;;  %v8694_v6 = vld [vmem:[#allocation5 + $0x4f0] ss:$24 sps:$4 sm:$0xff]  }
 0x152   :  { %2210 = vmatpush1.bf16.msra.mxu0 %v8604_v7  ;;  %2125 = vmatprep.subr.bf16.mxu1 %v8609_v8  ;;  %v8699_v7 = vld [vmem:[#allocation5 + $0x81c] ss:$24 sps:$4 sm:$0xff]  }
 0x153   :  { %2211 = vmatprep.subr.bf16.mxu0 %v8612_v9  ;;  %v8702_v8 = vld [vmem:[#allocation5 + $0x524] ss:$24 sps:$4 sm:$0xff]   ;;  %v8697_v9 = vld [vmem:[#allocation5 + $0x818] ss:$24 sps:$4 sm:$0xff]  }
 0x155   :  { %2126 = vmatpush1.bf16.msra.mxu1 %v8607_v10  ;;  %v8700_v10 = vld [vmem:[#allocation5 + $0x520] ss:$24 sps:$4 sm:$0xff]  }
 0x156   :  { %2212 = vmatpush1.bf16.msra.mxu0 %v8610_v11  ;;  %2127 = vmatprep.subr.bf16.mxu1 %v8615_v13  ;;  %v8705_v11 = vld [vmem:[#allocation5 + $0x84c] ss:$24 sps:$4 sm:$0xff]  }
 0x157   :  { %2213 = vmatprep.subr.bf16.mxu0 %v8618_v14  ;;  %v8708_v13 = vld [vmem:[#allocation5 + $0x554] ss:$24 sps:$4 sm:$0xff]   ;;  %v8703_v14 = vld [vmem:[#allocation5 + $0x848] ss:$24 sps:$4 sm:$0xff]  }
 0x159   :  { %2128 = vmatpush1.bf16.msra.mxu1 %v8613_v16  ;;  %v8706_v16 = vld [vmem:[#allocation5 + $0x550] ss:$24 sps:$4 sm:$0xff]  }
 0x15a   :  { %2214 = vmatpush1.bf16.msra.mxu0 %v8616_v17  ;;  %2129 = vmatprep.subr.bf16.mxu1 %v8621_v18  ;;  %v8711_v17 = vld [vmem:[#allocation5 + $0x87c] ss:$24 sps:$4 sm:$0xff]  }
 0x15b   :  { %2215 = vmatprep.subr.bf16.mxu0 %v8624_v19  ;;  %v8714_v18 = vld [vmem:[#allocation5 + $0x584] ss:$24 sps:$4 sm:$0xff]   ;;  %v8709_v19 = vld [vmem:[#allocation5 + $0x878] ss:$24 sps:$4 sm:$0xff]  }
 0x15d   :  { %2130 = vmatpush1.bf16.msra.mxu1 %v8619_v20  ;;  %v8712_v20 = vld [vmem:[#allocation5 + $0x580] ss:$24 sps:$4 sm:$0xff]  }
 0x15e   :  { %2216 = vmatpush1.bf16.msra.mxu0 %v8622_v21  ;;  %2131 = vmatprep.subr.bf16.mxu1 %v8627_v22  ;;  %v8717_v21 = vld [vmem:[#allocation5 + $0x8ac] ss:$24 sps:$4 sm:$0xff]  }
 0x15f   :  { %2217 = vmatprep.subr.bf16.mxu0 %v8630_v24  ;;  %v8720_v22 = vld [vmem:[#allocation5 + $0x5b4] ss:$24 sps:$4 sm:$0xff]   ;;  %v8715_v24 = vld [vmem:[#allocation5 + $0x8a8] ss:$24 sps:$4 sm:$0xff]  }
 0x161   :  { %2132 = vmatpush1.bf16.msra.mxu1 %v8625_v25  ;;  %v8718_v25 = vld [vmem:[#allocation5 + $0x5b0] ss:$24 sps:$4 sm:$0xff]  }
 0x162   :  { %2218 = vmatpush1.bf16.msra.mxu0 %v8628_v26  ;;  %2144 = vmatprep.subr.bf16.mxu1 %v8633_v27  ;;  %v8723_v26 = vld [vmem:[#allocation5 + $0x8dc] ss:$24 sps:$4 sm:$0xff]  }
 0x163   :  { %2230 = vmatprep.subr.bf16.mxu0 %v8636_v28  ;;  %v8726_v27 = vld [vmem:[#allocation5 + $0x5e4] ss:$24 sps:$4 sm:$0xff]   ;;  %v8721_v28 = vld [vmem:[#allocation5 + $0x8d8] ss:$24 sps:$4 sm:$0xff]  }
 0x164   :  { %2134 = vmatmul.mubr.bf16.vlgmr.msra.gmra.mrb[4].mxu1 %v10151_v15 }
 0x165   :  { %2220 = vmatmul.mubr.bf16.vlgmr.msra.gmra.mrb[4].mxu0 %v10149_v12  ;;  %2145 = vmatpush1.bf16.msra.mxu1 %v8631_v29  ;;  %v8654_v12 = vld [vmem:[#allocation5 + $0x3a4] ss:$24 sps:$4 sm:$0xff]   ;;  %v8724_v29 = vld [vmem:[#allocation5 + $0x5e0] ss:$24 sps:$4 sm:$0xff]  }
 0x166   :  { %2231 = vmatpush1.bf16.msra.mxu0 %v8634_v30  ;;  %2146 = vmatprep.subr.bf16.mxu1 %v8639_v31  ;;  %v8729_v30 = vld [vmem:[#allocation5 + $0x614] ss:$24 sps:$4 sm:$0xff]  }
 0x167   :  { %2232 = vmatprep.subr.bf16.mxu0 %v8642_v32  ;;  %2176 = vmatprep.mubr.bf16.mxu1 %v10156_v44  ;;  %v8753_v31 = vld [vmem:[#allocation8 + $0x4] ss:$24 sps:$4 sm:$0xff]  }
 0x168   :  { %2262 = vmatprep.mubr.bf16.mxu0 %v10145_v55  ;;  %v8658_v55 = vld [vmem:[#allocation5 + $0x3d0] ss:$24 sps:$4 sm:$0xff]  }
 0x169   :  { %2147 = vmatpush1.bf16.msra.mxu1 %v8637_v33  ;;  %v8727_v32 = vld [vmem:[#allocation5 + $0x610] ss:$24 sps:$4 sm:$0xff]  }
 0x16a   :  { %2233 = vmatpush1.bf16.msra.mxu0 %v8640_v34  ;;  %2148 = vmatprep.subr.bf16.mxu1 %v8645_v35  ;;  %v8751_v33 = vld [vmem:[#allocation8] ss:$24 sps:$4 sm:$0xff]   ;;  %v8759_v35 = vld [vmem:[#allocation8 + $0x34] ss:$24 sps:$4 sm:$0xff]  }
 0x16b   :  { %2234 = vmatprep.subr.bf16.mxu0 %v8648_v36  ;;  %v8732_v34 = vld [vmem:[#allocation5 + $0x644] ss:$24 sps:$4 sm:$0xff]   ;;  %v8730_v36 = vld [vmem:[#allocation5 + $0x640] ss:$24 sps:$4 sm:$0xff]  }
 0x16d   :  { %2149 = vmatpush1.bf16.msra.mxu1 %v8643_v37  ;;  %v8757_v37 = vld [vmem:[#allocation8 + $0x30] ss:$24 sps:$4 sm:$0xff]  }
 0x16e   :  { %2235 = vmatpush1.bf16.msra.mxu0 %v8646_v38  ;;  %2150 = vmatprep.subr.bf16.mxu1 %v8651_v39  ;;  %v8735_v38 = vld [vmem:[#allocation5 + $0x674] ss:$24 sps:$4 sm:$0xff]  }
 0x16f   :  { %2236 = vmatprep.subr.bf16.mxu0 %v8654_v12  ;;  %v8765_v39 = vld [vmem:[#allocation8 + $0x64] ss:$24 sps:$4 sm:$0xff]  }
 0x170   :  { %v8733_v12 = vld [vmem:[#allocation5 + $0x670] ss:$24 sps:$4 sm:$0xff]  }
 0x171   :  { %2151 = vmatpush1.bf16.msra.mxu1 %v8649_v40  ;;  %v8738_v40 = vld [vmem:[#allocation5 + $0x6a4] ss:$24 sps:$4 sm:$0xff]  }
 0x172   :  { %2237 = vmatpush1.bf16.msra.mxu0 %v8652_v41  ;;  %2152 = vmatprep.subr.bf16.mxu1 %v8657_v50  ;;  %v8763_v41 = vld [vmem:[#allocation8 + $0x60] ss:$24 sps:$4 sm:$0xff]   ;;  %v8771_v50 = vld [vmem:[#allocation8 + $0x94] ss:$24 sps:$4 sm:$0xff]  }
 0x173   :  { %2238 = vmatprep.subr.bf16.mxu0 %v8660_v42  ;;  %v8741_v42 = vld [vmem:[#allocation5 + $0x6d4] ss:$24 sps:$4 sm:$0xff]  }
 0x175   :  { %2153 = vmatpush1.bf16.msra.mxu1 %v8655_v43  ;;  %v8769_v43 = vld [vmem:[#allocation8 + $0x90] ss:$24 sps:$4 sm:$0xff]  }
 0x176   :  { %2239 = vmatpush1.bf16.msra.mxu0 %v8658_v55  ;;  %2154 = vmatprep.subr.bf16.mxu1 %v8663_v45  ;;  %v8777_v55 = vld [vmem:[#allocation8 + $0xc4] ss:$24 sps:$4 sm:$0xff]  }
 0x177   :  { %2240 = vmatprep.subr.bf16.mxu0 %v8666_v46  ;;  %v8739_v45 = vld [vmem:[#allocation5 + $0x6d0] ss:$24 sps:$4 sm:$0xff]   ;;  %v8744_v46 = vld [vmem:[#allocation5 + $0x704] ss:$24 sps:$4 sm:$0xff]  }
 0x179   :  { %2155 = vmatpush1.bf16.msra.mxu1 %v8661_v47  ;;  %v8783_v47 = vld [vmem:[#allocation8 + $0xf4] ss:$24 sps:$4 sm:$0xff]  }
 0x17a   :  { %2241 = vmatpush1.bf16.msra.mxu0 %v8664_v48  ;;  %2156 = vmatprep.subr.bf16.mxu1 %v8669_v49  ;;  %v8742_v48 = vld [vmem:[#allocation5 + $0x700] ss:$24 sps:$4 sm:$0xff]   ;;  %v8747_v49 = vld [vmem:[#allocation5 + $0x734] ss:$24 sps:$4 sm:$0xff]  }
 0x17b   :  { %2242 = vmatprep.subr.bf16.mxu0 %v8672_v51  ;;  %v8781_v51 = vld [vmem:[#allocation8 + $0xf0] ss:$24 sps:$4 sm:$0xff]  }
 0x17d   :  { %2157 = vmatpush1.bf16.msra.mxu1 %v8667_v52  ;;  %v8789_v52 = vld [vmem:[#allocation8 + $0x124] ss:$24 sps:$4 sm:$0xff]  }
 0x17e   :  { %2243 = vmatpush1.bf16.msra.mxu0 %v8670_v53  ;;  %2158 = vmatprep.subr.bf16.mxu1 %v8675_v54 }
 0x17f   :  { %2244 = vmatprep.subr.bf16.mxu0 %v8678_v56 }
 0x181   :  { %2159 = vmatpush1.bf16.msra.mxu1 %v8673_v57  ;;  %v8745_v57 = vld [vmem:[#allocation5 + $0x730] ss:$24 sps:$4 sm:$0xff]  }
 0x182   :  { %2245 = vmatpush1.bf16.msra.mxu0 %v8676_v58  ;;  %2160 = vmatprep.subr.bf16.mxu1 %v8681_v59  ;;  %v8787_v58 = vld [vmem:[#allocation8 + $0x120] ss:$24 sps:$4 sm:$0xff]  }
 0x183   :  { %2246 = vmatprep.subr.bf16.mxu0 %v8684_v60  ;;  %v8750_v60 = vld [vmem:[#allocation5 + $0x764] ss:$24 sps:$4 sm:$0xff]  }
 0x185   :  { %2161 = vmatpush1.bf16.msra.mxu1 %v8679_v61  ;;  %v8795_v61 = vld [vmem:[#allocation8 + $0x154] ss:$24 sps:$4 sm:$0xff]  }
 0x186   :  { %2247 = vmatpush1.bf16.msra.mxu0 %v8682_v62  ;;  %2162 = vmatprep.subr.bf16.mxu1 %v8687_v63  ;;  %v8748_v62 = vld [vmem:[#allocation5 + $0x760] ss:$24 sps:$4 sm:$0xff]   ;;  %v8756_v63 = vld [vmem:[#allocation5 + $0x794] ss:$24 sps:$4 sm:$0xff]  }
 0x187   :  { %2248 = vmatprep.subr.bf16.mxu0 %v8690_v0  ;;  %v8793_v0 = vld [vmem:[#allocation8 + $0x150] ss:$24 sps:$4 sm:$0xff]  }
 0x189   :  { %2163 = vmatpush1.bf16.msra.mxu1 %v8685_v1  ;;  %v8801_v1 = vld [vmem:[#allocation8 + $0x184] ss:$24 sps:$4 sm:$0xff]  }
 0x18a   :  { %2249 = vmatpush1.bf16.msra.mxu0 %v8688_v2  ;;  %2164 = vmatprep.subr.bf16.mxu1 %v8693_v3  ;;  %v8754_v2 = vld [vmem:[#allocation5 + $0x790] ss:$24 sps:$4 sm:$0xff]   ;;  %v8762_v3 = vld [vmem:[#allocation5 + $0x7c4] ss:$24 sps:$4 sm:$0xff]  }
 0x18b   :  { %2250 = vmatprep.subr.bf16.mxu0 %v8696_v4  ;;  %v8799_v4 = vld [vmem:[#allocation8 + $0x180] ss:$24 sps:$4 sm:$0xff]  }
 0x18d   :  { %2165 = vmatpush1.bf16.msra.mxu1 %v8691_v5  ;;  %v8807_v5 = vld [vmem:[#allocation8 + $0x1b4] ss:$24 sps:$4 sm:$0xff]  }
 0x18e   :  { %2251 = vmatpush1.bf16.msra.mxu0 %v8694_v6  ;;  %2166 = vmatprep.subr.bf16.mxu1 %v8699_v7  ;;  %v8760_v6 = vld [vmem:[#allocation5 + $0x7c0] ss:$24 sps:$4 sm:$0xff]   ;;  %v8768_v7 = vld [vmem:[#allocation5 + $0x7f4] ss:$24 sps:$4 sm:$0xff]  }
 0x18f   :  { %2252 = vmatprep.subr.bf16.mxu0 %v8702_v8  ;;  %v8805_v8 = vld [vmem:[#allocation8 + $0x1b0] ss:$24 sps:$4 sm:$0xff]  }
 0x191   :  { %2167 = vmatpush1.bf16.msra.mxu1 %v8697_v9  ;;  %v8813_v9 = vld [vmem:[#allocation8 + $0x1e4] ss:$24 sps:$4 sm:$0xff]  }
 0x192   :  { %2253 = vmatpush1.bf16.msra.mxu0 %v8700_v10  ;;  %2168 = vmatprep.subr.bf16.mxu1 %v8705_v11  ;;  %v8766_v10 = vld [vmem:[#allocation5 + $0x7f0] ss:$24 sps:$4 sm:$0xff]   ;;  %v8774_v11 = vld [vmem:[#allocation5 + $0x824] ss:$24 sps:$4 sm:$0xff]  }
 0x193   :  { %2254 = vmatprep.subr.bf16.mxu0 %v8708_v13  ;;  %v8811_v13 = vld [vmem:[#allocation8 + $0x1e0] ss:$24 sps:$4 sm:$0xff]  }
 0x195   :  { %2169 = vmatpush1.bf16.msra.mxu1 %v8703_v14  ;;  %v8819_v14 = vld [vmem:[#allocation8 + $0x214] ss:$24 sps:$4 sm:$0xff]  }
 0x196   :  { %2255 = vmatpush1.bf16.msra.mxu0 %v8706_v16  ;;  %2170 = vmatprep.subr.bf16.mxu1 %v8711_v17  ;;  %v8772_v16 = vld [vmem:[#allocation5 + $0x820] ss:$24 sps:$4 sm:$0xff]   ;;  %v8780_v17 = vld [vmem:[#allocation5 + $0x854] ss:$24 sps:$4 sm:$0xff]  }
 0x197   :  { %2256 = vmatprep.subr.bf16.mxu0 %v8714_v18  ;;  %v8817_v18 = vld [vmem:[#allocation8 + $0x210] ss:$24 sps:$4 sm:$0xff]  }
 0x199   :  { %2171 = vmatpush1.bf16.msra.mxu1 %v8709_v19  ;;  %v8825_v19 = vld [vmem:[#allocation8 + $0x244] ss:$24 sps:$4 sm:$0xff]  }
 0x19a   :  { %2257 = vmatpush1.bf16.msra.mxu0 %v8712_v20  ;;  %2172 = vmatprep.subr.bf16.mxu1 %v8717_v21  ;;  %v8778_v20 = vld [vmem:[#allocation5 + $0x850] ss:$24 sps:$4 sm:$0xff]   ;;  %v8786_v21 = vld [vmem:[#allocation5 + $0x884] ss:$24 sps:$4 sm:$0xff]  }
 0x19b   :  { %2258 = vmatprep.subr.bf16.mxu0 %v8720_v22  ;;  %v8823_v22 = vld [vmem:[#allocation8 + $0x240] ss:$24 sps:$4 sm:$0xff]  }
 0x19d   :  { %2173 = vmatpush1.bf16.msra.mxu1 %v8715_v24  ;;  %v8831_v24 = vld [vmem:[#allocation8 + $0x274] ss:$24 sps:$4 sm:$0xff]  }
 0x19e   :  { %2259 = vmatpush1.bf16.msra.mxu0 %v8718_v25  ;;  %2174 = vmatprep.subr.bf16.mxu1 %v8723_v26  ;;  %v8784_v25 = vld [vmem:[#allocation5 + $0x880] ss:$24 sps:$4 sm:$0xff]   ;;  %v8792_v26 = vld [vmem:[#allocation5 + $0x8b4] ss:$24 sps:$4 sm:$0xff]  }
 0x19f   :  { %2260 = vmatprep.subr.bf16.mxu0 %v8726_v27  ;;  %v8829_v27 = vld [vmem:[#allocation8 + $0x270] ss:$24 sps:$4 sm:$0xff]  }
 0x1a1   :  { %2175 = vmatpush1.bf16.msra.mxu1 %v8721_v28  ;;  %v8837_v28 = vld [vmem:[#allocation8 + $0x2a4] ss:$24 sps:$4 sm:$0xff]  }
 0x1a2   :  { %2261 = vmatpush1.bf16.msra.mxu0 %v8724_v29  ;;  %4094 = vmatprep.subr.bf16.mxu1 %v8753_v31  ;;  %v8790_v29 = vld [vmem:[#allocation5 + $0x8b0] ss:$24 sps:$4 sm:$0xff]   ;;  %v8798_v31 = vld [vmem:[#allocation5 + $0x8e4] ss:$24 sps:$4 sm:$0xff]  }
 0x1a3   :  { %2273 = vmatprep.subr.bf16.mxu0 %v8729_v30  ;;  %v8835_v30 = vld [vmem:[#allocation8 + $0x2a0] ss:$24 sps:$4 sm:$0xff]  }
 0x1a4   :  { %2177 = vmatmul.mubr.bf16.vlgmr.msra.gmra.mrb[4].mxu1 %v10159_v23 }
 0x1a5   :  { %2263 = vmatmul.mubr.bf16.vlgmr.msra.gmra.mrb[4].mxu0 %v10151_v15  ;;  %4095 = vmatpush1.bf16.msra.mxu1 %v8751_v33  ;;  %v8736_v15 = vld [vmem:[#allocation5 + $0x6a0] ss:$24 sps:$4 sm:$0xff]  }
 0x1a6   :  { %2274 = vmatpush1.bf16.msra.mxu0 %v8727_v32  ;;  %4096 = vmatprep.subr.bf16.mxu1 %v8759_v35  ;;  %v8843_v32 = vld [vmem:[#allocation8 + $0x2d4] ss:$24 sps:$4 sm:$0xff]  }
 0x1a7   :  { %2275 = vmatprep.subr.bf16.mxu0 %v8732_v34  ;;  %2305 = vmatprep.mubr.bf16.mxu0 %v10156_v44  ;;  %v8775_v44 = vld [vmem:[#allocation8 + $0xc0] ss:$24 sps:$4 sm:$0xff]   ;;  %v8841_v34 = vld [vmem:[#allocation8 + $0x2d0] ss:$24 sps:$4 sm:$0xff]   ;;  %v8804_v35 = vld [vmem:[#allocation8 + $0xc] ss:$24 sps:$4 sm:$0xff]  }
 0x1a8   :  { %v8796_v33 = vld [vmem:[#allocation5 + $0x8e0] ss:$24 sps:$4 sm:$0xff]  }
 0x1a9   :  { %4097 = vmatpush1.bf16.msra.mxu1 %v8757_v37  ;;  %v8802_v37 = vld [vmem:[#allocation8 + $0x8] ss:$24 sps:$4 sm:$0xff]  }
 0x1aa   :  { %2276 = vmatpush1.bf16.msra.mxu0 %v8730_v36  ;;  %4098 = vmatprep.subr.bf16.mxu1 %v8765_v39  ;;  %v8873_v36 = vld [vmem:[#allocation8 + $0x304] ss:$24 sps:$4 sm:$0xff]   ;;  %v8808_v39 = vld [vmem:[#allocation8 + $0x38] ss:$24 sps:$4 sm:$0xff]  }
 0x1ab   :  { %2277 = vmatprep.subr.bf16.mxu0 %v8735_v38  ;;  %v8810_v38 = vld [vmem:[#allocation8 + $0x3c] ss:$24 sps:$4 sm:$0xff]  }
 0x1ad   :  { %4099 = vmatpush1.bf16.msra.mxu1 %v8763_v41  ;;  %v8814_v41 = vld [vmem:[#allocation8 + $0x68] ss:$24 sps:$4 sm:$0xff]  }
 0x1ae   :  { %2278 = vmatpush1.bf16.msra.mxu0 %v8733_v12  ;;  %4100 = vmatprep.subr.bf16.mxu1 %v8771_v50  ;;  %v8816_v12 = vld [vmem:[#allocation8 + $0x6c] ss:$24 sps:$4 sm:$0xff]   ;;  %v8822_v50 = vld [vmem:[#allocation8 + $0x9c] ss:$24 sps:$4 sm:$0xff]  }
 0x1af   :  { %2279 = vmatprep.subr.bf16.mxu0 %v8738_v40  ;;  %v459_v40 = vlaneseq }
 0x1b1   :  { %4101 = vmatpush1.bf16.msra.mxu1 %v8769_v43  ;;  %v8828_v43 = vld [vmem:[#allocation8 + $0xcc] ss:$24 sps:$4 sm:$0xff]  }
 0x1b2   :  { %2280 = vmatpush1.bf16.msra.mxu0 %v8736_v15  ;;  %4102 = vmatprep.subr.bf16.mxu1 %v8777_v55  ;;  %v10181_v15 = vshrl.u32 %v459_v40, 7  ;;  %v457_v55 = vld [vmem:[#allocation7] sm:$0x3f] }
 0x1b3   :  { %2281 = vmatprep.subr.bf16.mxu0 %v8741_v42  ;;  %v8820_v42 = vld [vmem:[#allocation8 + $0x98] ss:$24 sps:$4 sm:$0xff]   ;;  %v8870_v40 = vld [vmem:[#allocation8 + $0x2dc] ss:$24 sps:$4 sm:$0xff]  }
 0x1b5   :  { %4103 = vmatpush1.bf16.msra.mxu1 %v8775_v44  ;;  %v8834_v44 = vld [vmem:[#allocation8 + $0xfc] ss:$24 sps:$4 sm:$0xff]  }
 0x1b6   :  { %2282 = vmatpush1.bf16.msra.mxu0 %v8739_v45  ;;  %4104 = vmatprep.subr.bf16.mxu1 %v8783_v47  ;;  %v10184_v45 = vsub.s32 0, %v10181_v15 }
 0x1b7   :  { %2283 = vmatprep.subr.bf16.mxu0 %v8744_v46  ;;  %v10172_v53 = vpop.f32.mrb[0].mxu1  ;;  %v8826_v46 = vld [vmem:[#allocation8 + $0xc8] ss:$24 sps:$4 sm:$0xff]  }
 0x1b8   :  { %v10174_v54 = vpop.f32.mrb[1].mxu1  ;;  %v462_v47 = vrot.slane %v457_v55, %v10184_v45 }
 0x1b9   :  { %v10176_v56 = vpop.f32.mrb[2].mxu1  ;;  %4105 = vmatpush1.bf16.msra.mxu1 %v8781_v51  ;;  %v8840_v51 = vld [vmem:[#allocation8 + $0x12c] ss:$24 sps:$4 sm:$0xff]  }
 0x1ba   :  { %2284 = vmatpush1.bf16.msra.mxu0 %v8742_v48  ;;  %v10178_v59 = vpop.f32.mrb[3].mxu1  ;;  %4106 = vmatprep.subr.bf16.mxu1 %v8789_v52  ;;  %v1964_v52 = vadd.f32 %v10172_v53, %v462_v47 }
 0x1bb   :  { %2285 = vmatprep.subr.bf16.mxu0 %v8747_v49  ;;  %v8832_v49 = vld [vmem:[#allocation8 + $0xf8] ss:$24 sps:$4 sm:$0xff]  }
 0x1bd   :  { %4107 = vmatpush1.bf16.msra.mxu1 %v8787_v58 }
 0x1be   :  { %2286 = vmatpush1.bf16.msra.mxu0 %v8745_v57  ;;  %4108 = vmatprep.subr.bf16.mxu1 %v8795_v61 }
 0x1bf   :  { %2287 = vmatprep.subr.bf16.mxu0 %v8750_v60  ;;  %v1968_v60 = vadd.f32 %v10176_v56, %v462_v47  ;;  %v8849_v56 = vld [vmem:[#allocation8 + $0x18c] ss:$24 sps:$4 sm:$0xff]   ;;  %v8882_v47 = vld [vmem:[#allocation8 + $0x33c] ss:$24 sps:$4 sm:$0xff]  }
 0x1c1   :  { %4109 = vmatpush1.bf16.msra.mxu1 %v8793_v0 }
 0x1c2   :  { %2288 = vmatpush1.bf16.msra.mxu0 %v8748_v62  ;;  %4110 = vmatprep.subr.bf16.mxu1 %v8801_v1 }
 0x1c3   :  { %2289 = vmatprep.subr.bf16.mxu0 %v8756_v63 }
 0x1c5   :  { %4111 = vmatpush1.bf16.msra.mxu1 %v8799_v4 }
 0x1c6   :  { %2290 = vmatpush1.bf16.msra.mxu0 %v8754_v2  ;;  %4112 = vmatprep.subr.bf16.mxu1 %v8807_v5  ;;  %v8838_v2 = vld [vmem:[#allocation8 + $0x128] ss:$24 sps:$4 sm:$0xff]   ;;  %v8846_v5 = vld [vmem:[#allocation8 + $0x15c] ss:$24 sps:$4 sm:$0xff]  }
 0x1c7   :  { %2291 = vmatprep.subr.bf16.mxu0 %v8762_v3 }
 0x1c9   :  { %4113 = vmatpush1.bf16.msra.mxu1 %v8805_v8  ;;  %v8844_v8 = vld [vmem:[#allocation8 + $0x158] ss:$24 sps:$4 sm:$0xff]  }
 0x1ca   :  { %2292 = vmatpush1.bf16.msra.mxu0 %v8760_v6  ;;  %4114 = vmatprep.subr.bf16.mxu1 %v8813_v9 }
 0x1cb   :  { %2293 = vmatprep.subr.bf16.mxu0 %v8768_v7 }
 0x1cd   :  { %4115 = vmatpush1.bf16.msra.mxu1 %v8811_v13  ;;  %v8879_v13 = vld [vmem:[#allocation8 + $0x334] ss:$24 sps:$4 sm:$0xff]  }
 0x1ce   :  { %2294 = vmatpush1.bf16.msra.mxu0 %v8766_v10  ;;  %4116 = vmatprep.subr.bf16.mxu1 %v8819_v14  ;;  %v8847_v14 = vld [vmem:[#allocation8 + $0x188] ss:$24 sps:$4 sm:$0xff]  }
 0x1cf   :  { %2295 = vmatprep.subr.bf16.mxu0 %v8774_v11 }
 0x1d1   :  { %4117 = vmatpush1.bf16.msra.mxu1 %v8817_v18  ;;  %v8885_v18 = vld [vmem:[#allocation8 + $0x364] ss:$24 sps:$4 sm:$0xff]  }
 0x1d2   :  { %2296 = vmatpush1.bf16.msra.mxu0 %v8772_v16  ;;  %4118 = vmatprep.subr.bf16.mxu1 %v8825_v19  ;;  %v8852_v16 = vld [vmem:[#allocation8 + $0x1bc] ss:$24 sps:$4 sm:$0xff]   ;;  %v8850_v19 = vld [vmem:[#allocation8 + $0x1b8] ss:$24 sps:$4 sm:$0xff]  }
 0x1d3   :  { %2297 = vmatprep.subr.bf16.mxu0 %v8780_v17  ;;  %v8877_v17 = vld [vmem:[#allocation8 + $0x330] ss:$24 sps:$4 sm:$0xff]  }
 0x1d5   :  { %4119 = vmatpush1.bf16.msra.mxu1 %v8823_v22  ;;  %v8891_v22 = vld [vmem:[#allocation8 + $0x394] ss:$24 sps:$4 sm:$0xff]  }
 0x1d6   :  { %2298 = vmatpush1.bf16.msra.mxu0 %v8778_v20  ;;  %4120 = vmatprep.subr.bf16.mxu1 %v8831_v24  ;;  %v8855_v20 = vld [vmem:[#allocation8 + $0x1ec] ss:$24 sps:$4 sm:$0xff]   ;;  %v8853_v24 = vld [vmem:[#allocation8 + $0x1e8] ss:$24 sps:$4 sm:$0xff]  }
 0x1d7   :  { %2299 = vmatprep.subr.bf16.mxu0 %v8786_v21  ;;  %v8883_v21 = vld [vmem:[#allocation8 + $0x360] ss:$24 sps:$4 sm:$0xff]  }
 0x1d9   :  { %4121 = vmatpush1.bf16.msra.mxu1 %v8829_v27  ;;  %v8897_v27 = vld [vmem:[#allocation8 + $0x3c4] ss:$24 sps:$4 sm:$0xff]  }
 0x1da   :  { %2300 = vmatpush1.bf16.msra.mxu0 %v8784_v25  ;;  %4122 = vmatprep.subr.bf16.mxu1 %v8837_v28  ;;  %v8858_v25 = vld [vmem:[#allocation8 + $0x21c] ss:$24 sps:$4 sm:$0xff]   ;;  %v8856_v28 = vld [vmem:[#allocation8 + $0x218] ss:$24 sps:$4 sm:$0xff]  }
 0x1db   :  { %2301 = vmatprep.subr.bf16.mxu0 %v8792_v26  ;;  %v8889_v26 = vld [vmem:[#allocation8 + $0x390] ss:$24 sps:$4 sm:$0xff]  }
 0x1dd   :  { %4123 = vmatpush1.bf16.msra.mxu1 %v8835_v30  ;;  %v8895_v30 = vld [vmem:[#allocation8 + $0x3c0] ss:$24 sps:$4 sm:$0xff]  }
 0x1de   :  { %2302 = vmatpush1.bf16.msra.mxu0 %v8790_v29  ;;  %4124 = vmatprep.subr.bf16.mxu1 %v8843_v32  ;;  %v8861_v29 = vld [vmem:[#allocation8 + $0x24c] ss:$24 sps:$4 sm:$0xff]   ;;  %v8859_v32 = vld [vmem:[#allocation8 + $0x248] ss:$24 sps:$4 sm:$0xff]  }
 0x1df   :  { %2303 = vmatprep.subr.bf16.mxu0 %v8798_v31  ;;  %v8903_v31 = vld [vmem:[#allocation8 + $0x3f4] ss:$24 sps:$4 sm:$0xff]  }
 0x1e1   :  { %4125 = vmatpush1.bf16.msra.mxu1 %v8841_v34  ;;  %v8901_v34 = vld [vmem:[#allocation8 + $0x3f0] ss:$24 sps:$4 sm:$0xff]  }
 0x1e2   :  { %2304 = vmatpush1.bf16.msra.mxu0 %v8796_v33  ;;  %4137 = vmatprep.subr.bf16.mxu1 %v8873_v36  ;;  %v8864_v33 = vld [vmem:[#allocation8 + $0x27c] ss:$24 sps:$4 sm:$0xff]   ;;  %v8862_v36 = vld [vmem:[#allocation8 + $0x278] ss:$24 sps:$4 sm:$0xff]  }
 0x1e3   :  { %4223 = vmatprep.subr.bf16.mxu0 %v8804_v35  ;;  %v8909_v35 = vld [vmem:[#allocation8 + $0x424] ss:$24 sps:$4 sm:$0xff]  }
 0x1e5   :  { %2306 = vmatmul.mubr.bf16.vlgmr.msra.gmra.mrb[4].mxu0 %v10159_v23  ;;  %v10187_v23 = vsub.s32 1, %v10181_v15 }
 0x1e6   :  { %4224 = vmatpush1.bf16.msra.mxu0 %v8802_v37  ;;  %v8867_v37 = vld [vmem:[#allocation8 + $0x2ac] ss:$24 sps:$4 sm:$0xff]  }
 0x1e7   :  { %4225 = vmatprep.subr.bf16.mxu0 %v8810_v38  ;;  %v466_v48 = vrot.slane %v457_v55, %v10187_v23  ;;  %v8907_v38 = vld [vmem:[#allocation8 + $0x420] ss:$24 sps:$4 sm:$0xff]  }
 0x1e8   :  { %v8919_v55 = vld [vmem:[#allocation8 + $0x480] ss:$24 sps:$4 sm:$0xff]  }
 0x1e9   :  { %v1966_v57 = vadd.f32 %v10174_v54, %v466_v48  ;;  %v1970_v63 = vadd.f32 %v10178_v59, %v466_v48  ;;  %v8871_v59 = vld [vmem:[#allocation8 + $0x300] ss:$24 sps:$4 sm:$0xff]   ;;  %v8925_v48 = vld [vmem:[#allocation8 + $0x4b0] ss:$24 sps:$4 sm:$0xff]  }
 0x1ea   :  { %4226 = vmatpush1.bf16.msra.mxu0 %v8808_v39  ;;  %v8915_v39 = vld [vmem:[#allocation8 + $0x454] ss:$24 sps:$4 sm:$0xff]  }
 0x1eb   :  { %4227 = vmatprep.subr.bf16.mxu0 %v8816_v12  ;;  %v8865_v12 = vld [vmem:[#allocation8 + $0x2a8] ss:$24 sps:$4 sm:$0xff]  }
 0x1ee   :  { %4228 = vmatpush1.bf16.msra.mxu0 %v8814_v41  ;;  %v8913_v41 = vld [vmem:[#allocation8 + $0x450] ss:$24 sps:$4 sm:$0xff]  }
 0x1ef   :  { %4229 = vmatprep.subr.bf16.mxu0 %v8822_v50  ;;  %v8921_v50 = vld [vmem:[#allocation8 + $0x484] ss:$24 sps:$4 sm:$0xff]  }
 0x1f2   :  { %4230 = vmatpush1.bf16.msra.mxu0 %v8820_v42  ;;  %v8868_v42 = vld [vmem:[#allocation8 + $0x2d8] ss:$24 sps:$4 sm:$0xff]  }
 0x1f3   :  { %4231 = vmatprep.subr.bf16.mxu0 %v8828_v43  ;;  %v8876_v43 = vld [vmem:[#allocation8 + $0x30c] ss:$24 sps:$4 sm:$0xff]  }
 0x1f6   :  { %4232 = vmatpush1.bf16.msra.mxu0 %v8826_v46  ;;  %v8927_v46 = vld [vmem:[#allocation8 + $0x4b4] ss:$24 sps:$4 sm:$0xff]  }
 0x1f7   :  { %4233 = vmatprep.subr.bf16.mxu0 %v8834_v44  ;;  %v8874_v44 = vld [vmem:[#allocation8 + $0x308] ss:$24 sps:$4 sm:$0xff]  }
 0x1f8   :  { %v2049_v58 = vpop.f32.mrb[0].mxu0 }
 0x1f9   :  { %v8217_v61 = vadd.f32 %v2049_v58, %v1964_v52  ;;  %v2051_v62 = vpop.f32.mrb[1].mxu0  ;;  %v8888_v52 = vld [vmem:[#allocation8 + $0x36c] ss:$24 sps:$4 sm:$0xff]  }
 0x1fa   :  { %v8219_v0 = vadd.f32 %v2051_v62, %v1966_v57  ;;  %v2053_v1 = vpop.f32.mrb[2].mxu0  ;;  %4234 = vmatpush1.bf16.msra.mxu0 %v8832_v49  ;;  %v8933_v49 = vld [vmem:[#allocation8 + $0x4e4] ss:$24 sps:$4 sm:$0xff]   ;;  %v8931_v57 = vld [vmem:[#allocation8 + $0x4e0] ss:$24 sps:$4 sm:$0xff]  }
 0x1fb   :  { %v8221_v3 = vadd.f32 %v2053_v1, %v1968_v60  ;;  %v2055_v4 = vpop.f32.mrb[3].mxu0  ;;  %4235 = vmatprep.subr.bf16.mxu0 %v8840_v51  ;;  %v2316_v53 = vmax.f32 %v8217_v61, 0.0  ;;  %v8880_v51 = vld [vmem:[#allocation8 + $0x338] ss:$24 sps:$4 sm:$0xff]   ;;  %v8939_v58 = vld [vmem:[#allocation8 + $0x514] ss:$24 sps:$4 sm:$0xff]  }
 0x1fc   :  { %v8223_v6 = vadd.f32 %v2055_v4, %v1970_v63  ;;  %v2317_v54 = vmax.f32 %v8219_v0, 0.0  ;;  %v8886_v60 = vld [vmem:[#allocation8 + $0x368] ss:$24 sps:$4 sm:$0xff]   ;;  %v8894_v61 = vld [vmem:[#allocation8 + $0x39c] ss:$24 sps:$4 sm:$0xff]  }
 0x1fd   :  { %v2322_v7 = vmax.f32 %v8221_v3, 0.0  ;;  %v8937_v62 = vld [vmem:[#allocation8 + $0x510] ss:$24 sps:$4 sm:$0xff]   ;;  %v8945_v63 = vld [vmem:[#allocation8 + $0x544] ss:$24 sps:$4 sm:$0xff]  }
 0x1fe   :  { %v2323_v9 = vmax.f32 %v8223_v6, 0.0  ;;  %4236 = vmatpush1.bf16.msra.mxu0 %v8838_v2  ;;  %v8892_v0 = vld [vmem:[#allocation8 + $0x398] ss:$24 sps:$4 sm:$0xff]   ;;  %v8900_v1 = vld [vmem:[#allocation8 + $0x3cc] ss:$24 sps:$4 sm:$0xff]  }
 0x1ff   :  { %v10195_v10 = vpack.c.bf16 %v2322_v7, %v2316_v53  ;;  %4237 = vmatprep.subr.bf16.mxu0 %v8846_v5  ;;  %v8943_v2 = vld [vmem:[#allocation8 + $0x540] ss:$24 sps:$4 sm:$0xff]   ;;  %v8951_v3 = vld [vmem:[#allocation8 + $0x574] ss:$24 sps:$4 sm:$0xff]   ;;  %v8949_v53 = vld [vmem:[#allocation8 + $0x570] ss:$24 sps:$4 sm:$0xff]  }
 0x200   :  { %v10197_v11 = vpack.c.bf16 %v2323_v9, %v2317_v54  ;;  %v8898_v4 = vld [vmem:[#allocation8 + $0x3c8] ss:$24 sps:$4 sm:$0xff]   ;;  %v8906_v5 = vld [vmem:[#allocation8 + $0x3fc] ss:$24 sps:$4 sm:$0xff]   ;;  %v8904_v6 = vld [vmem:[#allocation8 + $0x3f8] ss:$24 sps:$4 sm:$0xff]  }
 0x201   :  { %v8957_v7 = vld [vmem:[#allocation8 + $0x5a4] ss:$24 sps:$4 sm:$0xff]   ;;  %v8955_v54 = vld [vmem:[#allocation8 + $0x5a0] ss:$24 sps:$4 sm:$0xff]   ;;  %v8963_v9 = vld [vmem:[#allocation8 + $0x5d4] ss:$24 sps:$4 sm:$0xff]  }
 0x202   :  { %4126 = vmatprep.mubr.bf16.mxu1 %v10197_v11  ;;  %4238 = vmatpush1.bf16.msra.mxu0 %v8844_v8  ;;  %v8912_v8 = vld [vmem:[#allocation8 + $0x42c] ss:$24 sps:$4 sm:$0xff]  }
 0x203   :  { %4255 = vmatprep.mubr.bf16.mxu0 %v10197_v11  ;;  %4127 = vmatmul.mubr.bf16.vlgmr.msra.gmra.mrb[8].mxu1 %v10195_v10 }
 0x204   :  { %4239 = vmatprep.subr.bf16.mxu0 %v8849_v56  ;;  %4138 = vmatpush1.bf16.msra.mxu1 %v8871_v59  ;;  %v8910_v56 = vld [vmem:[#allocation8 + $0x428] ss:$24 sps:$4 sm:$0xff]   ;;  %v8918_v59 = vld [vmem:[#allocation8 + $0x45c] ss:$24 sps:$4 sm:$0xff]  }
 0x205   :  { %4139 = vmatprep.subr.bf16.mxu1 %v8879_v13  ;;  %v8961_v13 = vld [vmem:[#allocation8 + $0x5d0] ss:$24 sps:$4 sm:$0xff]  }
 0x206   :  { %4240 = vmatpush1.bf16.msra.mxu0 %v8847_v14  ;;  %v8969_v14 = vld [vmem:[#allocation8 + $0x604] ss:$24 sps:$4 sm:$0xff]  }
 0x207   :  { %4241 = vmatprep.subr.bf16.mxu0 %v8852_v16  ;;  %v8916_v16 = vld [vmem:[#allocation8 + $0x458] ss:$24 sps:$4 sm:$0xff]  }
 0x208   :  { %4140 = vmatpush1.bf16.msra.mxu1 %v8877_v17  ;;  %v8924_v17 = vld [vmem:[#allocation8 + $0x48c] ss:$24 sps:$4 sm:$0xff]  }
 0x209   :  { %4141 = vmatprep.subr.bf16.mxu1 %v8885_v18  ;;  %v8922_v18 = vld [vmem:[#allocation8 + $0x488] ss:$24 sps:$4 sm:$0xff]  }
 0x20a   :  { %4242 = vmatpush1.bf16.msra.mxu0 %v8850_v19  ;;  %v8930_v19 = vld [vmem:[#allocation8 + $0x4bc] ss:$24 sps:$4 sm:$0xff]  }
 0x20b   :  { %4243 = vmatprep.subr.bf16.mxu0 %v8855_v20  ;;  %v8928_v20 = vld [vmem:[#allocation8 + $0x4b8] ss:$24 sps:$4 sm:$0xff]  }
 0x20c   :  { %4142 = vmatpush1.bf16.msra.mxu1 %v8883_v21  ;;  %v8936_v21 = vld [vmem:[#allocation8 + $0x4ec] ss:$24 sps:$4 sm:$0xff]  }
 0x20d   :  { %4143 = vmatprep.subr.bf16.mxu1 %v8891_v22  ;;  %v8934_v22 = vld [vmem:[#allocation8 + $0x4e8] ss:$24 sps:$4 sm:$0xff]  }
 0x20e   :  { %4244 = vmatpush1.bf16.msra.mxu0 %v8853_v24  ;;  %v8942_v24 = vld [vmem:[#allocation8 + $0x51c] ss:$24 sps:$4 sm:$0xff]  }
 0x20f   :  { %4245 = vmatprep.subr.bf16.mxu0 %v8858_v25  ;;  %v8940_v25 = vld [vmem:[#allocation8 + $0x518] ss:$24 sps:$4 sm:$0xff]  }
 0x210   :  { %4144 = vmatpush1.bf16.msra.mxu1 %v8889_v26  ;;  %v8948_v26 = vld [vmem:[#allocation8 + $0x54c] ss:$24 sps:$4 sm:$0xff]  }
 0x211   :  { %4145 = vmatprep.subr.bf16.mxu1 %v8897_v27  ;;  %v8946_v27 = vld [vmem:[#allocation8 + $0x548] ss:$24 sps:$4 sm:$0xff]  }
 0x212   :  { %4246 = vmatpush1.bf16.msra.mxu0 %v8856_v28  ;;  %v8954_v28 = vld [vmem:[#allocation8 + $0x57c] ss:$24 sps:$4 sm:$0xff]  }
 0x213   :  { %4247 = vmatprep.subr.bf16.mxu0 %v8861_v29  ;;  %v8952_v29 = vld [vmem:[#allocation8 + $0x578] ss:$24 sps:$4 sm:$0xff]  }
 0x214   :  { %4146 = vmatpush1.bf16.msra.mxu1 %v8895_v30  ;;  %v8960_v30 = vld [vmem:[#allocation8 + $0x5ac] ss:$24 sps:$4 sm:$0xff]  }
 0x215   :  { %4147 = vmatprep.subr.bf16.mxu1 %v8903_v31  ;;  %v8958_v31 = vld [vmem:[#allocation8 + $0x5a8] ss:$24 sps:$4 sm:$0xff]  }
 0x216   :  { %4248 = vmatpush1.bf16.msra.mxu0 %v8859_v32  ;;  %v8966_v32 = vld [vmem:[#allocation8 + $0x5dc] ss:$24 sps:$4 sm:$0xff]  }
 0x217   :  { %4249 = vmatprep.subr.bf16.mxu0 %v8864_v33  ;;  %v8964_v33 = vld [vmem:[#allocation8 + $0x5d8] ss:$24 sps:$4 sm:$0xff]  }
 0x218   :  { %4148 = vmatpush1.bf16.msra.mxu1 %v8901_v34  ;;  %v8972_v34 = vld [vmem:[#allocation8 + $0x60c] ss:$24 sps:$4 sm:$0xff]  }
 0x219   :  { %4149 = vmatprep.subr.bf16.mxu1 %v8909_v35  ;;  %v10204_v35 = vsub.s32 2, %v10181_v15 }
 0x21a   :  { %4250 = vmatpush1.bf16.msra.mxu0 %v8862_v36  ;;  %v10207_v36 = vsub.s32 3, %v10181_v15 }
 0x21b   :  { %4251 = vmatprep.subr.bf16.mxu0 %v8867_v37  ;;  %v10209_v37 = vld [vmem:[#allocation7] sm:$0x3f] }
 0x21c   :  { %4150 = vmatpush1.bf16.msra.mxu1 %v8907_v38  ;;  %v470_v38 = vrot.slane %v10209_v37, %v10204_v35 }
 0x21d   :  { %4151 = vmatprep.subr.bf16.mxu1 %v8915_v39  ;;  %v474_v39 = vrot.slane %v10209_v37, %v10207_v36 }
 0x21e   :  { %4252 = vmatpush1.bf16.msra.mxu0 %v8865_v12 }
 0x21f   :  { %4253 = vmatprep.subr.bf16.mxu0 %v8870_v40 }
 0x220   :  { %4152 = vmatpush1.bf16.msra.mxu1 %v8913_v41 }
 0x221   :  { %4153 = vmatprep.subr.bf16.mxu1 %v8921_v50 }
 0x222   :  { %4254 = vmatpush1.bf16.msra.mxu0 %v8868_v42 }
 0x223   :  { %4266 = vmatprep.subr.bf16.mxu0 %v8876_v43 }
 0x224   :  { %4154 = vmatpush1.bf16.msra.mxu1 %v8919_v55 }
 0x225   :  { %4256 = vmatmul.mubr.bf16.vlgmr.msra.gmra.mrb[8].mxu0 %v10195_v10  ;;  %4155 = vmatprep.subr.bf16.mxu1 %v8927_v46 }
 0x226   :  { %4267 = vmatpush1.bf16.msra.mxu0 %v8874_v44 }
 0x227   :  { %4268 = vmatprep.subr.bf16.mxu0 %v8882_v47 }
 0x228   :  { %4156 = vmatpush1.bf16.msra.mxu1 %v8925_v48 }
 0x229   :  { %4157 = vmatprep.subr.bf16.mxu1 %v8933_v49 }
 0x22a   :  { %4269 = vmatpush1.bf16.msra.mxu0 %v8880_v51  ;;  %v8967_v51 = vld [vmem:[#allocation8 + $0x600] ss:$24 sps:$4 sm:$0xff]  }
 0x22b   :  { %4270 = vmatprep.subr.bf16.mxu0 %v8888_v52  ;;  %v8970_v52 = vld [vmem:[#allocation8 + $0x608] ss:$24 sps:$4 sm:$0xff]  }
 0x22c   :  { %4158 = vmatpush1.bf16.msra.mxu1 %v8931_v57 }
 0x22d   :  { %4159 = vmatprep.subr.bf16.mxu1 %v8939_v58  ;;  %v8975_v58 = vld [vmem:[#allocation8 + $0x634] ss:$24 sps:$4 sm:$0xff]  }
 0x22e   :  { %4271 = vmatpush1.bf16.msra.mxu0 %v8886_v60 }
 0x22f   :  { %4272 = vmatprep.subr.bf16.mxu0 %v8894_v61  ;;  %v8978_v61 = vld [vmem:[#allocation8 + $0x63c] ss:$24 sps:$4 sm:$0xff]  }
 0x230   :  { %4160 = vmatpush1.bf16.msra.mxu1 %v8937_v62  ;;  %v8973_v62 = vld [vmem:[#allocation8 + $0x630] ss:$24 sps:$4 sm:$0xff]  }
 0x231   :  { %4161 = vmatprep.subr.bf16.mxu1 %v8945_v63  ;;  %v8976_v63 = vld [vmem:[#allocation8 + $0x638] ss:$24 sps:$4 sm:$0xff]  }
 0x232   :  { %4273 = vmatpush1.bf16.msra.mxu0 %v8892_v0  ;;  %v8981_v0 = vld [vmem:[#allocation8 + $0x664] ss:$24 sps:$4 sm:$0xff]  }
 0x233   :  { %4274 = vmatprep.subr.bf16.mxu0 %v8900_v1  ;;  %v8984_v1 = vld [vmem:[#allocation8 + $0x66c] ss:$24 sps:$4 sm:$0xff]  }
 0x234   :  { %4162 = vmatpush1.bf16.msra.mxu1 %v8943_v2  ;;  %v8979_v2 = vld [vmem:[#allocation8 + $0x660] ss:$24 sps:$4 sm:$0xff]  }
 0x235   :  { %4163 = vmatprep.subr.bf16.mxu1 %v8951_v3  ;;  %v8982_v3 = vld [vmem:[#allocation8 + $0x668] ss:$24 sps:$4 sm:$0xff]  }
 0x236   :  { %4275 = vmatpush1.bf16.msra.mxu0 %v8898_v4  ;;  %v8987_v4 = vld [vmem:[#allocation8 + $0x694] ss:$24 sps:$4 sm:$0xff]  }
 0x237   :  { %4276 = vmatprep.subr.bf16.mxu0 %v8906_v5  ;;  %v8990_v5 = vld [vmem:[#allocation8 + $0x69c] ss:$24 sps:$4 sm:$0xff]  }
 0x238   :  { %4164 = vmatpush1.bf16.msra.mxu1 %v8949_v53  ;;  %v8988_v53 = vld [vmem:[#allocation8 + $0x698] ss:$24 sps:$4 sm:$0xff]  }
 0x239   :  { %4165 = vmatprep.subr.bf16.mxu1 %v8957_v7  ;;  %v8993_v7 = vld [vmem:[#allocation8 + $0x6c4] ss:$24 sps:$4 sm:$0xff]  }
 0x23a   :  { %4277 = vmatpush1.bf16.msra.mxu0 %v8904_v6  ;;  %v8985_v6 = vld [vmem:[#allocation8 + $0x690] ss:$24 sps:$4 sm:$0xff]  }
 0x23b   :  { %4278 = vmatprep.subr.bf16.mxu0 %v8912_v8  ;;  %v8996_v8 = vld [vmem:[#allocation8 + $0x6cc] ss:$24 sps:$4 sm:$0xff]  }
 0x23c   :  { %4166 = vmatpush1.bf16.msra.mxu1 %v8955_v54  ;;  %v8991_v54 = vld [vmem:[#allocation8 + $0x6c0] ss:$24 sps:$4 sm:$0xff]  }
 0x23d   :  { %4167 = vmatprep.subr.bf16.mxu1 %v8963_v9  ;;  %v8994_v9 = vld [vmem:[#allocation8 + $0x6c8] ss:$24 sps:$4 sm:$0xff]  }
 0x23e   :  { %4279 = vmatpush1.bf16.msra.mxu0 %v8910_v56  ;;  %v8999_v56 = vld [vmem:[#allocation8 + $0x6f4] ss:$24 sps:$4 sm:$0xff]  }
 0x23f   :  { %4280 = vmatprep.subr.bf16.mxu0 %v8918_v59  ;;  %v9002_v59 = vld [vmem:[#allocation8 + $0x6fc] ss:$24 sps:$4 sm:$0xff]  }
 0x240   :  { %4168 = vmatpush1.bf16.msra.mxu1 %v8961_v13  ;;  %v8997_v13 = vld [vmem:[#allocation8 + $0x6f0] ss:$24 sps:$4 sm:$0xff]  }
 0x241   :  { %4180 = vmatprep.subr.bf16.mxu1 %v8969_v14  ;;  %v9000_v14 = vld [vmem:[#allocation8 + $0x6f8] ss:$24 sps:$4 sm:$0xff]  }
 0x242   :  { %4281 = vmatpush1.bf16.msra.mxu0 %v8916_v16  ;;  %v9005_v16 = vld [vmem:[#allocation8 + $0x724] ss:$24 sps:$4 sm:$0xff]  }
 0x243   :  { %4282 = vmatprep.subr.bf16.mxu0 %v8924_v17  ;;  %v9008_v17 = vld [vmem:[#allocation8 + $0x72c] ss:$24 sps:$4 sm:$0xff]  }
 0x246   :  { %4283 = vmatpush1.bf16.msra.mxu0 %v8922_v18  ;;  %v9003_v18 = vld [vmem:[#allocation8 + $0x720] ss:$24 sps:$4 sm:$0xff]  }
 0x247   :  { %4284 = vmatprep.subr.bf16.mxu0 %v8930_v19  ;;  %v9006_v19 = vld [vmem:[#allocation8 + $0x728] ss:$24 sps:$4 sm:$0xff]  }
 0x24a   :  { %4285 = vmatpush1.bf16.msra.mxu0 %v8928_v20  ;;  %v9011_v20 = vld [vmem:[#allocation8 + $0x754] ss:$24 sps:$4 sm:$0xff]  }
 0x24b   :  { %4286 = vmatprep.subr.bf16.mxu0 %v8936_v21  ;;  %v9014_v21 = vld [vmem:[#allocation8 + $0x75c] ss:$24 sps:$4 sm:$0xff]  }
 0x24e   :  { %4287 = vmatpush1.bf16.msra.mxu0 %v8934_v22  ;;  %v9009_v22 = vld [vmem:[#allocation8 + $0x750] ss:$24 sps:$4 sm:$0xff]  }
 0x24f   :  { %4288 = vmatprep.subr.bf16.mxu0 %v8942_v24  ;;  %v9012_v24 = vld [vmem:[#allocation8 + $0x758] ss:$24 sps:$4 sm:$0xff]  }
 0x252   :  { %4289 = vmatpush1.bf16.msra.mxu0 %v8940_v25  ;;  %v9017_v25 = vld [vmem:[#allocation8 + $0x784] ss:$24 sps:$4 sm:$0xff]  }
 0x253   :  { %4290 = vmatprep.subr.bf16.mxu0 %v8948_v26  ;;  %v9020_v26 = vld [vmem:[#allocation8 + $0x78c] ss:$24 sps:$4 sm:$0xff]  }
 0x256   :  { %4291 = vmatpush1.bf16.msra.mxu0 %v8946_v27  ;;  %v9015_v27 = vld [vmem:[#allocation8 + $0x780] ss:$24 sps:$4 sm:$0xff]  }
 0x257   :  { %4292 = vmatprep.subr.bf16.mxu0 %v8954_v28  ;;  %v9018_v28 = vld [vmem:[#allocation8 + $0x788] ss:$24 sps:$4 sm:$0xff]  }
 0x25a   :  { %4293 = vmatpush1.bf16.msra.mxu0 %v8952_v29  ;;  %v9023_v29 = vld [vmem:[#allocation8 + $0x7b4] ss:$24 sps:$4 sm:$0xff]  }
 0x25b   :  { %4294 = vmatprep.subr.bf16.mxu0 %v8960_v30  ;;  %v9026_v30 = vld [vmem:[#allocation8 + $0x7bc] ss:$24 sps:$4 sm:$0xff]  }
 0x25e   :  { %4295 = vmatpush1.bf16.msra.mxu0 %v8958_v31  ;;  %v9021_v31 = vld [vmem:[#allocation8 + $0x7b0] ss:$24 sps:$4 sm:$0xff]  }
 0x25f   :  { %4296 = vmatprep.subr.bf16.mxu0 %v8966_v32  ;;  %v9024_v32 = vld [vmem:[#allocation8 + $0x7b8] ss:$24 sps:$4 sm:$0xff]  }
 0x262   :  { %4297 = vmatpush1.bf16.msra.mxu0 %v8964_v33  ;;  %v9029_v33 = vld [vmem:[#allocation8 + $0x7e4] ss:$24 sps:$4 sm:$0xff]  }
 0x263   :  { %4309 = vmatprep.subr.bf16.mxu0 %v8972_v34  ;;  %v9032_v34 = vld [vmem:[#allocation8 + $0x7ec] ss:$24 sps:$4 sm:$0xff]  }
 0x277   :  { %v2178_v12 = vpop.f32.mrb[4].mxu1 }
 0x278   :  { %v8224_v40 = vadd.f32 %v2178_v12, %v470_v38  ;;  %v2180_v41 = vpop.f32.mrb[5].mxu1  ;;  %v9035_v12 = vld [vmem:[#allocation8 + $0x814] ss:$24 sps:$4 sm:$0xff]  }
 0x279   :  { %v8225_v50 = vadd.f32 %v2180_v41, %v474_v39  ;;  %v2182_v42 = vpop.f32.mrb[6].mxu1  ;;  %v9033_v41 = vld [vmem:[#allocation8 + $0x810] ss:$24 sps:$4 sm:$0xff]  }
 0x27a   :  { %v8226_v43 = vadd.f32 %v2182_v42, %v470_v38  ;;  %v2184_v55 = vpop.f32.mrb[7].mxu1  ;;  %v2318_v44 = vmax.f32 %v8224_v40, 0.0  ;;  %v9027_v38 = vld [vmem:[#allocation8 + $0x7e0] ss:$24 sps:$4 sm:$0xff]   ;;  %v9038_v40 = vld [vmem:[#allocation8 + $0x81c] ss:$24 sps:$4 sm:$0xff]  }
 0x27b   :  { %v8227_v46 = vadd.f32 %v2184_v55, %v474_v39  ;;  %v2319_v48 = vmax.f32 %v8225_v50, 0.0  ;;  %v9030_v39 = vld [vmem:[#allocation8 + $0x7e8] ss:$24 sps:$4 sm:$0xff]   ;;  %v9036_v50 = vld [vmem:[#allocation8 + $0x818] ss:$24 sps:$4 sm:$0xff]  }
 0x27c   :  { %v2324_v47 = vmax.f32 %v8226_v43, 0.0  ;;  %v9041_v42 = vld [vmem:[#allocation8 + $0x844] ss:$24 sps:$4 sm:$0xff]   ;;  %v9039_v55 = vld [vmem:[#allocation8 + $0x840] ss:$24 sps:$4 sm:$0xff]  }
 0x27d   :  { %v2325_v49 = vmax.f32 %v8227_v46, 0.0  ;;  %v9044_v43 = vld [vmem:[#allocation8 + $0x84c] ss:$24 sps:$4 sm:$0xff]   ;;  %v9042_v46 = vld [vmem:[#allocation8 + $0x848] ss:$24 sps:$4 sm:$0xff]  }
 0x27e   :  { %v10215_v57 = vpack.c.bf16 %v2324_v47, %v2318_v44  ;;  %v9047_v44 = vld [vmem:[#allocation8 + $0x874] ss:$24 sps:$4 sm:$0xff]  }
 0x27f   :  { %v10217_v60 = vpack.c.bf16 %v2325_v49, %v2319_v48  ;;  %v9050_v47 = vld [vmem:[#allocation8 + $0x87c] ss:$24 sps:$4 sm:$0xff]   ;;  %v10224_v48 = vsub.s32 4, %v10181_v15  ;;  %v10227_v49 = vsub.s32 5, %v10181_v15  ;;  %v9054_v15 = vld [vmem:[#allocation8 + $0x8a8] ss:$24 sps:$4 sm:$0xff]  }
 0x281   :  { %4169 = vmatprep.mubr.bf16.mxu1 %v10217_v60  ;;  %4298 = vmatprep.mubr.bf16.mxu0 %v10217_v60 }
 0x282   :  { %4170 = vmatmul.mubr.bf16.vlgmr.msra.gmra.mrb[8].mxu1 %v10215_v57  ;;  %4299 = vmatmul.mubr.bf16.vlgmr.msra.gmra.mrb[8].mxu0 %v10215_v57 }
 0x283   :  { %4181 = vmatpush1.bf16.msra.mxu1 %v8967_v51  ;;  %4310 = vmatpush1.bf16.msra.mxu0 %v8970_v52  ;;  %v9045_v51 = vld [vmem:[#allocation8 + $0x870] ss:$24 sps:$4 sm:$0xff]  }
 0x284   :  { %4182 = vmatprep.subr.bf16.mxu1 %v8975_v58  ;;  %4311 = vmatprep.subr.bf16.mxu0 %v8978_v61  ;;  %v9048_v52 = vld [vmem:[#allocation8 + $0x878] ss:$24 sps:$4 sm:$0xff]   ;;  %v478_v58 = vrot.slane %v10209_v37, %v10224_v48  ;;  %v9053_v61 = vld [vmem:[#allocation8 + $0x8a4] ss:$24 sps:$4 sm:$0xff]  }
 0x287   :  { %4183 = vmatpush1.bf16.msra.mxu1 %v8973_v62  ;;  %4312 = vmatpush1.bf16.msra.mxu0 %v8976_v63  ;;  %v9056_v62 = vld [vmem:[#allocation8 + $0x8ac] ss:$24 sps:$4 sm:$0xff]   ;;  %v482_v63 = vrot.slane %v10209_v37, %v10227_v49  ;;  %v9060_v37 = vld [vmem:[#allocation8 + $0x8d8] ss:$24 sps:$4 sm:$0xff]  }
 0x288   :  { %4184 = vmatprep.subr.bf16.mxu1 %v8981_v0  ;;  %4313 = vmatprep.subr.bf16.mxu0 %v8984_v1  ;;  %v9051_v1 = vld [vmem:[#allocation8 + $0x8a0] ss:$24 sps:$4 sm:$0xff]  }
 0x28b   :  { %4185 = vmatpush1.bf16.msra.mxu1 %v8979_v2  ;;  %4314 = vmatpush1.bf16.msra.mxu0 %v8982_v3 }
 0x28c   :  { %4186 = vmatprep.subr.bf16.mxu1 %v8987_v4  ;;  %4315 = vmatprep.subr.bf16.mxu0 %v8990_v5  ;;  %v9059_v4 = vld [vmem:[#allocation8 + $0x8d4] ss:$24 sps:$4 sm:$0xff]  }
 0x28d   :  { %v9062_v5 = vld [vmem:[#allocation8 + $0x8dc] ss:$24 sps:$4 sm:$0xff]  }
 0x28f   :  { %4187 = vmatpush1.bf16.msra.mxu1 %v8985_v6  ;;  %4316 = vmatpush1.bf16.msra.mxu0 %v8988_v53 }
 0x290   :  { %4188 = vmatprep.subr.bf16.mxu1 %v8993_v7  ;;  %4317 = vmatprep.subr.bf16.mxu0 %v8996_v8 }
 0x293   :  { %4189 = vmatpush1.bf16.msra.mxu1 %v8991_v54  ;;  %4318 = vmatpush1.bf16.msra.mxu0 %v8994_v9  ;;  %v9057_v9 = vld [vmem:[#allocation8 + $0x8d0] ss:$24 sps:$4 sm:$0xff]  }
 0x294   :  { %4190 = vmatprep.subr.bf16.mxu1 %v8999_v56  ;;  %4319 = vmatprep.subr.bf16.mxu0 %v9002_v59 }
 0x297   :  { %4191 = vmatpush1.bf16.msra.mxu1 %v8997_v13  ;;  %4320 = vmatpush1.bf16.msra.mxu0 %v9000_v14  ;;  %v9065_v13 = vld [vmem:[#allocation8 + $0x14] ss:$24 sps:$4 sm:$0xff]  }
 0x298   :  { %4192 = vmatprep.subr.bf16.mxu1 %v9005_v16  ;;  %4321 = vmatprep.subr.bf16.mxu0 %v9008_v17 }
 0x29b   :  { %4193 = vmatpush1.bf16.msra.mxu1 %v9003_v18  ;;  %4322 = vmatpush1.bf16.msra.mxu0 %v9006_v19  ;;  %v9063_v19 = vld [vmem:[#allocation8 + $0x10] ss:$24 sps:$4 sm:$0xff]  }
 0x29c   :  { %4194 = vmatprep.subr.bf16.mxu1 %v9011_v20  ;;  %4323 = vmatprep.subr.bf16.mxu0 %v9014_v21  ;;  %v9068_v20 = vld [vmem:[#allocation8 + $0x44] ss:$24 sps:$4 sm:$0xff]   ;;  %v9066_v21 = vld [vmem:[#allocation8 + $0x40] ss:$24 sps:$4 sm:$0xff]  }
 0x29f   :  { %4195 = vmatpush1.bf16.msra.mxu1 %v9009_v22  ;;  %4324 = vmatpush1.bf16.msra.mxu0 %v9012_v24  ;;  %v9071_v22 = vld [vmem:[#allocation8 + $0x74] ss:$24 sps:$4 sm:$0xff]   ;;  %v9069_v24 = vld [vmem:[#allocation8 + $0x70] ss:$24 sps:$4 sm:$0xff]  }
 0x2a0   :  { %4196 = vmatprep.subr.bf16.mxu1 %v9017_v25  ;;  %4325 = vmatprep.subr.bf16.mxu0 %v9020_v26  ;;  %v9074_v25 = vld [vmem:[#allocation8 + $0xa4] ss:$24 sps:$4 sm:$0xff]   ;;  %v9072_v26 = vld [vmem:[#allocation8 + $0xa0] ss:$24 sps:$4 sm:$0xff]  }
 0x2a3   :  { %4197 = vmatpush1.bf16.msra.mxu1 %v9015_v27  ;;  %4326 = vmatpush1.bf16.msra.mxu0 %v9018_v28  ;;  %v9077_v27 = vld [vmem:[#allocation8 + $0xd4] ss:$24 sps:$4 sm:$0xff]   ;;  %v9075_v28 = vld [vmem:[#allocation8 + $0xd0] ss:$24 sps:$4 sm:$0xff]  }
 0x2a4   :  { %4198 = vmatprep.subr.bf16.mxu1 %v9023_v29  ;;  %4327 = vmatprep.subr.bf16.mxu0 %v9026_v30  ;;  %v9080_v29 = vld [vmem:[#allocation8 + $0x104] ss:$24 sps:$4 sm:$0xff]   ;;  %v9078_v30 = vld [vmem:[#allocation8 + $0x100] ss:$24 sps:$4 sm:$0xff]  }
 0x2a7   :  { %4199 = vmatpush1.bf16.msra.mxu1 %v9021_v31  ;;  %4328 = vmatpush1.bf16.msra.mxu0 %v9024_v32  ;;  %v9083_v31 = vld [vmem:[#allocation8 + $0x134] ss:$24 sps:$4 sm:$0xff]   ;;  %v9086_v32 = vld [vmem:[#allocation8 + $0x164] ss:$24 sps:$4 sm:$0xff]  }
 0x2a8   :  { %4200 = vmatprep.subr.bf16.mxu1 %v9029_v33  ;;  %4329 = vmatprep.subr.bf16.mxu0 %v9032_v34  ;;  %v9084_v33 = vld [vmem:[#allocation8 + $0x160] ss:$24 sps:$4 sm:$0xff]   ;;  %v9089_v34 = vld [vmem:[#allocation8 + $0x194] ss:$24 sps:$4 sm:$0xff]  }
 0x2ab   :  { %4201 = vmatpush1.bf16.msra.mxu1 %v9027_v38  ;;  %4330 = vmatpush1.bf16.msra.mxu0 %v9030_v39  ;;  %v9185_v38 = vld [vmem:[#allocation11 + $0x4] ss:$24 sps:$4 sm:$0xff]  }
 0x2ac   :  { %4202 = vmatprep.subr.bf16.mxu1 %v9035_v12  ;;  %4331 = vmatprep.subr.bf16.mxu0 %v9038_v40  ;;  %v9087_v39 = vld [vmem:[#allocation8 + $0x190] ss:$24 sps:$4 sm:$0xff]   ;;  %v9092_v40 = vld [vmem:[#allocation8 + $0x1c4] ss:$24 sps:$4 sm:$0xff]  }
 0x2ad   :  { %v9183_v12 = vld [vmem:[#allocation11] ss:$24 sps:$4 sm:$0xff]  }
 0x2af   :  { %4203 = vmatpush1.bf16.msra.mxu1 %v9033_v41  ;;  %4332 = vmatpush1.bf16.msra.mxu0 %v9036_v50  ;;  %v9191_v41 = vld [vmem:[#allocation11 + $0x34] ss:$24 sps:$4 sm:$0xff]  }
 0x2b0   :  { %4204 = vmatprep.subr.bf16.mxu1 %v9041_v42  ;;  %4333 = vmatprep.subr.bf16.mxu0 %v9044_v43  ;;  %v9090_v50 = vld [vmem:[#allocation8 + $0x1c0] ss:$24 sps:$4 sm:$0xff]   ;;  %v9095_v43 = vld [vmem:[#allocation8 + $0x1f4] ss:$24 sps:$4 sm:$0xff]  }
 0x2b1   :  { %v9189_v42 = vld [vmem:[#allocation11 + $0x30] ss:$24 sps:$4 sm:$0xff]  }
 0x2b3   :  { %4205 = vmatpush1.bf16.msra.mxu1 %v9039_v55  ;;  %4334 = vmatpush1.bf16.msra.mxu0 %v9042_v46  ;;  %v9197_v55 = vld [vmem:[#allocation11 + $0x64] ss:$24 sps:$4 sm:$0xff]  }
 0x2b4   :  { %4206 = vmatprep.subr.bf16.mxu1 %v9047_v44  ;;  %4335 = vmatprep.subr.bf16.mxu0 %v9050_v47  ;;  %v9093_v46 = vld [vmem:[#allocation8 + $0x1f0] ss:$24 sps:$4 sm:$0xff]   ;;  %v9098_v47 = vld [vmem:[#allocation8 + $0x224] ss:$24 sps:$4 sm:$0xff]  }
 0x2b5   :  { %v9195_v44 = vld [vmem:[#allocation11 + $0x60] ss:$24 sps:$4 sm:$0xff]  }
 0x2b7   :  { %4207 = vmatpush1.bf16.msra.mxu1 %v9045_v51  ;;  %4336 = vmatpush1.bf16.msra.mxu0 %v9048_v52  ;;  %v9203_v51 = vld [vmem:[#allocation11 + $0x94] ss:$24 sps:$4 sm:$0xff]  }
 0x2b8   :  { %v2307_v0 = vpop.f32.mrb[4].mxu0  ;;  %4208 = vmatprep.subr.bf16.mxu1 %v9053_v61  ;;  %4337 = vmatprep.subr.bf16.mxu0 %v9056_v62  ;;  %v9096_v52 = vld [vmem:[#allocation8 + $0x220] ss:$24 sps:$4 sm:$0xff]   ;;  %v9101_v61 = vld [vmem:[#allocation8 + $0x254] ss:$24 sps:$4 sm:$0xff]  }
 0x2b9   :  { %v8228_v2 = vadd.f32 %v2307_v0, %v478_v58  ;;  %v2309_v3 = vpop.f32.mrb[5].mxu0  ;;  %v9209_v62 = vld [vmem:[#allocation11 + $0xc4] ss:$24 sps:$4 sm:$0xff]   ;;  %v9207_v0 = vld [vmem:[#allocation11 + $0xc0] ss:$24 sps:$4 sm:$0xff]  }
 0x2ba   :  { %v8229_v6 = vadd.f32 %v2309_v3, %v482_v63  ;;  %v2311_v53 = vpop.f32.mrb[6].mxu0  ;;  %v9213_v3 = vld [vmem:[#allocation11 + $0xf0] ss:$24 sps:$4 sm:$0xff]  }
 0x2bb   :  { %v8230_v7 = vadd.f32 %v2311_v53, %v478_v58  ;;  %v2313_v8 = vpop.f32.mrb[7].mxu0  ;;  %4209 = vmatpush1.bf16.msra.mxu1 %v9051_v1  ;;  %4338 = vmatpush1.bf16.msra.mxu0 %v9054_v15  ;;  %v2320_v56 = vmax.f32 %v8228_v2, 0.0  ;;  %v9201_v58 = vld [vmem:[#allocation11 + $0x90] ss:$24 sps:$4 sm:$0xff]   ;;  %v9104_v1 = vld [vmem:[#allocation8 + $0x284] ss:$24 sps:$4 sm:$0xff]  }
 0x2bc   :  { %v8231_v54 = vadd.f32 %v2313_v8, %v482_v63  ;;  %4210 = vmatprep.subr.bf16.mxu1 %v9059_v4  ;;  %4339 = vmatprep.subr.bf16.mxu0 %v9062_v5  ;;  %v2321_v14 = vmax.f32 %v8229_v6, 0.0  ;;  %v9099_v63 = vld [vmem:[#allocation8 + $0x250] ss:$24 sps:$4 sm:$0xff]   ;;  %v9102_v2 = vld [vmem:[#allocation8 + $0x280] ss:$24 sps:$4 sm:$0xff]  }
 0x2bd   :  { %v2326_v59 = vmax.f32 %v8230_v7, 0.0  ;;  %v9215_v15 = vld [vmem:[#allocation11 + $0xf4] ss:$24 sps:$4 sm:$0xff]   ;;  %v9221_v5 = vld [vmem:[#allocation11 + $0x124] ss:$24 sps:$4 sm:$0xff]  }
 0x2be   :  { %v2327_v16 = vmax.f32 %v8231_v54, 0.0  ;;  %v9107_v4 = vld [vmem:[#allocation8 + $0x2b4] ss:$24 sps:$4 sm:$0xff]   ;;  %v9105_v6 = vld [vmem:[#allocation8 + $0x2b0] ss:$24 sps:$4 sm:$0xff]  }
 0x2bf   :  { %v10233_v17 = vpack.c.bf16 %v2326_v59, %v2320_v56  ;;  %4211 = vmatpush1.bf16.msra.mxu1 %v9057_v9  ;;  %4340 = vmatpush1.bf16.msra.mxu0 %v9060_v37  ;;  %v9219_v53 = vld [vmem:[#allocation11 + $0x120] ss:$24 sps:$4 sm:$0xff]   ;;  %v9227_v8 = vld [vmem:[#allocation11 + $0x154] ss:$24 sps:$4 sm:$0xff]   ;;  %v9225_v9 = vld [vmem:[#allocation11 + $0x150] ss:$24 sps:$4 sm:$0xff]  }
 0x2c0   :  { %v10235_v18 = vpack.c.bf16 %v2327_v16, %v2321_v14  ;;  %4352 = vmatprep.subr.bf16.mxu1 %v9065_v13  ;;  %6259 = vmatprep.subr.bf16.mxu0 %v9185_v38  ;;  %v9110_v7 = vld [vmem:[#allocation8 + $0x2e4] ss:$24 sps:$4 sm:$0xff]   ;;  %v9108_v54 = vld [vmem:[#allocation8 + $0x2e0] ss:$24 sps:$4 sm:$0xff]   ;;  %v9113_v37 = vld [vmem:[#allocation8 + $0x314] ss:$24 sps:$4 sm:$0xff]  }
 0x2c1   :  { %v9233_v56 = vld [vmem:[#allocation11 + $0x184] ss:$24 sps:$4 sm:$0xff]   ;;  %v9231_v13 = vld [vmem:[#allocation11 + $0x180] ss:$24 sps:$4 sm:$0xff]   ;;  %v9239_v16 = vld [vmem:[#allocation11 + $0x1b4] ss:$24 sps:$4 sm:$0xff]  }
 0x2c2   :  { %4212 = vmatprep.mubr.bf16.mxu1 %v10235_v18  ;;  %4341 = vmatprep.mubr.bf16.mxu0 %v10235_v18  ;;  %v9111_v59 = vld [vmem:[#allocation8 + $0x310] ss:$24 sps:$4 sm:$0xff]   ;;  %v9116_v14 = vld [vmem:[#allocation8 + $0x344] ss:$24 sps:$4 sm:$0xff]   ;;  %v9131_v38 = vld [vmem:[#allocation8 + $0x434] ss:$24 sps:$4 sm:$0xff]  }
 0x2c3   :  { %4213 = vmatmul.mubr.bf16.vlgmr.msra.gmra.mrb[8].mxu1 %v10233_v17  ;;  %4342 = vmatmul.mubr.bf16.vlgmr.msra.gmra.mrb[8].mxu0 %v10233_v17 }
 0x2c4   :  { %4353 = vmatpush1.bf16.msra.mxu1 %v9063_v19  ;;  %4384 = vmatprep.mubr.bf16.mxu1 %v10197_v11  ;;  %v9081_v11 = vld [vmem:[#allocation8 + $0x130] ss:$24 sps:$4 sm:$0xff]   ;;  %v9114_v19 = vld [vmem:[#allocation8 + $0x340] ss:$24 sps:$4 sm:$0xff]  }
 0x2c5   :  { %4354 = vmatprep.subr.bf16.mxu1 %v9068_v20  ;;  %6260 = vmatpush1.bf16.msra.mxu0 %v9183_v12  ;;  %v9237_v20 = vld [vmem:[#allocation11 + $0x1b0] ss:$24 sps:$4 sm:$0xff]  }
 0x2c6   :  { %6261 = vmatprep.subr.bf16.mxu0 %v9191_v41  ;;  %v9129_v12 = vld [vmem:[#allocation8 + $0x430] ss:$24 sps:$4 sm:$0xff]   ;;  %v9134_v41 = vld [vmem:[#allocation8 + $0x464] ss:$24 sps:$4 sm:$0xff]  }
 0x2c8   :  { %4355 = vmatpush1.bf16.msra.mxu1 %v9066_v21  ;;  %v9119_v21 = vld [vmem:[#allocation8 + $0x374] ss:$24 sps:$4 sm:$0xff]  }
 0x2c9   :  { %4356 = vmatprep.subr.bf16.mxu1 %v9071_v22  ;;  %6262 = vmatpush1.bf16.msra.mxu0 %v9189_v42  ;;  %v9245_v22 = vld [vmem:[#allocation11 + $0x1e4] ss:$24 sps:$4 sm:$0xff]  }
 0x2ca   :  { %6263 = vmatprep.subr.bf16.mxu0 %v9197_v55  ;;  %v9132_v42 = vld [vmem:[#allocation8 + $0x460] ss:$24 sps:$4 sm:$0xff]   ;;  %v9137_v55 = vld [vmem:[#allocation8 + $0x494] ss:$24 sps:$4 sm:$0xff]  }
 0x2cc   :  { %4357 = vmatpush1.bf16.msra.mxu1 %v9069_v24  ;;  %v9117_v24 = vld [vmem:[#allocation8 + $0x370] ss:$24 sps:$4 sm:$0xff]  }
 0x2cd   :  { %4358 = vmatprep.subr.bf16.mxu1 %v9074_v25  ;;  %6264 = vmatpush1.bf16.msra.mxu0 %v9195_v44  ;;  %v9243_v25 = vld [vmem:[#allocation11 + $0x1e0] ss:$24 sps:$4 sm:$0xff]  }
 0x2ce   :  { %6265 = vmatprep.subr.bf16.mxu0 %v9203_v51  ;;  %v9135_v44 = vld [vmem:[#allocation8 + $0x490] ss:$24 sps:$4 sm:$0xff]   ;;  %v9138_v51 = vld [vmem:[#allocation8 + $0x4c0] ss:$24 sps:$4 sm:$0xff]  }
 0x2d0   :  { %4359 = vmatpush1.bf16.msra.mxu1 %v9072_v26  ;;  %v9122_v26 = vld [vmem:[#allocation8 + $0x3a4] ss:$24 sps:$4 sm:$0xff]  }
 0x2d1   :  { %4360 = vmatprep.subr.bf16.mxu1 %v9077_v27  ;;  %6266 = vmatpush1.bf16.msra.mxu0 %v9201_v58  ;;  %v9251_v27 = vld [vmem:[#allocation11 + $0x214] ss:$24 sps:$4 sm:$0xff]  }
 0x2d2   :  { %6267 = vmatprep.subr.bf16.mxu0 %v9209_v62  ;;  %v9141_v58 = vld [vmem:[#allocation8 + $0x4f0] ss:$24 sps:$4 sm:$0xff]   ;;  %v9144_v62 = vld [vmem:[#allocation8 + $0x520] ss:$24 sps:$4 sm:$0xff]  }
 0x2d4   :  { %4361 = vmatpush1.bf16.msra.mxu1 %v9075_v28  ;;  %v9249_v28 = vld [vmem:[#allocation11 + $0x210] ss:$24 sps:$4 sm:$0xff]  }
 0x2d5   :  { %4362 = vmatprep.subr.bf16.mxu1 %v9080_v29  ;;  %6268 = vmatpush1.bf16.msra.mxu0 %v9207_v0  ;;  %v9257_v29 = vld [vmem:[#allocation11 + $0x244] ss:$24 sps:$4 sm:$0xff]  }
 0x2d6   :  { %6269 = vmatprep.subr.bf16.mxu0 %v9215_v15  ;;  %v9147_v0 = vld [vmem:[#allocation8 + $0x550] ss:$24 sps:$4 sm:$0xff]   ;;  %v9150_v15 = vld [vmem:[#allocation8 + $0x580] ss:$24 sps:$4 sm:$0xff]  }
 0x2d8   :  { %4363 = vmatpush1.bf16.msra.mxu1 %v9078_v30  ;;  %v9123_v30 = vld [vmem:[#allocation8 + $0x3d0] ss:$24 sps:$4 sm:$0xff]  }
 0x2d9   :  { %4364 = vmatprep.subr.bf16.mxu1 %v9083_v31  ;;  %6270 = vmatpush1.bf16.msra.mxu0 %v9213_v3  ;;  %v9255_v31 = vld [vmem:[#allocation11 + $0x240] ss:$24 sps:$4 sm:$0xff]  }
 0x2da   :  { %6271 = vmatprep.subr.bf16.mxu0 %v9221_v5  ;;  %v9153_v3 = vld [vmem:[#allocation8 + $0x5b0] ss:$24 sps:$4 sm:$0xff]   ;;  %v9156_v5 = vld [vmem:[#allocation8 + $0x5e0] ss:$24 sps:$4 sm:$0xff]  }
 0x2dc   :  { %4365 = vmatpush1.bf16.msra.mxu1 %v9081_v11  ;;  %v9128_v11 = vld [vmem:[#allocation8 + $0x404] ss:$24 sps:$4 sm:$0xff]  }
 0x2dd   :  { %4366 = vmatprep.subr.bf16.mxu1 %v9086_v32  ;;  %6272 = vmatpush1.bf16.msra.mxu0 %v9219_v53  ;;  %v9263_v32 = vld [vmem:[#allocation11 + $0x274] ss:$24 sps:$4 sm:$0xff]  }
 0x2de   :  { %6273 = vmatprep.subr.bf16.mxu0 %v9227_v8  ;;  %v9159_v53 = vld [vmem:[#allocation8 + $0x610] ss:$24 sps:$4 sm:$0xff]   ;;  %v9162_v8 = vld [vmem:[#allocation8 + $0x640] ss:$24 sps:$4 sm:$0xff]  }
 0x2e0   :  { %4367 = vmatpush1.bf16.msra.mxu1 %v9084_v33  ;;  %v9126_v33 = vld [vmem:[#allocation8 + $0x400] ss:$24 sps:$4 sm:$0xff]  }
 0x2e1   :  { %4368 = vmatprep.subr.bf16.mxu1 %v9089_v34  ;;  %6274 = vmatpush1.bf16.msra.mxu0 %v9225_v9  ;;  %v9261_v34 = vld [vmem:[#allocation11 + $0x270] ss:$24 sps:$4 sm:$0xff]  }
 0x2e2   :  { %6275 = vmatprep.subr.bf16.mxu0 %v9233_v56  ;;  %v9165_v9 = vld [vmem:[#allocation8 + $0x670] ss:$24 sps:$4 sm:$0xff]   ;;  %v9168_v56 = vld [vmem:[#allocation8 + $0x6a0] ss:$24 sps:$4 sm:$0xff]  }
 0x2e4   :  { %4369 = vmatpush1.bf16.msra.mxu1 %v9087_v39  ;;  %v9269_v39 = vld [vmem:[#allocation11 + $0x2a4] ss:$24 sps:$4 sm:$0xff]  }
 0x2e5   :  { %4370 = vmatprep.subr.bf16.mxu1 %v9092_v40  ;;  %6276 = vmatpush1.bf16.msra.mxu0 %v9231_v13  ;;  %v9267_v40 = vld [vmem:[#allocation11 + $0x2a0] ss:$24 sps:$4 sm:$0xff]  }
 0x2e6   :  { %6277 = vmatprep.subr.bf16.mxu0 %v9239_v16  ;;  %v9171_v13 = vld [vmem:[#allocation8 + $0x6d0] ss:$24 sps:$4 sm:$0xff]   ;;  %v9179_v16 = vld [vmem:[#allocation8 + $0x734] ss:$24 sps:$4 sm:$0xff]  }
 0x2e8   :  { %4371 = vmatpush1.bf16.msra.mxu1 %v9090_v50  ;;  %v9275_v50 = vld [vmem:[#allocation11 + $0x2d4] ss:$24 sps:$4 sm:$0xff]  }
 0x2e9   :  { %4372 = vmatprep.subr.bf16.mxu1 %v9095_v43  ;;  %6278 = vmatpush1.bf16.msra.mxu0 %v9237_v20  ;;  %v9273_v43 = vld [vmem:[#allocation11 + $0x2d0] ss:$24 sps:$4 sm:$0xff]  }
 0x2ea   :  { %6279 = vmatprep.subr.bf16.mxu0 %v9245_v22  ;;  %v9180_v20 = vld [vmem:[#allocation8 + $0x760] ss:$24 sps:$4 sm:$0xff]   ;;  %v9186_v22 = vld [vmem:[#allocation8 + $0x790] ss:$24 sps:$4 sm:$0xff]  }
 0x2ec   :  { %4373 = vmatpush1.bf16.msra.mxu1 %v9093_v46  ;;  %v9281_v46 = vld [vmem:[#allocation11 + $0x304] ss:$24 sps:$4 sm:$0xff]  }
 0x2ed   :  { %4374 = vmatprep.subr.bf16.mxu1 %v9098_v47  ;;  %6280 = vmatpush1.bf16.msra.mxu0 %v9243_v25  ;;  %v9140_v47 = vld [vmem:[#allocation8 + $0x4c4] ss:$24 sps:$4 sm:$0xff]   ;;  %v9192_v25 = vld [vmem:[#allocation8 + $0x7c0] ss:$24 sps:$4 sm:$0xff]  }
 0x2ee   :  { %6281 = vmatprep.subr.bf16.mxu0 %v9251_v27  ;;  %v9198_v27 = vld [vmem:[#allocation8 + $0x7f0] ss:$24 sps:$4 sm:$0xff]  }
 0x2f0   :  { %4375 = vmatpush1.bf16.msra.mxu1 %v9096_v52  ;;  %v9143_v52 = vld [vmem:[#allocation8 + $0x4f4] ss:$24 sps:$4 sm:$0xff]  }
 0x2f1   :  { %4376 = vmatprep.subr.bf16.mxu1 %v9101_v61  ;;  %6282 = vmatpush1.bf16.msra.mxu0 %v9249_v28  ;;  %v9146_v61 = vld [vmem:[#allocation8 + $0x524] ss:$24 sps:$4 sm:$0xff]   ;;  %v9204_v28 = vld [vmem:[#allocation8 + $0x820] ss:$24 sps:$4 sm:$0xff]  }
 0x2f2   :  { %6283 = vmatprep.subr.bf16.mxu0 %v9257_v29  ;;  %v9210_v29 = vld [vmem:[#allocation8 + $0x850] ss:$24 sps:$4 sm:$0xff]  }
 0x2f4   :  { %4377 = vmatpush1.bf16.msra.mxu1 %v9099_v63  ;;  %v9149_v63 = vld [vmem:[#allocation8 + $0x554] ss:$24 sps:$4 sm:$0xff]  }
 0x2f5   :  { %4378 = vmatprep.subr.bf16.mxu1 %v9104_v1  ;;  %6284 = vmatpush1.bf16.msra.mxu0 %v9255_v31  ;;  %v9152_v1 = vld [vmem:[#allocation8 + $0x584] ss:$24 sps:$4 sm:$0xff]   ;;  %v9216_v31 = vld [vmem:[#allocation8 + $0x880] ss:$24 sps:$4 sm:$0xff]  }
 0x2f6   :  { %6285 = vmatprep.subr.bf16.mxu0 %v9263_v32  ;;  %v9222_v32 = vld [vmem:[#allocation8 + $0x8b0] ss:$24 sps:$4 sm:$0xff]  }
 0x2f8   :  { %4379 = vmatpush1.bf16.msra.mxu1 %v9102_v2  ;;  %v9155_v2 = vld [vmem:[#allocation8 + $0x5b4] ss:$24 sps:$4 sm:$0xff]  }
 0x2f9   :  { %4380 = vmatprep.subr.bf16.mxu1 %v9107_v4  ;;  %6286 = vmatpush1.bf16.msra.mxu0 %v9261_v34  ;;  %v9158_v4 = vld [vmem:[#allocation8 + $0x5e4] ss:$24 sps:$4 sm:$0xff]   ;;  %v9228_v34 = vld [vmem:[#allocation8 + $0x8e0] ss:$24 sps:$4 sm:$0xff]  }
 0x2fa   :  { %6287 = vmatprep.subr.bf16.mxu0 %v9269_v39  ;;  %v9234_v39 = vld [vmem:[#allocation11 + $0x8] ss:$24 sps:$4 sm:$0xff]  }
 0x2fc   :  { %4381 = vmatpush1.bf16.msra.mxu1 %v9105_v6  ;;  %v9161_v6 = vld [vmem:[#allocation8 + $0x614] ss:$24 sps:$4 sm:$0xff]  }
 0x2fd   :  { %4382 = vmatprep.subr.bf16.mxu1 %v9110_v7  ;;  %6288 = vmatpush1.bf16.msra.mxu0 %v9267_v40  ;;  %v9164_v7 = vld [vmem:[#allocation8 + $0x644] ss:$24 sps:$4 sm:$0xff]  }
 0x2fe   :  { %6289 = vmatprep.subr.bf16.mxu0 %v9275_v50  ;;  %v9240_v40 = vld [vmem:[#allocation11 + $0x38] ss:$24 sps:$4 sm:$0xff]   ;;  %v9246_v50 = vld [vmem:[#allocation11 + $0x68] ss:$24 sps:$4 sm:$0xff]  }
 0x300   :  { %4383 = vmatpush1.bf16.msra.mxu1 %v9108_v54  ;;  %v9167_v54 = vld [vmem:[#allocation8 + $0x674] ss:$24 sps:$4 sm:$0xff]  }
 0x301   :  { %4395 = vmatprep.subr.bf16.mxu1 %v9113_v37  ;;  %6290 = vmatpush1.bf16.msra.mxu0 %v9273_v43  ;;  %v9170_v37 = vld [vmem:[#allocation8 + $0x6a4] ss:$24 sps:$4 sm:$0xff]  }
 0x302   :  { %6302 = vmatprep.subr.bf16.mxu0 %v9281_v46  ;;  %v9252_v43 = vld [vmem:[#allocation11 + $0x98] ss:$24 sps:$4 sm:$0xff]   ;;  %v9258_v46 = vld [vmem:[#allocation11 + $0xc8] ss:$24 sps:$4 sm:$0xff]  }
 0x303   :  { %4385 = vmatmul.mubr.bf16.vlgmr.msra.gmra.mrb[12].mxu1 %v10195_v10  ;;  %v9120_v10 = vld [vmem:[#allocation8 + $0x3a0] ss:$24 sps:$4 sm:$0xff]  }
 0x304   :  { %4396 = vmatpush1.bf16.msra.mxu1 %v9111_v59  ;;  %4427 = vmatprep.mubr.bf16.mxu1 %v10217_v60  ;;  %v9125_v60 = vld [vmem:[#allocation8 + $0x3d4] ss:$24 sps:$4 sm:$0xff]  }
 0x305   :  { %4397 = vmatprep.subr.bf16.mxu1 %v9116_v14  ;;  %v9173_v59 = vld [vmem:[#allocation8 + $0x6d4] ss:$24 sps:$4 sm:$0xff]   ;;  %v9176_v14 = vld [vmem:[#allocation8 + $0x704] ss:$24 sps:$4 sm:$0xff]  }
 0x308   :  { %4398 = vmatpush1.bf16.msra.mxu1 %v9114_v19  ;;  %v9182_v19 = vld [vmem:[#allocation8 + $0x764] ss:$24 sps:$4 sm:$0xff]  }
 0x309   :  { %4399 = vmatprep.subr.bf16.mxu1 %v9119_v21  ;;  %v9188_v21 = vld [vmem:[#allocation8 + $0x794] ss:$24 sps:$4 sm:$0xff]  }
 0x30c   :  { %4400 = vmatpush1.bf16.msra.mxu1 %v9117_v24  ;;  %v9194_v24 = vld [vmem:[#allocation8 + $0x7c4] ss:$24 sps:$4 sm:$0xff]  }
 0x30d   :  { %4401 = vmatprep.subr.bf16.mxu1 %v9122_v26  ;;  %v9200_v26 = vld [vmem:[#allocation8 + $0x7f4] ss:$24 sps:$4 sm:$0xff]  }
 0x310   :  { %4402 = vmatpush1.bf16.msra.mxu1 %v9120_v10  ;;  %v9206_v10 = vld [vmem:[#allocation8 + $0x824] ss:$24 sps:$4 sm:$0xff]  }
 0x311   :  { %4403 = vmatprep.subr.bf16.mxu1 %v9125_v60  ;;  %v9212_v60 = vld [vmem:[#allocation8 + $0x854] ss:$24 sps:$4 sm:$0xff]  }
 0x314   :  { %4404 = vmatpush1.bf16.msra.mxu1 %v9123_v30  ;;  %v9218_v30 = vld [vmem:[#allocation8 + $0x884] ss:$24 sps:$4 sm:$0xff]  }
 0x315   :  { %4405 = vmatprep.subr.bf16.mxu1 %v9128_v11  ;;  %v9224_v11 = vld [vmem:[#allocation8 + $0x8b4] ss:$24 sps:$4 sm:$0xff]  }
 0x318   :  { %4406 = vmatpush1.bf16.msra.mxu1 %v9126_v33  ;;  %v9230_v33 = vld [vmem:[#allocation8 + $0x8e4] ss:$24 sps:$4 sm:$0xff]  }
 0x319   :  { %4407 = vmatprep.subr.bf16.mxu1 %v9131_v38  ;;  %v9236_v38 = vld [vmem:[#allocation11 + $0xc] ss:$24 sps:$4 sm:$0xff]  }
 0x31c   :  { %4408 = vmatpush1.bf16.msra.mxu1 %v9129_v12  ;;  %v9242_v12 = vld [vmem:[#allocation11 + $0x3c] ss:$24 sps:$4 sm:$0xff]  }
 0x31d   :  { %4409 = vmatprep.subr.bf16.mxu1 %v9134_v41  ;;  %v9248_v41 = vld [vmem:[#allocation11 + $0x6c] ss:$24 sps:$4 sm:$0xff]  }
 0x320   :  { %4410 = vmatpush1.bf16.msra.mxu1 %v9132_v42  ;;  %v9254_v42 = vld [vmem:[#allocation11 + $0x9c] ss:$24 sps:$4 sm:$0xff]  }
 0x321   :  { %4411 = vmatprep.subr.bf16.mxu1 %v9137_v55  ;;  %v9260_v55 = vld [vmem:[#allocation11 + $0xcc] ss:$24 sps:$4 sm:$0xff]  }
 0x324   :  { %4412 = vmatpush1.bf16.msra.mxu1 %v9135_v44  ;;  %v10247_v44 = vld [vmem:[#allocation10] sm:$0x3f] }
 0x325   :  { %4413 = vmatprep.subr.bf16.mxu1 %v9140_v47  ;;  %v9266_v47 = vld [vmem:[#allocation11 + $0xfc] ss:$24 sps:$4 sm:$0xff]  }
 0x328   :  { %4414 = vmatpush1.bf16.msra.mxu1 %v9138_v51  ;;  %v2635_v51 = vrot.slane %v10247_v44, %v10204_v35 }
 0x329   :  { %4415 = vmatprep.subr.bf16.mxu1 %v9143_v52  ;;  %v9264_v52 = vld [vmem:[#allocation11 + $0xf8] ss:$24 sps:$4 sm:$0xff]  }
 0x32c   :  { %4416 = vmatpush1.bf16.msra.mxu1 %v9141_v58  ;;  %v2631_v58 = vrot.slane %v10247_v44, %v10187_v23 }
 0x32d   :  { %4417 = vmatprep.subr.bf16.mxu1 %v9146_v61  ;;  %v2639_v61 = vrot.slane %v10247_v44, %v10207_v36 }
 0x330   :  { %4418 = vmatpush1.bf16.msra.mxu1 %v9144_v62  ;;  %v9272_v62 = vld [vmem:[#allocation11 + $0x12c] ss:$24 sps:$4 sm:$0xff]  }
 0x331   :  { %4419 = vmatprep.subr.bf16.mxu1 %v9149_v63 }
 0x334   :  { %4420 = vmatpush1.bf16.msra.mxu1 %v9147_v0 }
 0x335   :  { %4421 = vmatprep.subr.bf16.mxu1 %v9152_v1 }
 0x338   :  { %4422 = vmatpush1.bf16.msra.mxu1 %v9150_v15 }
 0x339   :  { %4423 = vmatprep.subr.bf16.mxu1 %v9155_v2 }
 0x33c   :  { %4424 = vmatpush1.bf16.msra.mxu1 %v9153_v3 }
 0x33d   :  { %4425 = vmatprep.subr.bf16.mxu1 %v9158_v4 }
 0x340   :  { %4426 = vmatpush1.bf16.msra.mxu1 %v9156_v5 }
 0x341   :  { %4438 = vmatprep.subr.bf16.mxu1 %v9161_v6 }
 0x343   :  { %4428 = vmatmul.mubr.bf16.vlgmr.msra.gmra.mrb[12].mxu1 %v10215_v57  ;;  %v9174_v57 = vld [vmem:[#allocation8 + $0x700] ss:$24 sps:$4 sm:$0xff]  }
 0x344   :  { %4439 = vmatpush1.bf16.msra.mxu1 %v9159_v53  ;;  %4470 = vmatprep.mubr.bf16.mxu1 %v10235_v18  ;;  %v9177_v18 = vld [vmem:[#allocation8 + $0x730] ss:$24 sps:$4 sm:$0xff]  }
 0x345   :  { %4440 = vmatprep.subr.bf16.mxu1 %v9164_v7  ;;  %v9270_v7 = vld [vmem:[#allocation11 + $0x128] ss:$24 sps:$4 sm:$0xff]  }
 0x348   :  { %4441 = vmatpush1.bf16.msra.mxu1 %v9162_v8 }
 0x349   :  { %4442 = vmatprep.subr.bf16.mxu1 %v9167_v54 }
 0x34c   :  { %4443 = vmatpush1.bf16.msra.mxu1 %v9165_v9 }
 0x34d   :  { %4444 = vmatprep.subr.bf16.mxu1 %v9170_v37 }
 0x350   :  { %4445 = vmatpush1.bf16.msra.mxu1 %v9168_v56  ;;  %v9278_v56 = vld [vmem:[#allocation11 + $0x15c] ss:$24 sps:$4 sm:$0xff]  }
 0x351   :  { %4446 = vmatprep.subr.bf16.mxu1 %v9173_v59 }
 0x354   :  { %4447 = vmatpush1.bf16.msra.mxu1 %v9171_v13 }
 0x355   :  { %4448 = vmatprep.subr.bf16.mxu1 %v9176_v14 }
 0x358   :  { %4449 = vmatpush1.bf16.msra.mxu1 %v9174_v57 }
 0x359   :  { %4450 = vmatprep.subr.bf16.mxu1 %v9179_v16 }
 0x35c   :  { %4451 = vmatpush1.bf16.msra.mxu1 %v9177_v18 }
 0x35d   :  { %4452 = vmatprep.subr.bf16.mxu1 %v9182_v19 }
 0x360   :  { %4453 = vmatpush1.bf16.msra.mxu1 %v9180_v20 }
 0x361   :  { %4454 = vmatprep.subr.bf16.mxu1 %v9188_v21 }
 0x364   :  { %4455 = vmatpush1.bf16.msra.mxu1 %v9186_v22 }
 0x365   :  { %4456 = vmatprep.subr.bf16.mxu1 %v9194_v24  ;;  %v9276_v24 = vld [vmem:[#allocation11 + $0x158] ss:$24 sps:$4 sm:$0xff]  }
 0x368   :  { %4457 = vmatpush1.bf16.msra.mxu1 %v9192_v25 }
 0x369   :  { %4458 = vmatprep.subr.bf16.mxu1 %v9200_v26 }
 0x36c   :  { %4459 = vmatpush1.bf16.msra.mxu1 %v9198_v27 }
 0x36d   :  { %4460 = vmatprep.subr.bf16.mxu1 %v9206_v10 }
 0x370   :  { %4461 = vmatpush1.bf16.msra.mxu1 %v9204_v28  ;;  %v9279_v28 = vld [vmem:[#allocation11 + $0x300] ss:$24 sps:$4 sm:$0xff]  }
 0x371   :  { %4462 = vmatprep.subr.bf16.mxu1 %v9212_v60  ;;  %v9284_v60 = vld [vmem:[#allocation11 + $0x18c] ss:$24 sps:$4 sm:$0xff]  }
 0x374   :  { %4463 = vmatpush1.bf16.msra.mxu1 %v9210_v29  ;;  %v9287_v29 = vld [vmem:[#allocation11 + $0x334] ss:$24 sps:$4 sm:$0xff]  }
 0x375   :  { %4464 = vmatprep.subr.bf16.mxu1 %v9218_v30  ;;  %v9282_v30 = vld [vmem:[#allocation11 + $0x188] ss:$24 sps:$4 sm:$0xff]  }
 0x378   :  { %4465 = vmatpush1.bf16.msra.mxu1 %v9216_v31  ;;  %v9290_v31 = vld [vmem:[#allocation11 + $0x1bc] ss:$24 sps:$4 sm:$0xff]  }
 0x379   :  { %4466 = vmatprep.subr.bf16.mxu1 %v9224_v11  ;;  %v9285_v11 = vld [vmem:[#allocation11 + $0x330] ss:$24 sps:$4 sm:$0xff]  }
 0x37c   :  { %4467 = vmatpush1.bf16.msra.mxu1 %v9222_v32  ;;  %v9293_v32 = vld [vmem:[#allocation11 + $0x364] ss:$24 sps:$4 sm:$0xff]  }
 0x37d   :  { %4468 = vmatprep.subr.bf16.mxu1 %v9230_v33  ;;  %v9288_v33 = vld [vmem:[#allocation11 + $0x1b8] ss:$24 sps:$4 sm:$0xff]  }
 0x380   :  { %4469 = vmatpush1.bf16.msra.mxu1 %v9228_v34  ;;  %v9296_v34 = vld [vmem:[#allocation11 + $0x1ec] ss:$24 sps:$4 sm:$0xff]  }
 0x381   :  { %6388 = vmatprep.subr.bf16.mxu1 %v9236_v38  ;;  %v9291_v38 = vld [vmem:[#allocation11 + $0x360] ss:$24 sps:$4 sm:$0xff]  }
 0x383   :  { %4471 = vmatmul.mubr.bf16.vlgmr.msra.gmra.mrb[12].mxu1 %v10233_v17  ;;  %v2627_v17 = vrot.slane %v10247_v44, %v10184_v45 }
 0x384   :  { %6389 = vmatpush1.bf16.msra.mxu1 %v9234_v39  ;;  %v9299_v39 = vld [vmem:[#allocation11 + $0x394] ss:$24 sps:$4 sm:$0xff]  }
 0x385   :  { %6390 = vmatprep.subr.bf16.mxu1 %v9242_v12  ;;  %v9294_v12 = vld [vmem:[#allocation11 + $0x1e8] ss:$24 sps:$4 sm:$0xff]  }
 0x388   :  { %6391 = vmatpush1.bf16.msra.mxu1 %v9240_v40  ;;  %v9302_v40 = vld [vmem:[#allocation11 + $0x21c] ss:$24 sps:$4 sm:$0xff]  }
 0x389   :  { %6392 = vmatprep.subr.bf16.mxu1 %v9248_v41  ;;  %v9297_v41 = vld [vmem:[#allocation11 + $0x390] ss:$24 sps:$4 sm:$0xff]  }
 0x38c   :  { %6393 = vmatpush1.bf16.msra.mxu1 %v9246_v50  ;;  %v9305_v50 = vld [vmem:[#allocation11 + $0x3c4] ss:$24 sps:$4 sm:$0xff]  }
 0x38d   :  { %6394 = vmatprep.subr.bf16.mxu1 %v9254_v42  ;;  %v9300_v42 = vld [vmem:[#allocation11 + $0x218] ss:$24 sps:$4 sm:$0xff]  }
 0x390   :  { %6395 = vmatpush1.bf16.msra.mxu1 %v9252_v43  ;;  %v9308_v43 = vld [vmem:[#allocation11 + $0x24c] ss:$24 sps:$4 sm:$0xff]  }
 0x391   :  { %6396 = vmatprep.subr.bf16.mxu1 %v9260_v55  ;;  %v9303_v55 = vld [vmem:[#allocation11 + $0x3c0] ss:$24 sps:$4 sm:$0xff]  }
 0x394   :  { %6397 = vmatpush1.bf16.msra.mxu1 %v9258_v46  ;;  %v9311_v46 = vld [vmem:[#allocation11 + $0x3f4] ss:$24 sps:$4 sm:$0xff]  }
 0x395   :  { %6398 = vmatprep.subr.bf16.mxu1 %v9266_v47  ;;  %v9306_v47 = vld [vmem:[#allocation11 + $0x248] ss:$24 sps:$4 sm:$0xff]  }
 0x396   :  { %v4214_v63 = vpop.f32.mrb[8].mxu1  ;;  %v4343_v0 = vpop.f32.mrb[8].mxu0 }
 0x397   :  { %v8232_v1 = vadd.f32 %v4214_v63, %v2627_v17  ;;  %v8236_v15 = vadd.f32 %v4343_v0, %v2635_v51  ;;  %v4216_v2 = vpop.f32.mrb[9].mxu1  ;;  %v4345_v3 = vpop.f32.mrb[9].mxu0  ;;  %v9323_v63 = vld [vmem:[#allocation11 + $0x454] ss:$24 sps:$4 sm:$0xff]   ;;  %v9318_v0 = vld [vmem:[#allocation11 + $0x2a8] ss:$24 sps:$4 sm:$0xff]  }
 0x398   :  { %v8233_v4 = vadd.f32 %v4216_v2, %v2631_v58  ;;  %v8237_v5 = vadd.f32 %v4345_v3, %v2639_v61  ;;  %6399 = vmatpush1.bf16.msra.mxu1 %v9264_v52  ;;  %v4218_v6 = vpop.f32.mrb[10].mxu1  ;;  %v4347_v53 = vpop.f32.mrb[10].mxu0  ;;  %v9317_v52 = vld [vmem:[#allocation11 + $0x424] ss:$24 sps:$4 sm:$0xff]   ;;  %v9324_v3 = vld [vmem:[#allocation11 + $0x2d8] ss:$24 sps:$4 sm:$0xff]  }
 0x399   :  { %v8234_v8 = vadd.f32 %v4218_v6, %v2627_v17  ;;  %v8238_v54 = vadd.f32 %v4347_v53, %v2635_v51  ;;  %v4220_v9 = vpop.f32.mrb[11].mxu1  ;;  %v4349_v37 = vpop.f32.mrb[11].mxu0  ;;  %6400 = vmatprep.subr.bf16.mxu1 %v9272_v62  ;;  %v4481_v14 = vmax.f32 %v8232_v1, 0.0  ;;  %v4483_v57 = vmax.f32 %v8236_v15, 0.0  ;;  %v9314_v17 = vld [vmem:[#allocation11 + $0x27c] ss:$24 sps:$4 sm:$0xff]  }
 0x39a   :  { %v8235_v59 = vadd.f32 %v4220_v9, %v2631_v58  ;;  %v8239_v13 = vadd.f32 %v4349_v37, %v2639_v61  ;;  %v4482_v19 = vmax.f32 %v8233_v4, 0.0  ;;  %v4484_v20 = vmax.f32 %v8237_v5, 0.0  ;;  %v9309_v51 = vld [vmem:[#allocation11 + $0x3f0] ss:$24 sps:$4 sm:$0xff]   ;;  %v9320_v61 = vld [vmem:[#allocation11 + $0x2ac] ss:$24 sps:$4 sm:$0xff]  }
 0x39b   :  { %v4487_v16 = vmax.f32 %v8234_v8, 0.0  ;;  %v4489_v18 = vmax.f32 %v8238_v54, 0.0  ;;  %v9312_v58 = vld [vmem:[#allocation11 + $0x278] ss:$24 sps:$4 sm:$0xff]   ;;  %v9326_v1 = vld [vmem:[#allocation11 + $0x2dc] ss:$24 sps:$4 sm:$0xff]  }
 0x39c   :  { %v4488_v21 = vmax.f32 %v8235_v59, 0.0  ;;  %v4490_v22 = vmax.f32 %v8239_v13, 0.0  ;;  %6401 = vmatpush1.bf16.msra.mxu1 %v9270_v7  ;;  %v9315_v62 = vld [vmem:[#allocation11 + $0x420] ss:$24 sps:$4 sm:$0xff]   ;;  %v9321_v15 = vld [vmem:[#allocation11 + $0x450] ss:$24 sps:$4 sm:$0xff]  }
 0x39d   :  { %v10257_v25 = vpack.c.bf16 %v4487_v16, %v4481_v14  ;;  %v10259_v26 = vpack.c.bf16 %v4489_v18, %v4483_v57  ;;  %6402 = vmatprep.subr.bf16.mxu1 %v9278_v56  ;;  %v9329_v2 = vld [vmem:[#allocation11 + $0x484] ss:$24 sps:$4 sm:$0xff]   ;;  %v9327_v5 = vld [vmem:[#allocation11 + $0x480] ss:$24 sps:$4 sm:$0xff]   ;;  %v9335_v6 = vld [vmem:[#allocation11 + $0x4b4] ss:$24 sps:$4 sm:$0xff]  }
 0x39e   :  { %v10261_v27 = vpack.c.bf16 %v4488_v21, %v4482_v19  ;;  %v10263_v10 = vpack.c.bf16 %v4490_v22, %v4484_v20  ;;  %v9332_v4 = vld [vmem:[#allocation11 + $0x30c] ss:$24 sps:$4 sm:$0xff]   ;;  %v9330_v53 = vld [vmem:[#allocation11 + $0x308] ss:$24 sps:$4 sm:$0xff]   ;;  %v9338_v7 = vld [vmem:[#allocation11 + $0x33c] ss:$24 sps:$4 sm:$0xff]  }
 0x39f   :  { %v9333_v8 = vld [vmem:[#allocation11 + $0x4b0] ss:$24 sps:$4 sm:$0xff]   ;;  %v9341_v54 = vld [vmem:[#allocation11 + $0x4e4] ss:$24 sps:$4 sm:$0xff]   ;;  %v9339_v56 = vld [vmem:[#allocation11 + $0x4e0] ss:$24 sps:$4 sm:$0xff]  }
 0x3a0   :  { %6403 = vmatpush1.bf16.msra.mxu1 %v9276_v24  ;;  %6291 = vmatprep.mubr.bf16.mxu0 %v10261_v27  ;;  %v9336_v9 = vld [vmem:[#allocation11 + $0x338] ss:$24 sps:$4 sm:$0xff]   ;;  %v9344_v37 = vld [vmem:[#allocation11 + $0x36c] ss:$24 sps:$4 sm:$0xff]   ;;  %v9342_v13 = vld [vmem:[#allocation11 + $0x368] ss:$24 sps:$4 sm:$0xff]  }
 0x3a1   :  { %6420 = vmatprep.mubr.bf16.mxu1 %v10261_v27  ;;  %6292 = vmatmul.mubr.bf16.vlgmr.msra.gmra.mrb[12].mxu0 %v10257_v25  ;;  %v9347_v59 = vld [vmem:[#allocation11 + $0x514] ss:$24 sps:$4 sm:$0xff]   ;;  %v9345_v57 = vld [vmem:[#allocation11 + $0x510] ss:$24 sps:$4 sm:$0xff]   ;;  %v9353_v16 = vld [vmem:[#allocation11 + $0x544] ss:$24 sps:$4 sm:$0xff]  }
 0x3a2   :  { %6303 = vmatpush1.bf16.msra.mxu0 %v9279_v28  ;;  %6334 = vmatprep.mubr.bf16.mxu0 %v10263_v10  ;;  %v9350_v14 = vld [vmem:[#allocation11 + $0x39c] ss:$24 sps:$4 sm:$0xff]   ;;  %v9348_v18 = vld [vmem:[#allocation11 + $0x398] ss:$24 sps:$4 sm:$0xff]   ;;  %v9356_v19 = vld [vmem:[#allocation11 + $0x3cc] ss:$24 sps:$4 sm:$0xff]  }
 0x3a3   :  { %6404 = vmatprep.subr.bf16.mxu1 %v9284_v60  ;;  %6304 = vmatprep.subr.bf16.mxu0 %v9287_v29  ;;  %v9351_v20 = vld [vmem:[#allocation11 + $0x540] ss:$24 sps:$4 sm:$0xff]   ;;  %v9359_v21 = vld [vmem:[#allocation11 + $0x574] ss:$24 sps:$4 sm:$0xff]   ;;  %v9357_v28 = vld [vmem:[#allocation11 + $0x570] ss:$24 sps:$4 sm:$0xff]  }
 0x3a4   :  { %6405 = vmatpush1.bf16.msra.mxu1 %v9282_v30  ;;  %v9354_v22 = vld [vmem:[#allocation11 + $0x3c8] ss:$24 sps:$4 sm:$0xff]   ;;  %v9362_v24 = vld [vmem:[#allocation11 + $0x3fc] ss:$24 sps:$4 sm:$0xff]   ;;  %v9360_v29 = vld [vmem:[#allocation11 + $0x3f8] ss:$24 sps:$4 sm:$0xff]  }
 0x3a5   :  { %6406 = vmatprep.subr.bf16.mxu1 %v9290_v31  ;;  %v9365_v60 = vld [vmem:[#allocation11 + $0x5a4] ss:$24 sps:$4 sm:$0xff]   ;;  %v9363_v31 = vld [vmem:[#allocation11 + $0x5a0] ss:$24 sps:$4 sm:$0xff]  }
 0x3a6   :  { %6305 = vmatpush1.bf16.msra.mxu0 %v9285_v11  ;;  %v9368_v30 = vld [vmem:[#allocation11 + $0x42c] ss:$24 sps:$4 sm:$0xff]  }
 0x3a7   :  { %6306 = vmatprep.subr.bf16.mxu0 %v9293_v32  ;;  %v9371_v11 = vld [vmem:[#allocation11 + $0x5d4] ss:$24 sps:$4 sm:$0xff]   ;;  %v9366_v32 = vld [vmem:[#allocation11 + $0x428] ss:$24 sps:$4 sm:$0xff]  }
 0x3a8   :  { %6407 = vmatpush1.bf16.msra.mxu1 %v9288_v33  ;;  %v9374_v33 = vld [vmem:[#allocation11 + $0x45c] ss:$24 sps:$4 sm:$0xff]  }
 0x3a9   :  { %6408 = vmatprep.subr.bf16.mxu1 %v9296_v34  ;;  %v9369_v34 = vld [vmem:[#allocation11 + $0x5d0] ss:$24 sps:$4 sm:$0xff]  }
 0x3aa   :  { %6307 = vmatpush1.bf16.msra.mxu0 %v9291_v38  ;;  %v9401_v38 = vld [vmem:[#allocation11 + $0x604] ss:$24 sps:$4 sm:$0xff]  }
 0x3ab   :  { %6308 = vmatprep.subr.bf16.mxu0 %v9299_v39  ;;  %v9372_v39 = vld [vmem:[#allocation11 + $0x458] ss:$24 sps:$4 sm:$0xff]  }
 0x3ac   :  { %6409 = vmatpush1.bf16.msra.mxu1 %v9294_v12  ;;  %v9377_v12 = vld [vmem:[#allocation11 + $0x48c] ss:$24 sps:$4 sm:$0xff]  }
 0x3ad   :  { %6410 = vmatprep.subr.bf16.mxu1 %v9302_v40  ;;  %v9399_v40 = vld [vmem:[#allocation11 + $0x600] ss:$24 sps:$4 sm:$0xff]  }
 0x3ae   :  { %6309 = vmatpush1.bf16.msra.mxu0 %v9297_v41  ;;  %v9407_v41 = vld [vmem:[#allocation11 + $0x634] ss:$24 sps:$4 sm:$0xff]  }
 0x3af   :  { %6310 = vmatprep.subr.bf16.mxu0 %v9305_v50  ;;  %v9375_v50 = vld [vmem:[#allocation11 + $0x488] ss:$24 sps:$4 sm:$0xff]  }
 0x3b0   :  { %6411 = vmatpush1.bf16.msra.mxu1 %v9300_v42  ;;  %v9380_v42 = vld [vmem:[#allocation11 + $0x4bc] ss:$24 sps:$4 sm:$0xff]  }
 0x3b1   :  { %6412 = vmatprep.subr.bf16.mxu1 %v9308_v43  ;;  %v9405_v43 = vld [vmem:[#allocation11 + $0x630] ss:$24 sps:$4 sm:$0xff]  }
 0x3b2   :  { %6311 = vmatpush1.bf16.msra.mxu0 %v9303_v55  ;;  %v9413_v55 = vld [vmem:[#allocation11 + $0x664] ss:$24 sps:$4 sm:$0xff]  }
 0x3b3   :  { %6312 = vmatprep.subr.bf16.mxu0 %v9311_v46  ;;  %v9378_v46 = vld [vmem:[#allocation11 + $0x4b8] ss:$24 sps:$4 sm:$0xff]  }
 0x3b4   :  { %6413 = vmatpush1.bf16.msra.mxu1 %v9306_v47  ;;  %v9383_v47 = vld [vmem:[#allocation11 + $0x4ec] ss:$24 sps:$4 sm:$0xff]  }
 0x3b5   :  { %6414 = vmatprep.subr.bf16.mxu1 %v9314_v17  ;;  %v9411_v17 = vld [vmem:[#allocation11 + $0x660] ss:$24 sps:$4 sm:$0xff]  }
 0x3b6   :  { %6313 = vmatpush1.bf16.msra.mxu0 %v9309_v51  ;;  %v9419_v51 = vld [vmem:[#allocation11 + $0x694] ss:$24 sps:$4 sm:$0xff]  }
 0x3b7   :  { %6314 = vmatprep.subr.bf16.mxu0 %v9317_v52  ;;  %v9381_v52 = vld [vmem:[#allocation11 + $0x4e8] ss:$24 sps:$4 sm:$0xff]  }
 0x3b8   :  { %6415 = vmatpush1.bf16.msra.mxu1 %v9312_v58  ;;  %v9386_v58 = vld [vmem:[#allocation11 + $0x51c] ss:$24 sps:$4 sm:$0xff]  }
 0x3b9   :  { %6416 = vmatprep.subr.bf16.mxu1 %v9320_v61  ;;  %v9417_v61 = vld [vmem:[#allocation11 + $0x690] ss:$24 sps:$4 sm:$0xff]  }
 0x3ba   :  { %6315 = vmatpush1.bf16.msra.mxu0 %v9315_v62  ;;  %v9425_v62 = vld [vmem:[#allocation11 + $0x6c4] ss:$24 sps:$4 sm:$0xff]  }
 0x3bb   :  { %6316 = vmatprep.subr.bf16.mxu0 %v9323_v63  ;;  %v9384_v63 = vld [vmem:[#allocation11 + $0x518] ss:$24 sps:$4 sm:$0xff]  }
 0x3bc   :  { %6417 = vmatpush1.bf16.msra.mxu1 %v9318_v0  ;;  %v9389_v0 = vld [vmem:[#allocation11 + $0x54c] ss:$24 sps:$4 sm:$0xff]  }
 0x3bd   :  { %6418 = vmatprep.subr.bf16.mxu1 %v9326_v1  ;;  %v9423_v1 = vld [vmem:[#allocation11 + $0x6c0] ss:$24 sps:$4 sm:$0xff]  }
 0x3be   :  { %6317 = vmatpush1.bf16.msra.mxu0 %v9321_v15  ;;  %v9431_v15 = vld [vmem:[#allocation11 + $0x6f4] ss:$24 sps:$4 sm:$0xff]  }
 0x3bf   :  { %6318 = vmatprep.subr.bf16.mxu0 %v9329_v2  ;;  %v9387_v2 = vld [vmem:[#allocation11 + $0x548] ss:$24 sps:$4 sm:$0xff]  }
 0x3c0   :  { %6419 = vmatpush1.bf16.msra.mxu1 %v9324_v3  ;;  %v9392_v3 = vld [vmem:[#allocation11 + $0x57c] ss:$24 sps:$4 sm:$0xff]  }
 0x3c1   :  { %6431 = vmatprep.subr.bf16.mxu1 %v9332_v4  ;;  %v9429_v4 = vld [vmem:[#allocation11 + $0x6f0] ss:$24 sps:$4 sm:$0xff]  }
 0x3c2   :  { %6319 = vmatpush1.bf16.msra.mxu0 %v9327_v5  ;;  %v9437_v5 = vld [vmem:[#allocation11 + $0x724] ss:$24 sps:$4 sm:$0xff]  }
 0x3c3   :  { %6421 = vmatmul.mubr.bf16.vlgmr.msra.gmra.mrb[16].mxu1 %v10257_v25  ;;  %6320 = vmatprep.subr.bf16.mxu0 %v9335_v6  ;;  %v9390_v6 = vld [vmem:[#allocation11 + $0x578] ss:$24 sps:$4 sm:$0xff]  }
 0x3c4   :  { %6432 = vmatpush1.bf16.msra.mxu1 %v9330_v53  ;;  %6463 = vmatprep.mubr.bf16.mxu1 %v10263_v10  ;;  %v9395_v53 = vld [vmem:[#allocation11 + $0x5ac] ss:$24 sps:$4 sm:$0xff]  }
 0x3c5   :  { %6433 = vmatprep.subr.bf16.mxu1 %v9338_v7  ;;  %v9435_v7 = vld [vmem:[#allocation11 + $0x720] ss:$24 sps:$4 sm:$0xff]  }
 0x3c6   :  { %6321 = vmatpush1.bf16.msra.mxu0 %v9333_v8  ;;  %v9443_v8 = vld [vmem:[#allocation11 + $0x754] ss:$24 sps:$4 sm:$0xff]  }
 0x3c7   :  { %6322 = vmatprep.subr.bf16.mxu0 %v9341_v54  ;;  %v9393_v54 = vld [vmem:[#allocation11 + $0x5a8] ss:$24 sps:$4 sm:$0xff]  }
 0x3c8   :  { %6434 = vmatpush1.bf16.msra.mxu1 %v9336_v9  ;;  %v9398_v9 = vld [vmem:[#allocation11 + $0x5dc] ss:$24 sps:$4 sm:$0xff]  }
 0x3c9   :  { %6435 = vmatprep.subr.bf16.mxu1 %v9344_v37  ;;  %v9441_v37 = vld [vmem:[#allocation11 + $0x750] ss:$24 sps:$4 sm:$0xff]  }
 0x3ca   :  { %6323 = vmatpush1.bf16.msra.mxu0 %v9339_v56  ;;  %v9449_v56 = vld [vmem:[#allocation11 + $0x784] ss:$24 sps:$4 sm:$0xff]  }
 0x3cb   :  { %6324 = vmatprep.subr.bf16.mxu0 %v9347_v59  ;;  %v9396_v59 = vld [vmem:[#allocation11 + $0x5d8] ss:$24 sps:$4 sm:$0xff]  }
 0x3cc   :  { %6436 = vmatpush1.bf16.msra.mxu1 %v9342_v13  ;;  %v9404_v13 = vld [vmem:[#allocation11 + $0x60c] ss:$24 sps:$4 sm:$0xff]  }
 0x3cd   :  { %6437 = vmatprep.subr.bf16.mxu1 %v9350_v14  ;;  %v9447_v14 = vld [vmem:[#allocation11 + $0x780] ss:$24 sps:$4 sm:$0xff]  }
 0x3ce   :  { %6325 = vmatpush1.bf16.msra.mxu0 %v9345_v57  ;;  %v9455_v57 = vld [vmem:[#allocation11 + $0x7b4] ss:$24 sps:$4 sm:$0xff]  }
 0x3cf   :  { %6326 = vmatprep.subr.bf16.mxu0 %v9353_v16  ;;  %v9402_v16 = vld [vmem:[#allocation11 + $0x608] ss:$24 sps:$4 sm:$0xff]  }
 0x3d0   :  { %6438 = vmatpush1.bf16.msra.mxu1 %v9348_v18  ;;  %v9410_v18 = vld [vmem:[#allocation11 + $0x63c] ss:$24 sps:$4 sm:$0xff]  }
 0x3d1   :  { %6439 = vmatprep.subr.bf16.mxu1 %v9356_v19  ;;  %v9453_v19 = vld [vmem:[#allocation11 + $0x7b0] ss:$24 sps:$4 sm:$0xff]  }
 0x3d2   :  { %6327 = vmatpush1.bf16.msra.mxu0 %v9351_v20  ;;  %v9461_v20 = vld [vmem:[#allocation11 + $0x7e4] ss:$24 sps:$4 sm:$0xff]  }
 0x3d3   :  { %6328 = vmatprep.subr.bf16.mxu0 %v9359_v21  ;;  %v9408_v21 = vld [vmem:[#allocation11 + $0x638] ss:$24 sps:$4 sm:$0xff]  }
 0x3d4   :  { %6440 = vmatpush1.bf16.msra.mxu1 %v9354_v22  ;;  %v9416_v22 = vld [vmem:[#allocation11 + $0x66c] ss:$24 sps:$4 sm:$0xff]  }
 0x3d5   :  { %6441 = vmatprep.subr.bf16.mxu1 %v9362_v24  ;;  %v9459_v24 = vld [vmem:[#allocation11 + $0x7e0] ss:$24 sps:$4 sm:$0xff]  }
 0x3d6   :  { %6329 = vmatpush1.bf16.msra.mxu0 %v9357_v28  ;;  %v9467_v28 = vld [vmem:[#allocation11 + $0x814] ss:$24 sps:$4 sm:$0xff]  }
 0x3d7   :  { %6330 = vmatprep.subr.bf16.mxu0 %v9365_v60  ;;  %v9414_v60 = vld [vmem:[#allocation11 + $0x668] ss:$24 sps:$4 sm:$0xff]  }
 0x3d8   :  { %6442 = vmatpush1.bf16.msra.mxu1 %v9360_v29  ;;  %v9422_v29 = vld [vmem:[#allocation11 + $0x69c] ss:$24 sps:$4 sm:$0xff]  }
 0x3d9   :  { %6443 = vmatprep.subr.bf16.mxu1 %v9368_v30  ;;  %v9465_v30 = vld [vmem:[#allocation11 + $0x810] ss:$24 sps:$4 sm:$0xff]  }
 0x3da   :  { %6331 = vmatpush1.bf16.msra.mxu0 %v9363_v31  ;;  %v9473_v31 = vld [vmem:[#allocation11 + $0x844] ss:$24 sps:$4 sm:$0xff]  }
 0x3db   :  { %6332 = vmatprep.subr.bf16.mxu0 %v9371_v11  ;;  %v9420_v11 = vld [vmem:[#allocation11 + $0x698] ss:$24 sps:$4 sm:$0xff]  }
 0x3dc   :  { %6444 = vmatpush1.bf16.msra.mxu1 %v9366_v32  ;;  %v9428_v32 = vld [vmem:[#allocation11 + $0x6cc] ss:$24 sps:$4 sm:$0xff]  }
 0x3dd   :  { %6445 = vmatprep.subr.bf16.mxu1 %v9374_v33  ;;  %v9471_v33 = vld [vmem:[#allocation11 + $0x840] ss:$24 sps:$4 sm:$0xff]  }
 0x3de   :  { %6333 = vmatpush1.bf16.msra.mxu0 %v9369_v34  ;;  %v9479_v34 = vld [vmem:[#allocation11 + $0x874] ss:$24 sps:$4 sm:$0xff]  }
 0x3df   :  { %6345 = vmatprep.subr.bf16.mxu0 %v9401_v38  ;;  %v9426_v38 = vld [vmem:[#allocation11 + $0x6c8] ss:$24 sps:$4 sm:$0xff]  }
 0x3e0   :  { %6446 = vmatpush1.bf16.msra.mxu1 %v9372_v39  ;;  %v9434_v39 = vld [vmem:[#allocation11 + $0x6fc] ss:$24 sps:$4 sm:$0xff]  }
 0x3e1   :  { %6335 = vmatmul.mubr.bf16.vlgmr.msra.gmra.mrb[12].mxu0 %v10259_v26  ;;  %6447 = vmatprep.subr.bf16.mxu1 %v9377_v12  ;;  %v9477_v12 = vld [vmem:[#allocation11 + $0x870] ss:$24 sps:$4 sm:$0xff]  }
 0x3e2   :  { %6346 = vmatpush1.bf16.msra.mxu0 %v9399_v40  ;;  %v9485_v40 = vld [vmem:[#allocation11 + $0x8a4] ss:$24 sps:$4 sm:$0xff]  }
 0x3e3   :  { %6347 = vmatprep.subr.bf16.mxu0 %v9407_v41  ;;  %v9432_v41 = vld [vmem:[#allocation11 + $0x6f8] ss:$24 sps:$4 sm:$0xff]  }
 0x3e4   :  { %6448 = vmatpush1.bf16.msra.mxu1 %v9375_v50  ;;  %v9440_v50 = vld [vmem:[#allocation11 + $0x72c] ss:$24 sps:$4 sm:$0xff]  }
 0x3e5   :  { %6449 = vmatprep.subr.bf16.mxu1 %v9380_v42  ;;  %v9483_v42 = vld [vmem:[#allocation11 + $0x8a0] ss:$24 sps:$4 sm:$0xff]  }
 0x3e6   :  { %6348 = vmatpush1.bf16.msra.mxu0 %v9405_v43  ;;  %v9491_v43 = vld [vmem:[#allocation11 + $0x8d4] ss:$24 sps:$4 sm:$0xff]  }
 0x3e7   :  { %6349 = vmatprep.subr.bf16.mxu0 %v9413_v55  ;;  %v9438_v55 = vld [vmem:[#allocation11 + $0x728] ss:$24 sps:$4 sm:$0xff]  }
 0x3e8   :  { %6450 = vmatpush1.bf16.msra.mxu1 %v9378_v46  ;;  %v9446_v46 = vld [vmem:[#allocation11 + $0x75c] ss:$24 sps:$4 sm:$0xff]  }
 0x3e9   :  { %6451 = vmatprep.subr.bf16.mxu1 %v9383_v47  ;;  %v9489_v47 = vld [vmem:[#allocation11 + $0x8d0] ss:$24 sps:$4 sm:$0xff]  }
 0x3ea   :  { %6350 = vmatpush1.bf16.msra.mxu0 %v9411_v17  ;;  %v9497_v17 = vld [vmem:[#allocation11 + $0x14] ss:$24 sps:$4 sm:$0xff]  }
 0x3eb   :  { %6351 = vmatprep.subr.bf16.mxu0 %v9419_v51  ;;  %v9444_v51 = vld [vmem:[#allocation11 + $0x758] ss:$24 sps:$4 sm:$0xff]  }
 0x3ec   :  { %6452 = vmatpush1.bf16.msra.mxu1 %v9381_v52  ;;  %v9452_v52 = vld [vmem:[#allocation11 + $0x78c] ss:$24 sps:$4 sm:$0xff]  }
 0x3ed   :  { %6453 = vmatprep.subr.bf16.mxu1 %v9386_v58  ;;  %v9450_v58 = vld [vmem:[#allocation11 + $0x788] ss:$24 sps:$4 sm:$0xff]  }
 0x3ee   :  { %6352 = vmatpush1.bf16.msra.mxu0 %v9417_v61  ;;  %v9458_v61 = vld [vmem:[#allocation11 + $0x7bc] ss:$24 sps:$4 sm:$0xff]  }
 0x3ef   :  { %6353 = vmatprep.subr.bf16.mxu0 %v9425_v62  ;;  %v9456_v62 = vld [vmem:[#allocation11 + $0x7b8] ss:$24 sps:$4 sm:$0xff]  }
 0x3f0   :  { %6454 = vmatpush1.bf16.msra.mxu1 %v9384_v63  ;;  %v9464_v63 = vld [vmem:[#allocation11 + $0x7ec] ss:$24 sps:$4 sm:$0xff]  }
 0x3f1   :  { %6455 = vmatprep.subr.bf16.mxu1 %v9389_v0  ;;  %v9462_v0 = vld [vmem:[#allocation11 + $0x7e8] ss:$24 sps:$4 sm:$0xff]  }
 0x3f2   :  { %6354 = vmatpush1.bf16.msra.mxu0 %v9423_v1  ;;  %v9470_v1 = vld [vmem:[#allocation11 + $0x81c] ss:$24 sps:$4 sm:$0xff]  }
 0x3f3   :  { %6355 = vmatprep.subr.bf16.mxu0 %v9431_v15  ;;  %v9468_v15 = vld [vmem:[#allocation11 + $0x818] ss:$24 sps:$4 sm:$0xff]  }
 0x3f4   :  { %6456 = vmatpush1.bf16.msra.mxu1 %v9387_v2  ;;  %v9476_v2 = vld [vmem:[#allocation11 + $0x84c] ss:$24 sps:$4 sm:$0xff]  }
 0x3f5   :  { %6457 = vmatprep.subr.bf16.mxu1 %v9392_v3  ;;  %v9474_v3 = vld [vmem:[#allocation11 + $0x848] ss:$24 sps:$4 sm:$0xff]  }
 0x3f6   :  { %6356 = vmatpush1.bf16.msra.mxu0 %v9429_v4  ;;  %v9482_v4 = vld [vmem:[#allocation11 + $0x87c] ss:$24 sps:$4 sm:$0xff]  }
 0x3f7   :  { %6357 = vmatprep.subr.bf16.mxu0 %v9437_v5  ;;  %v9480_v5 = vld [vmem:[#allocation11 + $0x878] ss:$24 sps:$4 sm:$0xff]  }
 0x3f8   :  { %6458 = vmatpush1.bf16.msra.mxu1 %v9390_v6  ;;  %v9488_v6 = vld [vmem:[#allocation11 + $0x8ac] ss:$24 sps:$4 sm:$0xff]  }
 0x3f9   :  { %6459 = vmatprep.subr.bf16.mxu1 %v9395_v53  ;;  %v9486_v53 = vld [vmem:[#allocation11 + $0x8a8] ss:$24 sps:$4 sm:$0xff]  }
 0x3fa   :  { %6358 = vmatpush1.bf16.msra.mxu0 %v9435_v7  ;;  %v9494_v7 = vld [vmem:[#allocation11 + $0x8dc] ss:$24 sps:$4 sm:$0xff]  }
 0x3fb   :  { %6359 = vmatprep.subr.bf16.mxu0 %v9443_v8  ;;  %v9492_v8 = vld [vmem:[#allocation11 + $0x8d8] ss:$24 sps:$4 sm:$0xff]  }
 0x3fc   :  { %6460 = vmatpush1.bf16.msra.mxu1 %v9393_v54  ;;  %v2643_v54 = vrot.slane %v10247_v44, %v10224_v48 }
 0x3fd   :  { %6461 = vmatprep.subr.bf16.mxu1 %v9398_v9  ;;  %v2647_v9 = vrot.slane %v10247_v44, %v10227_v49  ;;  %v9498_v44 = vld [vmem:[#allocation11 + $0x40] ss:$24 sps:$4 sm:$0xff]  }
 0x3fe   :  { %6360 = vmatpush1.bf16.msra.mxu0 %v9441_v37 }
 0x3ff   :  { %6361 = vmatprep.subr.bf16.mxu0 %v9449_v56 }
 0x400   :  { %6462 = vmatpush1.bf16.msra.mxu1 %v9396_v59 }
 0x401   :  { %6474 = vmatprep.subr.bf16.mxu1 %v9404_v13 }
 0x402   :  { %6362 = vmatpush1.bf16.msra.mxu0 %v9447_v14 }
 0x403   :  { %6464 = vmatmul.mubr.bf16.vlgmr.msra.gmra.mrb[16].mxu1 %v10259_v26  ;;  %6363 = vmatprep.subr.bf16.mxu0 %v9455_v57 }
 0x404   :  { %6475 = vmatpush1.bf16.msra.mxu1 %v9402_v16 }
 0x405   :  { %6476 = vmatprep.subr.bf16.mxu1 %v9410_v18 }
 0x406   :  { %6364 = vmatpush1.bf16.msra.mxu0 %v9453_v19 }
 0x407   :  { %6365 = vmatprep.subr.bf16.mxu0 %v9461_v20 }
 0x408   :  { %6477 = vmatpush1.bf16.msra.mxu1 %v9408_v21 }
 0x409   :  { %6478 = vmatprep.subr.bf16.mxu1 %v9416_v22 }
 0x40a   :  { %6366 = vmatpush1.bf16.msra.mxu0 %v9459_v24 }
 0x40b   :  { %6367 = vmatprep.subr.bf16.mxu0 %v9467_v28 }
 0x40c   :  { %6479 = vmatpush1.bf16.msra.mxu1 %v9414_v60  ;;  %v9495_v60 = vld [vmem:[#allocation11 + $0x10] ss:$24 sps:$4 sm:$0xff]  }
 0x40d   :  { %6480 = vmatprep.subr.bf16.mxu1 %v9422_v29  ;;  %v9500_v29 = vld [vmem:[#allocation11 + $0x44] ss:$24 sps:$4 sm:$0xff]  }
 0x40e   :  { %6368 = vmatpush1.bf16.msra.mxu0 %v9465_v30  ;;  %v9503_v30 = vld [vmem:[#allocation11 + $0x74] ss:$24 sps:$4 sm:$0xff]  }
 0x40f   :  { %6369 = vmatprep.subr.bf16.mxu0 %v9473_v31  ;;  %v9501_v31 = vld [vmem:[#allocation11 + $0x70] ss:$24 sps:$4 sm:$0xff]  }
 0x410   :  { %6481 = vmatpush1.bf16.msra.mxu1 %v9420_v11  ;;  %v9506_v11 = vld [vmem:[#allocation11 + $0xa4] ss:$24 sps:$4 sm:$0xff]  }
 0x411   :  { %6482 = vmatprep.subr.bf16.mxu1 %v9428_v32  ;;  %v9504_v32 = vld [vmem:[#allocation11 + $0xa0] ss:$24 sps:$4 sm:$0xff]  }
 0x412   :  { %6370 = vmatpush1.bf16.msra.mxu0 %v9471_v33  ;;  %v9509_v33 = vld [vmem:[#allocation11 + $0xd4] ss:$24 sps:$4 sm:$0xff]  }
 0x413   :  { %6371 = vmatprep.subr.bf16.mxu0 %v9479_v34  ;;  %v9507_v34 = vld [vmem:[#allocation11 + $0xd0] ss:$24 sps:$4 sm:$0xff]  }
 0x414   :  { %6483 = vmatpush1.bf16.msra.mxu1 %v9426_v38  ;;  %v9512_v38 = vld [vmem:[#allocation11 + $0x104] ss:$24 sps:$4 sm:$0xff]  }
 0x415   :  { %6484 = vmatprep.subr.bf16.mxu1 %v9434_v39  ;;  %v9510_v39 = vld [vmem:[#allocation11 + $0x100] ss:$24 sps:$4 sm:$0xff]  }
 0x416   :  { %6372 = vmatpush1.bf16.msra.mxu0 %v9477_v12  ;;  %v9515_v12 = vld [vmem:[#allocation11 + $0x134] ss:$24 sps:$4 sm:$0xff]  }
 0x417   :  { %6373 = vmatprep.subr.bf16.mxu0 %v9485_v40  ;;  %v9518_v40 = vld [vmem:[#allocation11 + $0x164] ss:$24 sps:$4 sm:$0xff]  }
 0x418   :  { %6485 = vmatpush1.bf16.msra.mxu1 %v9432_v41  ;;  %v9516_v41 = vld [vmem:[#allocation11 + $0x160] ss:$24 sps:$4 sm:$0xff]  }
 0x419   :  { %6486 = vmatprep.subr.bf16.mxu1 %v9440_v50  ;;  %v9521_v50 = vld [vmem:[#allocation11 + $0x194] ss:$24 sps:$4 sm:$0xff]  }
 0x41a   :  { %6374 = vmatpush1.bf16.msra.mxu0 %v9483_v42  ;;  %v9519_v42 = vld [vmem:[#allocation11 + $0x190] ss:$24 sps:$4 sm:$0xff]  }
 0x41b   :  { %6375 = vmatprep.subr.bf16.mxu0 %v9491_v43  ;;  %v9524_v43 = vld [vmem:[#allocation11 + $0x1c4] ss:$24 sps:$4 sm:$0xff]  }
 0x41c   :  { %6487 = vmatpush1.bf16.msra.mxu1 %v9438_v55  ;;  %v9522_v55 = vld [vmem:[#allocation11 + $0x1c0] ss:$24 sps:$4 sm:$0xff]  }
 0x41d   :  { %6488 = vmatprep.subr.bf16.mxu1 %v9446_v46  ;;  %v9527_v46 = vld [vmem:[#allocation11 + $0x1f4] ss:$24 sps:$4 sm:$0xff]  }
 0x41e   :  { %6376 = vmatpush1.bf16.msra.mxu0 %v9489_v47  ;;  %v9525_v47 = vld [vmem:[#allocation11 + $0x1f0] ss:$24 sps:$4 sm:$0xff]  }
 0x41f   :  { %6517 = vmatprep.subr.bf16.mxu0 %v9497_v17  ;;  %v9530_v17 = vld [vmem:[#allocation11 + $0x224] ss:$24 sps:$4 sm:$0xff]  }
 0x420   :  { %6489 = vmatpush1.bf16.msra.mxu1 %v9444_v51  ;;  %v9528_v51 = vld [vmem:[#allocation11 + $0x220] ss:$24 sps:$4 sm:$0xff]  }
 0x421   :  { %6490 = vmatprep.subr.bf16.mxu1 %v9452_v52  ;;  %v9533_v52 = vld [vmem:[#allocation11 + $0x254] ss:$24 sps:$4 sm:$0xff]  }
 0x424   :  { %6491 = vmatpush1.bf16.msra.mxu1 %v9450_v58  ;;  %v9531_v58 = vld [vmem:[#allocation11 + $0x250] ss:$24 sps:$4 sm:$0xff]  }
 0x425   :  { %6492 = vmatprep.subr.bf16.mxu1 %v9458_v61  ;;  %v9536_v61 = vld [vmem:[#allocation11 + $0x284] ss:$24 sps:$4 sm:$0xff]  }
 0x428   :  { %6493 = vmatpush1.bf16.msra.mxu1 %v9456_v62  ;;  %v9534_v62 = vld [vmem:[#allocation11 + $0x280] ss:$24 sps:$4 sm:$0xff]  }
 0x429   :  { %6494 = vmatprep.subr.bf16.mxu1 %v9464_v63  ;;  %v9539_v63 = vld [vmem:[#allocation11 + $0x2b4] ss:$24 sps:$4 sm:$0xff]  }
 0x42c   :  { %6495 = vmatpush1.bf16.msra.mxu1 %v9462_v0  ;;  %v9537_v0 = vld [vmem:[#allocation11 + $0x2b0] ss:$24 sps:$4 sm:$0xff]  }
 0x42d   :  { %6496 = vmatprep.subr.bf16.mxu1 %v9470_v1  ;;  %v9542_v1 = vld [vmem:[#allocation11 + $0x2e4] ss:$24 sps:$4 sm:$0xff]  }
 0x430   :  { %6497 = vmatpush1.bf16.msra.mxu1 %v9468_v15  ;;  %v9540_v15 = vld [vmem:[#allocation11 + $0x2e0] ss:$24 sps:$4 sm:$0xff]  }
 0x431   :  { %6498 = vmatprep.subr.bf16.mxu1 %v9476_v2  ;;  %v9545_v2 = vld [vmem:[#allocation11 + $0x314] ss:$24 sps:$4 sm:$0xff]  }
 0x434   :  { %6499 = vmatpush1.bf16.msra.mxu1 %v9474_v3  ;;  %v9639_v3 = vld [vmem:[#allocation14 + $0x40] sm:$0xff]  }
 0x435   :  { %6500 = vmatprep.subr.bf16.mxu1 %v9482_v4  ;;  %v9543_v4 = vld [vmem:[#allocation11 + $0x310] ss:$24 sps:$4 sm:$0xff]  }
 0x438   :  { %6501 = vmatpush1.bf16.msra.mxu1 %v9480_v5  ;;  %v9640_v5 = vld [vmem:[#allocation14] sm:$0xff]  }
 0x439   :  { %6502 = vmatprep.subr.bf16.mxu1 %v9488_v6  ;;  %v9548_v6 = vld [vmem:[#allocation11 + $0x344] ss:$24 sps:$4 sm:$0xff]  }
 0x43c   :  { %6503 = vmatpush1.bf16.msra.mxu1 %v9486_v53  ;;  %v9641_v53 = vld [vmem:[#allocation14 + $0x48] sm:$0xff]  }
 0x43d   :  { %6504 = vmatprep.subr.bf16.mxu1 %v9494_v7  ;;  %v9642_v7 = vld [vmem:[#allocation14 + $0x8] sm:$0xff]  }
 0x440   :  { %6505 = vmatpush1.bf16.msra.mxu1 %v9492_v8  ;;  %v9643_v8 = vld [vmem:[#allocation14 + $0x50] sm:$0xff]  }
 0x441   :  { %8150 = vmatprep.subr.bf16.mxu1 %v9639_v3  ;;  %v9600_v3 = vld [vmem:[#allocation11 + $0x6a0] ss:$24 sps:$4 sm:$0xff]  }
 0x456   :  { %v4472_v37 = vpop.f32.mrb[12].mxu1 }
 0x457   :  { %v8240_v56 = vadd.f32 %v4472_v37, %v2643_v54  ;;  %v4474_v59 = vpop.f32.mrb[13].mxu1  ;;  %v9644_v37 = vld [vmem:[#allocation14 + $0x10] sm:$0xff]  }
 0x458   :  { %v8241_v13 = vadd.f32 %v4474_v59, %v2647_v9  ;;  %v4476_v14 = vpop.f32.mrb[14].mxu1  ;;  %v9549_v59 = vld [vmem:[#allocation11 + $0x370] ss:$24 sps:$4 sm:$0xff]  }
 0x459   :  { %v8242_v57 = vadd.f32 %v4476_v14, %v2643_v54  ;;  %v4478_v16 = vpop.f32.mrb[15].mxu1  ;;  %v4485_v19 = vmax.f32 %v8240_v56, 0.0  ;;  %v9546_v54 = vld [vmem:[#allocation11 + $0x340] ss:$24 sps:$4 sm:$0xff]   ;;  %v9647_v14 = vld [vmem:[#allocation14 + $0x60] sm:$0xff]  }
 0x45a   :  { %v8243_v18 = vadd.f32 %v4478_v16, %v2647_v9  ;;  %v4486_v21 = vmax.f32 %v8241_v13, 0.0  ;;  %v9551_v9 = vld [vmem:[#allocation11 + $0x374] ss:$24 sps:$4 sm:$0xff]   ;;  %v9645_v56 = vld [vmem:[#allocation14 + $0x58] sm:$0xff]  }
 0x45b   :  { %v4491_v20 = vmax.f32 %v8242_v57, 0.0  ;;  %v9554_v13 = vld [vmem:[#allocation11 + $0x3a4] ss:$24 sps:$4 sm:$0xff]   ;;  %v9552_v57 = vld [vmem:[#allocation11 + $0x3a0] ss:$24 sps:$4 sm:$0xff]  }
 0x45c   :  { %v4492_v22 = vmax.f32 %v8243_v18, 0.0  ;;  %v9648_v16 = vld [vmem:[#allocation14 + $0x20] sm:$0xff]   ;;  %v9649_v18 = vld [vmem:[#allocation14 + $0x68] sm:$0xff]  }
 0x45d   :  { %v10277_v24 = vpack.c.bf16 %v4491_v20, %v4485_v19  ;;  %v9555_v19 = vld [vmem:[#allocation11 + $0x3d0] ss:$24 sps:$4 sm:$0xff]   ;;  %v9560_v20 = vld [vmem:[#allocation11 + $0x404] ss:$24 sps:$4 sm:$0xff]  }
 0x45e   :  { %v10279_v28 = vpack.c.bf16 %v4492_v22, %v4486_v21  ;;  %v9650_v21 = vld [vmem:[#allocation14 + $0x28] sm:$0xff]   ;;  %v9558_v22 = vld [vmem:[#allocation11 + $0x400] ss:$24 sps:$4 sm:$0xff]  }
 0x460   :  { %6377 = vmatprep.mubr.bf16.mxu0 %v10279_v28  ;;  %6506 = vmatprep.mubr.bf16.mxu1 %v10279_v28 }
 0x461   :  { %6378 = vmatmul.mubr.bf16.vlgmr.msra.gmra.mrb[12].mxu0 %v10277_v24  ;;  %6507 = vmatmul.mubr.bf16.vlgmr.msra.gmra.mrb[16].mxu1 %v10277_v24 }
 0x462   :  { %6518 = vmatpush1.bf16.msra.mxu0 %v9495_v60  ;;  %6549 = vmatprep.mubr.bf16.mxu0 %v10261_v27  ;;  %v9513_v27 = vld [vmem:[#allocation11 + $0x130] ss:$24 sps:$4 sm:$0xff]   ;;  %v9563_v60 = vld [vmem:[#allocation11 + $0x434] ss:$24 sps:$4 sm:$0xff]  }
 0x463   :  { %6519 = vmatprep.subr.bf16.mxu0 %v9500_v29  ;;  %8151 = vmatpush3.bf16.msra.mxu1 %v9640_v5  ;;  %v9651_v29 = vld [vmem:[#allocation14 + $0x70] sm:$0xff]   ;;  %v9603_v5 = vld [vmem:[#allocation11 + $0x6d0] ss:$24 sps:$4 sm:$0xff]  }
 0x464   :  { %8152 = vmatprep.subr.bf16.mxu1 %v9641_v53  ;;  %v9611_v53 = vld [vmem:[#allocation11 + $0x734] ss:$24 sps:$4 sm:$0xff]  }
 0x466   :  { %6520 = vmatpush1.bf16.msra.mxu0 %v9498_v44  ;;  %v9561_v44 = vld [vmem:[#allocation11 + $0x430] ss:$24 sps:$4 sm:$0xff]  }
 0x467   :  { %6521 = vmatprep.subr.bf16.mxu0 %v9503_v30  ;;  %8153 = vmatpush3.bf16.msra.mxu1 %v9642_v7  ;;  %v9652_v30 = vld [vmem:[#allocation14 + $0x30] sm:$0xff]  }
 0x468   :  { %8154 = vmatprep.subr.bf16.mxu1 %v9643_v8  ;;  %v9614_v7 = vld [vmem:[#allocation11 + $0x764] ss:$24 sps:$4 sm:$0xff]   ;;  %v9612_v8 = vld [vmem:[#allocation11 + $0x760] ss:$24 sps:$4 sm:$0xff]  }
 0x46a   :  { %6522 = vmatpush1.bf16.msra.mxu0 %v9501_v31  ;;  %v9566_v31 = vld [vmem:[#allocation11 + $0x464] ss:$24 sps:$4 sm:$0xff]  }
 0x46b   :  { %6523 = vmatprep.subr.bf16.mxu0 %v9506_v11  ;;  %8155 = vmatpush3.bf16.msra.mxu1 %v9644_v37  ;;  %v9653_v11 = vld [vmem:[#allocation14 + $0x78] sm:$0xff]  }
 0x46c   :  { %8156 = vmatprep.subr.bf16.mxu1 %v9645_v56  ;;  %v9620_v37 = vld [vmem:[#allocation11 + $0x7c4] ss:$24 sps:$4 sm:$0xff]   ;;  %v9618_v56 = vld [vmem:[#allocation11 + $0x7c0] ss:$24 sps:$4 sm:$0xff]  }
 0x46e   :  { %6524 = vmatpush1.bf16.msra.mxu0 %v9504_v32  ;;  %v9564_v32 = vld [vmem:[#allocation11 + $0x460] ss:$24 sps:$4 sm:$0xff]  }
 0x46f   :  { %6525 = vmatprep.subr.bf16.mxu0 %v9509_v33  ;;  %v9654_v33 = vld [vmem:[#allocation14 + $0x38] sm:$0xff]  }
 0x472   :  { %6526 = vmatpush1.bf16.msra.mxu0 %v9507_v34  ;;  %v9569_v34 = vld [vmem:[#allocation11 + $0x494] ss:$24 sps:$4 sm:$0xff]  }
 0x473   :  { %6527 = vmatprep.subr.bf16.mxu0 %v9512_v38  ;;  %v9655_v38 = vld [vmem:[#allocation14 + $0xc0] sm:$0xff]  }
 0x476   :  { %6528 = vmatpush1.bf16.msra.mxu0 %v9510_v39  ;;  %v9567_v39 = vld [vmem:[#allocation11 + $0x490] ss:$24 sps:$4 sm:$0xff]  }
 0x477   :  { %6529 = vmatprep.subr.bf16.mxu0 %v9515_v12  ;;  %v9572_v12 = vld [vmem:[#allocation11 + $0x4c4] ss:$24 sps:$4 sm:$0xff]  }
 0x47a   :  { %6530 = vmatpush1.bf16.msra.mxu0 %v9513_v27  ;;  %v9570_v27 = vld [vmem:[#allocation11 + $0x4c0] ss:$24 sps:$4 sm:$0xff]  }
 0x47b   :  { %6531 = vmatprep.subr.bf16.mxu0 %v9518_v40  ;;  %v9575_v40 = vld [vmem:[#allocation11 + $0x4f4] ss:$24 sps:$4 sm:$0xff]  }
 0x47e   :  { %6532 = vmatpush1.bf16.msra.mxu0 %v9516_v41  ;;  %v9573_v41 = vld [vmem:[#allocation11 + $0x4f0] ss:$24 sps:$4 sm:$0xff]  }
 0x47f   :  { %6533 = vmatprep.subr.bf16.mxu0 %v9521_v50  ;;  %v9578_v50 = vld [vmem:[#allocation11 + $0x524] ss:$24 sps:$4 sm:$0xff]  }
 0x482   :  { %6534 = vmatpush1.bf16.msra.mxu0 %v9519_v42  ;;  %v9576_v42 = vld [vmem:[#allocation11 + $0x520] ss:$24 sps:$4 sm:$0xff]  }
 0x483   :  { %6535 = vmatprep.subr.bf16.mxu0 %v9524_v43  ;;  %v9581_v43 = vld [vmem:[#allocation11 + $0x554] ss:$24 sps:$4 sm:$0xff]  }
 0x486   :  { %6536 = vmatpush1.bf16.msra.mxu0 %v9522_v55  ;;  %v9579_v55 = vld [vmem:[#allocation11 + $0x550] ss:$24 sps:$4 sm:$0xff]  }
 0x487   :  { %6537 = vmatprep.subr.bf16.mxu0 %v9527_v46  ;;  %v9584_v46 = vld [vmem:[#allocation11 + $0x584] ss:$24 sps:$4 sm:$0xff]  }
 0x48a   :  { %6538 = vmatpush1.bf16.msra.mxu0 %v9525_v47  ;;  %v9582_v47 = vld [vmem:[#allocation11 + $0x580] ss:$24 sps:$4 sm:$0xff]  }
 0x48b   :  { %6539 = vmatprep.subr.bf16.mxu0 %v9530_v17  ;;  %v9587_v17 = vld [vmem:[#allocation11 + $0x5b4] ss:$24 sps:$4 sm:$0xff]  }
 0x48e   :  { %6540 = vmatpush1.bf16.msra.mxu0 %v9528_v51  ;;  %v9585_v51 = vld [vmem:[#allocation11 + $0x5b0] ss:$24 sps:$4 sm:$0xff]  }
 0x48f   :  { %6541 = vmatprep.subr.bf16.mxu0 %v9533_v52  ;;  %v9590_v52 = vld [vmem:[#allocation11 + $0x5e4] ss:$24 sps:$4 sm:$0xff]  }
 0x492   :  { %6542 = vmatpush1.bf16.msra.mxu0 %v9531_v58  ;;  %v9588_v58 = vld [vmem:[#allocation11 + $0x5e0] ss:$24 sps:$4 sm:$0xff]  }
 0x493   :  { %6543 = vmatprep.subr.bf16.mxu0 %v9536_v61  ;;  %v9593_v61 = vld [vmem:[#allocation11 + $0x614] ss:$24 sps:$4 sm:$0xff]  }
 0x496   :  { %6544 = vmatpush1.bf16.msra.mxu0 %v9534_v62  ;;  %v9591_v62 = vld [vmem:[#allocation11 + $0x610] ss:$24 sps:$4 sm:$0xff]  }
 0x497   :  { %6545 = vmatprep.subr.bf16.mxu0 %v9539_v63  ;;  %v9596_v63 = vld [vmem:[#allocation11 + $0x644] ss:$24 sps:$4 sm:$0xff]  }
 0x49a   :  { %6546 = vmatpush1.bf16.msra.mxu0 %v9537_v0  ;;  %v9594_v0 = vld [vmem:[#allocation11 + $0x640] ss:$24 sps:$4 sm:$0xff]  }
 0x49b   :  { %6547 = vmatprep.subr.bf16.mxu0 %v9542_v1  ;;  %v9599_v1 = vld [vmem:[#allocation11 + $0x674] ss:$24 sps:$4 sm:$0xff]  }
 0x49e   :  { %6548 = vmatpush1.bf16.msra.mxu0 %v9540_v15  ;;  %v9597_v15 = vld [vmem:[#allocation11 + $0x670] ss:$24 sps:$4 sm:$0xff]  }
 0x49f   :  { %6560 = vmatprep.subr.bf16.mxu0 %v9545_v2  ;;  %v9602_v2 = vld [vmem:[#allocation11 + $0x6a4] ss:$24 sps:$4 sm:$0xff]  }
 0x4a1   :  { %6550 = vmatmul.mubr.bf16.vlgmr.msra.gmra.mrb[16].mxu0 %v10257_v25  ;;  %v9646_v25 = vld [vmem:[#allocation14 + $0x18] sm:$0xff]  }
 0x4a2   :  { %6561 = vmatpush1.bf16.msra.mxu0 %v9543_v4  ;;  %6592 = vmatprep.mubr.bf16.mxu0 %v10263_v10  ;;  %v9557_v10 = vld [vmem:[#allocation11 + $0x3d4] ss:$24 sps:$4 sm:$0xff]  }
 0x4a3   :  { %6562 = vmatprep.subr.bf16.mxu0 %v9548_v6  ;;  %8157 = vmatpush3.bf16.msra.mxu1 %v9646_v25  ;;  %v9605_v4 = vld [vmem:[#allocation11 + $0x6d4] ss:$24 sps:$4 sm:$0xff]   ;;  %v9608_v6 = vld [vmem:[#allocation11 + $0x704] ss:$24 sps:$4 sm:$0xff]  }
 0x4a4   :  { %8158 = vmatprep.subr.bf16.mxu1 %v9647_v14  ;;  %v9626_v25 = vld [vmem:[#allocation11 + $0x824] ss:$24 sps:$4 sm:$0xff]   ;;  %v9624_v14 = vld [vmem:[#allocation11 + $0x820] ss:$24 sps:$4 sm:$0xff]  }
 0x4a6   :  { %6563 = vmatpush1.bf16.msra.mxu0 %v9546_v54  ;;  %v9617_v54 = vld [vmem:[#allocation11 + $0x794] ss:$24 sps:$4 sm:$0xff]  }
 0x4a7   :  { %6564 = vmatprep.subr.bf16.mxu0 %v9551_v9  ;;  %8159 = vmatpush3.bf16.msra.mxu1 %v9648_v16  ;;  %v9615_v9 = vld [vmem:[#allocation11 + $0x790] ss:$24 sps:$4 sm:$0xff]   ;;  %v9632_v16 = vld [vmem:[#allocation11 + $0x884] ss:$24 sps:$4 sm:$0xff]  }
 0x4a8   :  { %8160 = vmatprep.subr.bf16.mxu1 %v9649_v18  ;;  %v9630_v18 = vld [vmem:[#allocation11 + $0x880] ss:$24 sps:$4 sm:$0xff]  }
 0x4aa   :  { %6565 = vmatpush1.bf16.msra.mxu0 %v9549_v59  ;;  %v9623_v59 = vld [vmem:[#allocation11 + $0x7f4] ss:$24 sps:$4 sm:$0xff]  }
 0x4ab   :  { %6566 = vmatprep.subr.bf16.mxu0 %v9554_v13  ;;  %8161 = vmatpush3.bf16.msra.mxu1 %v9650_v21  ;;  %v9621_v13 = vld [vmem:[#allocation11 + $0x7f0] ss:$24 sps:$4 sm:$0xff]   ;;  %v9638_v21 = vld [vmem:[#allocation11 + $0x8e4] ss:$24 sps:$4 sm:$0xff]  }
 0x4ac   :  { %8162 = vmatprep.subr.bf16.mxu1 %v9651_v29 }
 0x4ae   :  { %6567 = vmatpush1.bf16.msra.mxu0 %v9552_v57  ;;  %v9629_v57 = vld [vmem:[#allocation11 + $0x854] ss:$24 sps:$4 sm:$0xff]  }
 0x4af   :  { %6568 = vmatprep.subr.bf16.mxu0 %v9557_v10  ;;  %8163 = vmatpush3.bf16.msra.mxu1 %v9652_v30  ;;  %v9627_v10 = vld [vmem:[#allocation11 + $0x850] ss:$24 sps:$4 sm:$0xff]  }
 0x4b0   :  { %8164 = vmatprep.subr.bf16.mxu1 %v9653_v11 }
 0x4b2   :  { %6569 = vmatpush1.bf16.msra.mxu0 %v9555_v19  ;;  %v9635_v19 = vld [vmem:[#allocation11 + $0x8b4] ss:$24 sps:$4 sm:$0xff]  }
 0x4b3   :  { %6570 = vmatprep.subr.bf16.mxu0 %v9560_v20  ;;  %8165 = vmatpush3.bf16.msra.mxu1 %v9654_v33  ;;  %v9633_v20 = vld [vmem:[#allocation11 + $0x8b0] ss:$24 sps:$4 sm:$0xff]  }
 0x4b4   :  { %8172 = vmatprep.subr.bf16.mxu1 %v9655_v38 }
 0x4b6   :  { %6571 = vmatpush1.bf16.msra.mxu0 %v9558_v22  ;;  %v9636_v22 = vld [vmem:[#allocation11 + $0x8e0] ss:$24 sps:$4 sm:$0xff]  }
 0x4b7   :  { %6572 = vmatprep.subr.bf16.mxu0 %v9563_v60  ;;  %v10291_v60 = vld [vmem:[#allocation13] sm:$0x3f] }
 0x4b8   :  { %v4792_v29 = vrot.slane %v10291_v60, %v10184_v45  ;;  %v4796_v30 = vrot.slane %v10291_v60, %v10187_v23 }
 0x4ba   :  { %6573 = vmatpush1.bf16.msra.mxu0 %v9561_v44  ;;  %v4800_v44 = vrot.slane %v10291_v60, %v10204_v35 }
 0x4bb   :  { %6574 = vmatprep.subr.bf16.mxu0 %v9566_v31  ;;  %v4804_v31 = vrot.slane %v10291_v60, %v10207_v36 }
 0x4be   :  { %6575 = vmatpush1.bf16.msra.mxu0 %v9564_v32 }
 0x4bf   :  { %6576 = vmatprep.subr.bf16.mxu0 %v9569_v34 }
 0x4c2   :  { %6577 = vmatpush1.bf16.msra.mxu0 %v9567_v39 }
 0x4c3   :  { %6578 = vmatprep.subr.bf16.mxu0 %v9572_v12 }
 0x4c6   :  { %6579 = vmatpush1.bf16.msra.mxu0 %v9570_v27 }
 0x4c7   :  { %6580 = vmatprep.subr.bf16.mxu0 %v9575_v40 }
 0x4ca   :  { %6581 = vmatpush1.bf16.msra.mxu0 %v9573_v41 }
 0x4cb   :  { %6582 = vmatprep.subr.bf16.mxu0 %v9578_v50 }
 0x4ce   :  { %6583 = vmatpush1.bf16.msra.mxu0 %v9576_v42 }
 0x4cf   :  { %6584 = vmatprep.subr.bf16.mxu0 %v9581_v43 }
 0x4d2   :  { %6585 = vmatpush1.bf16.msra.mxu0 %v9579_v55 }
 0x4d3   :  { %6586 = vmatprep.subr.bf16.mxu0 %v9584_v46 }
 0x4d6   :  { %6587 = vmatpush1.bf16.msra.mxu0 %v9582_v47 }
 0x4d7   :  { %6588 = vmatprep.subr.bf16.mxu0 %v9587_v17 }
 0x4da   :  { %6589 = vmatpush1.bf16.msra.mxu0 %v9585_v51 }
 0x4db   :  { %6590 = vmatprep.subr.bf16.mxu0 %v9590_v52 }
 0x4de   :  { %6591 = vmatpush1.bf16.msra.mxu0 %v9588_v58 }
 0x4df   :  { %6603 = vmatprep.subr.bf16.mxu0 %v9593_v61 }
 0x4e1   :  { %6593 = vmatmul.mubr.bf16.vlgmr.msra.gmra.mrb[16].mxu0 %v10259_v26  ;;  %v9606_v26 = vld [vmem:[#allocation11 + $0x700] ss:$24 sps:$4 sm:$0xff]  }
 0x4e2   :  { %6604 = vmatpush1.bf16.msra.mxu0 %v9591_v62  ;;  %6635 = vmatprep.mubr.bf16.mxu0 %v10279_v28  ;;  %v9609_v28 = vld [vmem:[#allocation11 + $0x730] ss:$24 sps:$4 sm:$0xff]  }
 0x4e3   :  { %6605 = vmatprep.subr.bf16.mxu0 %v9596_v63 }
 0x4e6   :  { %6606 = vmatpush1.bf16.msra.mxu0 %v9594_v0  ;;  %v9656_v0 = vld [vmem:[#allocation14 + $0x80] sm:$0xff]  }
 0x4e7   :  { %6607 = vmatprep.subr.bf16.mxu0 %v9599_v1  ;;  %v9657_v1 = vld [vmem:[#allocation14 + $0xc8] sm:$0xff]  }
 0x4ea   :  { %6608 = vmatpush1.bf16.msra.mxu0 %v9597_v15  ;;  %v9658_v15 = vld [vmem:[#allocation14 + $0x88] sm:$0xff]  }
 0x4eb   :  { %6609 = vmatprep.subr.bf16.mxu0 %v9602_v2  ;;  %v9659_v2 = vld [vmem:[#allocation14 + $0xd0] sm:$0xff]  }
 0x4ee   :  { %6610 = vmatpush1.bf16.msra.mxu0 %v9600_v3  ;;  %v9660_v3 = vld [vmem:[#allocation14 + $0x90] sm:$0xff]  }
 0x4ef   :  { %6611 = vmatprep.subr.bf16.mxu0 %v9605_v4  ;;  %v9661_v4 = vld [vmem:[#allocation14 + $0xd8] sm:$0xff]  }
 0x4f2   :  { %6612 = vmatpush1.bf16.msra.mxu0 %v9603_v5  ;;  %v9662_v5 = vld [vmem:[#allocation14 + $0x98] sm:$0xff]  }
 0x4f3   :  { %6613 = vmatprep.subr.bf16.mxu0 %v9608_v6  ;;  %v9663_v6 = vld [vmem:[#allocation14 + $0xe0] sm:$0xff]  }
 0x4f6   :  { %6614 = vmatpush1.bf16.msra.mxu0 %v9606_v26  ;;  %v9664_v26 = vld [vmem:[#allocation14 + $0xa0] sm:$0xff]  }
 0x4f7   :  { %6615 = vmatprep.subr.bf16.mxu0 %v9611_v53  ;;  %v9665_v53 = vld [vmem:[#allocation14 + $0xe8] sm:$0xff]  }
 0x4fa   :  { %6616 = vmatpush1.bf16.msra.mxu0 %v9609_v28  ;;  %v9666_v28 = vld [vmem:[#allocation14 + $0xa8] sm:$0xff]  }
 0x4fb   :  { %6617 = vmatprep.subr.bf16.mxu0 %v9614_v7  ;;  %v9667_v7 = vld [vmem:[#allocation14 + $0xf0] sm:$0xff]  }
 0x4fe   :  { %6618 = vmatpush1.bf16.msra.mxu0 %v9612_v8  ;;  %v9668_v8 = vld [vmem:[#allocation14 + $0xb0] sm:$0xff]  }
 0x4ff   :  { %6619 = vmatprep.subr.bf16.mxu0 %v9617_v54  ;;  %v9669_v54 = vld [vmem:[#allocation14 + $0xf8] sm:$0xff]  }
 0x502   :  { %6620 = vmatpush1.bf16.msra.mxu0 %v9615_v9  ;;  %v9670_v9 = vld [vmem:[#allocation14 + $0xb8] sm:$0xff]  }
 0x503   :  { %6621 = vmatprep.subr.bf16.mxu0 %v9620_v37  ;;  %v9671_v37 = vld [vmem:[#allocation14 + $0x140] sm:$0xff]  }
 0x506   :  { %6622 = vmatpush1.bf16.msra.mxu0 %v9618_v56  ;;  %v9672_v56 = vld [vmem:[#allocation14 + $0x100] sm:$0xff]  }
 0x507   :  { %6623 = vmatprep.subr.bf16.mxu0 %v9623_v59  ;;  %v9673_v59 = vld [vmem:[#allocation14 + $0x148] sm:$0xff]  }
 0x50a   :  { %6624 = vmatpush1.bf16.msra.mxu0 %v9621_v13  ;;  %v9674_v13 = vld [vmem:[#allocation14 + $0x108] sm:$0xff]  }
 0x50b   :  { %6625 = vmatprep.subr.bf16.mxu0 %v9626_v25  ;;  %v9675_v25 = vld [vmem:[#allocation14 + $0x150] sm:$0xff]  }
 0x50e   :  { %6626 = vmatpush1.bf16.msra.mxu0 %v9624_v14  ;;  %v9676_v14 = vld [vmem:[#allocation14 + $0x110] sm:$0xff]  }
 0x50f   :  { %6627 = vmatprep.subr.bf16.mxu0 %v9629_v57  ;;  %v9677_v57 = vld [vmem:[#allocation14 + $0x158] sm:$0xff]  }
 0x512   :  { %6628 = vmatpush1.bf16.msra.mxu0 %v9627_v10  ;;  %v9678_v10 = vld [vmem:[#allocation14 + $0x118] sm:$0xff]  }
 0x513   :  { %6629 = vmatprep.subr.bf16.mxu0 %v9632_v16  ;;  %v9679_v16 = vld [vmem:[#allocation14 + $0x160] sm:$0xff]  }
 0x516   :  { %6630 = vmatpush1.bf16.msra.mxu0 %v9630_v18  ;;  %v9680_v18 = vld [vmem:[#allocation14 + $0x120] sm:$0xff]  }
 0x517   :  { %6631 = vmatprep.subr.bf16.mxu0 %v9635_v19  ;;  %v9681_v19 = vld [vmem:[#allocation14 + $0x168] sm:$0xff]  }
 0x51a   :  { %6632 = vmatpush1.bf16.msra.mxu0 %v9633_v20  ;;  %v9682_v20 = vld [vmem:[#allocation14 + $0x128] sm:$0xff]  }
 0x51b   :  { %6633 = vmatprep.subr.bf16.mxu0 %v9638_v21  ;;  %v9683_v21 = vld [vmem:[#allocation14 + $0x170] sm:$0xff]  }
 0x51e   :  { %6634 = vmatpush1.bf16.msra.mxu0 %v9636_v22  ;;  %v9684_v22 = vld [vmem:[#allocation14 + $0x130] sm:$0xff]  }
 0x521   :  { %6636 = vmatmul.mubr.bf16.vlgmr.msra.gmra.mrb[16].mxu0 %v10277_v24 }
 0x534   :  { %v6379_v11 = vpop.f32.mrb[12].mxu0  ;;  %v6508_v32 = vpop.f32.mrb[16].mxu1 }
 0x535   :  { %v8244_v33 = vadd.f32 %v6379_v11, %v4792_v29  ;;  %v8248_v34 = vadd.f32 %v6508_v32, %v4800_v44  ;;  %v6381_v38 = vpop.f32.mrb[13].mxu0  ;;  %v6510_v24 = vpop.f32.mrb[17].mxu1 }
 0x536   :  { %v8245_v39 = vadd.f32 %v6381_v38, %v4796_v30  ;;  %v8249_v12 = vadd.f32 %v6510_v24, %v4804_v31  ;;  %v6383_v27 = vpop.f32.mrb[14].mxu0  ;;  %v6512_v40 = vpop.f32.mrb[18].mxu1 }
 0x537   :  { %v8246_v45 = vadd.f32 %v6383_v27, %v4792_v29  ;;  %v8250_v41 = vadd.f32 %v6512_v40, %v4800_v44  ;;  %v6385_v50 = vpop.f32.mrb[15].mxu0  ;;  %v6514_v35 = vpop.f32.mrb[19].mxu1  ;;  %v6646_v23 = vmax.f32 %v8244_v33, 0.0  ;;  %v6648_v55 = vmax.f32 %v8248_v34, 0.0  ;;  %v9685_v29 = vld [vmem:[#allocation14 + $0x178] sm:$0xff]  }
 0x538   :  { %v8247_v42 = vadd.f32 %v6385_v50, %v4796_v30  ;;  %v8251_v43 = vadd.f32 %v6514_v35, %v4804_v31  ;;  %v6647_v47 = vmax.f32 %v8245_v39, 0.0  ;;  %v6649_v17 = vmax.f32 %v8249_v12, 0.0  ;;  %v9686_v44 = vld [vmem:[#allocation14 + $0x138] sm:$0xff]  }
 0x539   :  { %v6652_v46 = vmax.f32 %v8246_v45, 0.0  ;;  %v6654_v36 = vmax.f32 %v8250_v41, 0.0  ;;  %v4808_v30 = vrot.slane %v10291_v60, %v10224_v48  ;;  %v4812_v31 = vrot.slane %v10291_v60, %v10227_v49 }
 0x53a   :  { %v6653_v51 = vmax.f32 %v8247_v42, 0.0  ;;  %v6655_v52 = vmax.f32 %v8251_v43, 0.0 }
 0x53b   :  { %v6658_v58 = vpack.c.bf16 %v6652_v46, %v6646_v23  ;;  %v6660_v61 = vpack.c.bf16 %v6654_v36, %v6648_v55  ;;  %v8101_v55 = vld [vmem:[#allocation16] ss:$0 sm:$0xff] }
 0x53c   :  { %v6659_v62 = vpack.c.bf16 %v6653_v51, %v6647_v47  ;;  %v6661_v63 = vpack.c.bf16 %v6655_v52, %v6649_v17 }
 0x53e   :  { %7087 = vmatprep.mubr.bf16.mxu1 %v6659_v62 }
 0x53f   :  { %7088 = vmatmul.mubr.bf16.vlgmr.msra.gmra.mrb[20].mxu1 %v6658_v58 }
 0x540   :  { %8173 = vmatpush3.bf16.msra.mxu1 %v9656_v0  ;;  %7128 = vmatprep.mubr.bf16.mxu1 %v6661_v63 }
 0x541   :  { %8174 = vmatprep.subr.bf16.mxu1 %v9657_v1 }
 0x544   :  { %8175 = vmatpush3.bf16.msra.mxu1 %v9658_v15 }
 0x545   :  { %8176 = vmatprep.subr.bf16.mxu1 %v9659_v2 }
 0x548   :  { %8177 = vmatpush3.bf16.msra.mxu1 %v9660_v3 }
 0x549   :  { %8178 = vmatprep.subr.bf16.mxu1 %v9661_v4 }
 0x54c   :  { %8179 = vmatpush3.bf16.msra.mxu1 %v9662_v5 }
 0x54d   :  { %8180 = vmatprep.subr.bf16.mxu1 %v9663_v6 }
 0x550   :  { %8181 = vmatpush3.bf16.msra.mxu1 %v9664_v26 }
 0x551   :  { %8182 = vmatprep.subr.bf16.mxu1 %v9665_v53 }
 0x554   :  { %8183 = vmatpush3.bf16.msra.mxu1 %v9666_v28 }
 0x555   :  { %8184 = vmatprep.subr.bf16.mxu1 %v9667_v7 }
 0x558   :  { %8185 = vmatpush3.bf16.msra.mxu1 %v9668_v8 }
 0x559   :  { %8186 = vmatprep.subr.bf16.mxu1 %v9669_v54 }
 0x55c   :  { %8187 = vmatpush3.bf16.msra.mxu1 %v9670_v9 }
 0x55d   :  { %8194 = vmatprep.subr.bf16.mxu1 %v9671_v37 }
 0x55f   :  { %7129 = vmatmul.mubr.bf16.vlgmr.msra.gmra.mrb[24].mxu1 %v6660_v61 }
 0x560   :  { %8195 = vmatpush3.bf16.msra.mxu1 %v9672_v56 }
 0x561   :  { %8196 = vmatprep.subr.bf16.mxu1 %v9673_v59 }
 0x564   :  { %8197 = vmatpush3.bf16.msra.mxu1 %v9674_v13 }
 0x565   :  { %8198 = vmatprep.subr.bf16.mxu1 %v9675_v25 }
 0x568   :  { %8199 = vmatpush3.bf16.msra.mxu1 %v9676_v14 }
 0x569   :  { %8200 = vmatprep.subr.bf16.mxu1 %v9677_v57 }
 0x56c   :  { %8201 = vmatpush3.bf16.msra.mxu1 %v9678_v10 }
 0x56d   :  { %8202 = vmatprep.subr.bf16.mxu1 %v9679_v16 }
 0x570   :  { %8203 = vmatpush3.bf16.msra.mxu1 %v9680_v18 }
 0x571   :  { %8204 = vmatprep.subr.bf16.mxu1 %v9681_v19 }
 0x574   :  { %8205 = vmatpush3.bf16.msra.mxu1 %v9682_v20 }
 0x575   :  { %8206 = vmatprep.subr.bf16.mxu1 %v9683_v21 }
 0x578   :  { %8207 = vmatpush3.bf16.msra.mxu1 %v9684_v22 }
 0x579   :  { %8208 = vmatprep.subr.bf16.mxu1 %v9685_v29 }
 0x57c   :  { %8209 = vmatpush3.bf16.msra.mxu1 %v9686_v44 }
 0x5f4   :  { %v6637_v11 = vpop.f32.mrb[16].mxu0 }
 0x5f5   :  { %v8252_v32 = vadd.f32 %v6637_v11, %v4808_v30  ;;  %v6639_v33 = vpop.f32.mrb[17].mxu0 }
 0x5f6   :  { %v8253_v34 = vadd.f32 %v6639_v33, %v4812_v31  ;;  %v6641_v38 = vpop.f32.mrb[18].mxu0 }
 0x5f7   :  { %v8254_v24 = vadd.f32 %v6641_v38, %v4808_v30  ;;  %v6643_v39 = vpop.f32.mrb[19].mxu0  ;;  %v6650_v27 = vmax.f32 %v8252_v32, 0.0 }
 0x5f8   :  { %v8255_v12 = vadd.f32 %v6643_v39, %v4812_v31  ;;  %v6651_v45 = vmax.f32 %v8253_v34, 0.0 }
 0x5f9   :  { %v6656_v40 = vmax.f32 %v8254_v24, 0.0 }
 0x5fa   :  { %v6657_v41 = vmax.f32 %v8255_v12, 0.0 }
 0x5fb   :  { %v6662_v50 = vpack.c.bf16 %v6656_v40, %v6650_v27 }
 0x5fc   :  { %v6663_v35 = vpack.c.bf16 %v6657_v41, %v6651_v45 }
 0x5fe   :  { %7169 = vmatprep.mubr.bf16.mxu1 %v6663_v35 }
 0x5ff   :  { %7170 = vmatmul.mubr.bf16.vlgmr.msra.gmra.mrb[28].mxu1 %v6662_v50 }
 0x612   :  { %v8166_v48 = vpop.f32.mrb[20].mxu1 }
 0x613   :  { %v8167_v42 = vpop.f32.mrb[21].mxu1 }
 0x614   :  { %v8168_v43 = vadd.f32 %v8167_v42, %v8166_v48  ;;  %v8169_v49 = vpop.f32.mrb[22].mxu1 }
 0x615   :  { %v8170_v60 = vpop.f32.mrb[23].mxu1 }
 0x616   :  { %v8171_v23 = vadd.f32 %v8170_v60, %v8169_v49  ;;  %v7090_v47 = vadd.f32 %v8168_v43, %v8101_v55 }
 0x618   :  { %v7093_v58 = vadd.f32 %v8171_v23, %v8101_v55 }
 0x632   :  { %v8188_v46 = vpop.f32.mrb[24].mxu1 }
 0x633   :  { %v8189_v36 = vpop.f32.mrb[25].mxu1 }
 0x634   :  { %v8190_v17 = vadd.f32 %v8189_v36, %v8188_v46  ;;  %v8191_v51 = vpop.f32.mrb[26].mxu1 }
 0x635   :  { %v8192_v52 = vpop.f32.mrb[27].mxu1 }
 0x636   :  { %v7131_v61 = vadd.f32 %v8190_v17, %v7090_v47  ;;  %v8193_v62 = vadd.f32 %v8192_v52, %v8191_v51 }
 0x638   :  { %v7134_v63 = vadd.f32 %v8193_v62, %v7093_v58 }
 0x6d2   :  { %v8210_v0 = vpop.f32.mrb[28].mxu1 }
 0x6d3   :  { %v8211_v1 = vpop.f32.mrb[29].mxu1 }
 0x6d4   :  { %v8212_v15 = vadd.f32 %v8211_v1, %v8210_v0  ;;  %v8213_v2 = vpop.f32.mrb[30].mxu1 }
 0x6d5   :  { %v8214_v3 = vpop.f32.mrb[31].mxu1 }
 0x6d6   :  { %v7172_v4 = vadd.f32 %v8212_v15, %v7131_v61  ;;  %v8215_v5 = vadd.f32 %v8214_v3, %v8213_v2 }
 0x6d8   :  { %7178 = vst [vmem:[#allocation17] sm:$0xff] %v7172_v4  ;;  %v7175_v6 = vadd.f32 %v8215_v5, %v7134_v63  ;;  %7180 = vmax.xlane.f32.xlu0 %v7172_v4 }
 0x6da   :  { %7179 = vst [vmem:[#allocation17 + $0x8] sm:$0xff] %v7175_v6 }
 0x6dc   :  { %7182 = vmax.xlane.f32.xlu0 %v7175_v6 }
 0x765   :  { %v7181_v26 = vpop.xlane.xlu0 %7180 }
 0x766   :  { %v7184_v53 = vsub.f32 %v7172_v4, %v7181_v26 }
 0x768   :  { %v7186_v28 = vmul.f32 1.442695, %v7184_v53 }
 0x769   :  { %v7183_v7 = vpop.xlane.xlu0 %7182 }
 0x76a   :  { %9687 = vpow2.f32 %v7186_v28  ;;  %v7185_v8 = vsub.f32 %v7175_v6, %v7183_v7 }
 0x76c   :  { %v7188_v54 = vmul.f32 1.442695, %v7185_v8 }
 0x76e   :  { %9689 = vpow2.f32 %v7188_v54 }
 0x774   :  { %v9688_v9 = vpop.eup %9687 }
 0x775   :  { %7190 = vadd.xlane.f32.xlu1 %v9688_v9 }
 0x778   :  { %v9690_v37 = vpop.eup %9689 }
 0x779   :  { %7192 = vadd.xlane.f32.xlu1 %v9690_v37 }
 0x77a   :  { %9905 = shalt.err (!%p9902_p6)
}
 0x77b   :  { %s9906_s16 = scalar_lea.hbm %s10344_s9, 256 }
 0x77c   :  { %p9907_p7 = scmp.ne.s32.totalorder %s10344_s9, %s9906_s16  ;;  %p9910_p8 = scmp.lt.u32.totalorder %s9906_s16, %s10344_s9 }
 0x77e   :  { %p9912_p9 = pnand %p9910_p8, %p9907_p7 }
 0x780   :  { %9915 = shalt.err (!%p9912_p9)
}
 0x781   :  { %s9968_s20 = smov 128   ;;  %s9969_s5 = smov 8  }
 0x782   :  { %7211 = dma.vmem_to_hbm [thread:$0]  %s7206_s7, 256, %s10344_s9, [#allocation4], %s9968_s20, %s9968_s20, %s9969_s5  }
 0x783   :  { %s9970_s30 = smov [#allocation18]  }
 0x784   :  { %s7217_s4 = sshll.u32 %s9970_s30, 4  ;;  %s7218_s4 = int_to_ptr.vmem [resolvable:$true] %s7217_s4 }
 0x785   :  { %s9916_s14 = scalar_lea.vmem %s7218_s4, 256  ;;  %p9921_p11 = scmp.lt.s32.totalorder %s7218_s4, %s7218_s4 }
 0x786   :  { %p9917_p10 = scmp.ne.s32.totalorder %s7218_s4, %s9916_s14  ;;  %p9922_p12 = scmp.lt.s32.totalorder %s9916_s14, %s9916_s14 }
 0x788   :  { %p9923_p13 = por %p9922_p12, %p9921_p11 }
 0x78a   :  { %p9924_p0 = pnand %p9923_p13, %p9917_p10 }
 0x802   :  { %v7191_v56 = vpop.xlane.xlu1 %7190 }
 0x803   :  { %9691 = vrcp.f32 %v7191_v56 }
 0x806   :  { %v7193_v59 = vpop.xlane.xlu1 %7192 }
 0x807   :  { %9693 = vrcp.f32 %v7193_v59 }
 0x80d   :  { %v9692_v13 = vpop.eup %9691 }
 0x80e   :  { %v7195_v25 = vmul.f32 %v9692_v13, %v9688_v9 }
 0x810   :  { %7198 = vst [vmem:[#allocation18] sm:$0xff] %v7195_v25 }
 0x811   :  { %v9694_v14 = vpop.eup %9693 }
 0x812   :  { %v7197_v57 = vmul.f32 %v9694_v14, %v9690_v37 }
 0x814   :  { %7199 = vst [vmem:[#allocation18 + $0x8] sm:$0xff] %v7197_v57 }
 0x815   :  { %9927 = shalt.err (!%p9924_p0)
}
 0x816   :  { %s9928_s0 = scalar_lea.hbm %s10345_s10, 256 }
 0x817   :  { %p9929_p1 = scmp.ne.s32.totalorder %s10345_s10, %s9928_s0  ;;  %p9932_p2 = scmp.lt.u32.totalorder %s9928_s0, %s10345_s10 }
 0x819   :  { %p9934_p3 = pnand %p9932_p2, %p9929_p1 }
 0x81b   :  { %9937 = shalt.err (!%p9934_p3)
}
 0x81c   :  { %7223 = dma.vmem_to_hbm [thread:$0]  %s7218_s4, 256, %s10345_s10, [#allocation19], %s9968_s20, %s9968_s20, %s9969_s5  }
 0x81d   :  { %9948 = dma.done.wait [#allocation4], 256  }
 0x81e   :  { %9949 = vsyncadd [#allocation4], 4294967040 }
 0x81f   :  { %9950 = dma.done.wait [#allocation19], 256  }
 0x820   :  { %9951 = vsyncadd [#allocation19], 4294967040 }
 0x821   :  { %7230 = vsyncpa [#allocation3], 1 }
 0x822   :  { %7231 = vsyncpa [#allocation6], 1 }
 0x823   :  { %7232 = vsyncpa [#allocation9], 1 }
 0x824   :  { %7233 = vsyncpa [#allocation12], 1 }
 0x825   :  { %7234 = vsyncpa [#allocation15], 1 }
 0x826   :  { %7235 = vsyncpa [#allocation4], 1 }
 0x827   :  { %7236 = vsyncpa [#allocation19], 1 }

</bundles_post_ra>
